<compile_context>
chip_gen: v7x
topology: tpu7x:2x2x1
jax: 0.10.0
libtpu: 0.0.40
codegen_flags: <defaults>
</compile_context>

<pallas_src>
import jax
import jax.numpy as jnp
from jax.experimental import pallas as pl
from jax.experimental.pallas import tpu as pltpu


OUT_PAD = 128  # lane-dense output width (true logits live in columns [:2])


# ----------------------------- Pallas kernel ------------------------------ #
def net2_mlp_kernel(
    x_ref,            # (B_TILE, n_in)  bf16 input (embeddings ++ x_cont)
    w1_ref, b1_ref,   # lin1 with bn1 folded in: (n_in, 300), (1, 300)  bf16
    w2_ref, b2_ref,   # lin2 with bn2 folded in: (300, 300), (1, 300)   bf16
    wf_ref, bf_ref,   # fcmod Linear+BN folded:  (300, 300), (1, 300)   bf16
    wt_ref, bt_ref,   # fused lin2f*bn3*lin3:    (300, 128) bf16, (1, 128) f32
    out_ref,          # (B_TILE, 128) f32
):
    f32 = jnp.float32
    bf16 = jnp.bfloat16

    # relu(lin1(x))  (bn1 pre-folded into w1/b1; emb-dropout is identity)
    # Single-pass bf16 MXU matmul, f32 accumulation, bf16 bias+ReLU.
    h = jnp.dot(x_ref[...], w1_ref[...], preferred_element_type=f32)
    h = jnp.maximum(h.astype(bf16) + b1_ref[...], 0)

    # relu(lin2(bn2(x)))  (bn2 pre-folded into w2/b2; dropout identity)
    h = jnp.dot(h, w2_ref[...], preferred_element_type=f32)
    h = jnp.maximum(h.astype(bf16) + b2_ref[...], 0)

    # 15x shared fcmod block: relu(BN(Linear(x)))  (BN folded into wf/bf)
    wf = wf_ref[...]
    # Hoist the (1,300)->(B_TILE,300) bias broadcast out of the unrolled loop
    # (JAX does not CSE broadcast_in_dim).
    bf_b = jnp.broadcast_to(bf_ref[...], h.shape)

    def body(_, hc):
        z = jnp.dot(hc, wf, preferred_element_type=f32)
        return jnp.maximum(z.astype(bf16) + bf_b, 0)

    h = jax.lax.fori_loop(0, 15, body, h, unroll=True)

    # fused tail: lin3(bn3(lin2f(x)))  ->  single matmul, lane-dense f32 store
    out_ref[...] = jnp.dot(h, wt_ref[...], preferred_element_type=f32) + bt_ref[...]


# ------------------------------ parameters -------------------------------- #
def fold_bn(gamma, beta, mean, var, eps=1e-5):
    scale = gamma / jnp.sqrt(var + eps)
    shift = beta - mean * scale
    return scale, shift


def init_params(key, embedding_sizes, n_cont):
    ks = iter(jax.random.split(key, 64))
    p = {}
    p["emb"] = [
        0.1 * jax.random.normal(next(ks), (cats, dim), jnp.float32)
        for cats, dim in embedding_sizes
    ]
    n_emb = sum(dim for _, dim in embedding_sizes)
    n_in = n_emb + n_cont

    def linear(k, fan_in, fan_out):
        kw, kb = jax.random.split(k)
        w = jax.random.normal(kw, (fan_in, fan_out), jnp.float32) / jnp.sqrt(fan_in)
        b = 0.01 * jax.random.normal(kb, (1, fan_out), jnp.float32)
        return w, b

    def bn(k, n):
        k1, k2, k3, k4 = jax.random.split(k, 4)
        gamma = 1.0 + 0.1 * jax.random.normal(k1, (n,), jnp.float32)
        beta = 0.1 * jax.random.normal(k2, (n,), jnp.float32)
        mean = 0.1 * jax.random.normal(k3, (n,), jnp.float32)
        var = 1.0 + 0.5 * jax.random.uniform(k4, (n,), jnp.float32)
        return fold_bn(gamma, beta, mean, var)

    p["lin1"] = linear(next(ks), n_in, 300)
    p["lin2"] = linear(next(ks), 300, 300)
    p["fcmod_lin"] = linear(next(ks), 300, 300)
    p["lin2f"] = linear(next(ks), 300, 50)
    p["lin3"] = linear(next(ks), 50, 2)
    p["bn1"] = bn(next(ks), n_cont)
    p["bn2"] = bn(next(ks), 300)
    p["fcmod_bn"] = bn(next(ks), 300)
    p["bn3"] = bn(next(ks), 50)
    p["n_emb"], p["n_cont"] = n_emb, n_cont   # Python ints, never passed to jit
    return p


def fold_params(params):
    """Host-side (non-jit) folding of every BN affine into adjacent Linears.

    All matmul operands are cast to bf16 (single-pass MXU on v5e/v6e/v7x); the
    final fused-tail bias stays f32 since it is added to the f32 accumulator.
    """
    n_emb = int(params["n_emb"])              # static Python int
    f32 = jnp.float32
    bf16 = jnp.bfloat16

    # bn1 acts on the x_cont slice only -> full-width scale/shift, identity on emb.
    s1, sh1 = params["bn1"]
    s0 = jnp.concatenate([jnp.ones((n_emb,), f32), s1])
    sh0 = jnp.concatenate([jnp.zeros((n_emb,), f32), sh1])

    # lin1 with bn1 folded (pre-scale on the input side):
    w1, b1 = params["lin1"]
    w1f = s0[:, None] * w1
    b1f = b1 + sh0[None, :] @ w1

    # lin2 with bn2 folded (bn2 applied to lin1's relu output, before lin2):
    s2, sh2 = params["bn2"]
    w2, b2 = params["lin2"]
    w2f = s2[:, None] * w2
    b2f = b2 + sh2[None, :] @ w2

    # fcmod: relu(BN(Linear(x))) -> column-scale the weight, fold bias.
    wf, bf = params["fcmod_lin"]
    sf, shf = params["fcmod_bn"]
    wff = wf * sf[None, :]
    bff = bf * sf[None, :] + shf[None, :]

    # Tail fusion: lin3(bn3(lin2f(x))) -> single (300, 2) matmul + bias.
    w_2f, b_2f = params["lin2f"]
    s3, sh3 = params["bn3"]
    w3, b3 = params["lin3"]
    wt = (w_2f * s3[None, :]) @ w3                          # (300, 2)
    bt = (b_2f * s3[None, :] + sh3[None, :]) @ w3 + b3      # (1, 2)

    # Pad the tail to 128 output lanes so the kernel's store is lane-dense.
    wt_p = jnp.zeros((wt.shape[0], OUT_PAD), f32).at[:, :2].set(wt)
    bt_p = jnp.zeros((1, OUT_PAD), f32).at[:, :2].set(bt)

    return {
        "emb": params["emb"],
        "w1": w1f.astype(bf16), "b1": b1f.astype(bf16),
        "w2": w2f.astype(bf16), "b2": b2f.astype(bf16),
        "wf": wff.astype(bf16), "bf": bff.astype(bf16),
        "wt": wt_p.astype(bf16), "bt": bt_p,     # bt stays f32 (added to f32 acc)
    }


# ------------------------------ batch tiling -------------------------------- #
def _pick_b_tile(batch: int) -> int:
    """Batch tile (Python ints, static inside jit).

    * >= 2 grid steps whenever batch > 8 so v7x's 2 TensorCores both get work
      under dimension_semantics=("parallel",).
    * multiple of 8 (f32/bf16 sublane); multiples of 128 once tiles are large.
    * capped at 1024 (weights + tiles stay far under the scoped-VMEM limit on
      all of v5e/v6e/v7x while amortizing the ~0.35us per-grid-step overhead).
    """
    cap = 1024
    if batch <= 8:
        return 8
    half = (batch + 1) // 2                  # aim for 2 grid steps
    gran = 128 if half >= 256 else 8
    tile = ((half + gran - 1) // gran) * gran
    return min(cap, tile)


# ------------------------------- wrapper ----------------------------------- #
@jax.jit
def net2_forward(x_cat, x_cont, folded):
    B = x_cat.shape[0]                         # static inside jit
    b_tile = _pick_b_tile(B)
    b_pad = pl.cdiv(B, b_tile) * b_tile

    if b_pad != B:
        # Pad the *inputs* (cheap) so the gather/concat writes the final padded
        # buffer directly -- no separate jnp.pad of x0. Padded rows use index 0
        # (always valid) and are sliced off at the end.
        x_cat = jnp.pad(x_cat, ((0, b_pad - B), (0, 0)))
        x_cont = jnp.pad(x_cont, ((0, b_pad - B), (0, 0)))

    # Embedding gather + concat (thin XLA glue), cast once to bf16.
    # TODO(synk): the gather could move in-kernel (tables VMEM-resident + jnp.take),
    # but the dynamic small-last-dim gather is fragile to lower; kept outside.
    embs = [tbl[x_cat[:, i]] for i, tbl in enumerate(folded["emb"])]
    x0 = jnp.concatenate(embs + [x_cont.astype(jnp.float32)], axis=1)
    x0 = x0.astype(jnp.bfloat16)
    n_in = x0.shape[1]

    const = lambda i: (0, 0)   # weights resident in VMEM across all grid steps
    out = pl.pallas_call(
        net2_mlp_kernel,
        out_shape=jax.ShapeDtypeStruct((b_pad, OUT_PAD), jnp.float32),
        grid=(b_pad // b_tile,),
        in_specs=[
            pl.BlockSpec((b_tile, n_in), lambda i: (i, 0)),
            pl.BlockSpec(folded["w1"].shape, const),
            pl.BlockSpec(folded["b1"].shape, const),
            pl.BlockSpec(folded["w2"].shape, const),
            pl.BlockSpec(folded["b2"].shape, const),
            pl.BlockSpec(folded["wf"].shape, const),
            pl.BlockSpec(folded["bf"].shape, const),
            pl.BlockSpec(folded["wt"].shape, const),
            pl.BlockSpec(folded["bt"].shape, const),
        ],
        out_specs=pl.BlockSpec((b_tile, OUT_PAD), lambda i: (i, 0)),
        compiler_params=pltpu.CompilerParams(
            dimension_semantics=("parallel",)),
    )(
        x0,
        folded["w1"], folded["b1"],
        folded["w2"], folded["b2"],
        folded["wf"], folded["bf"],
        folded["wt"], folded["bt"],
    )
    return out[:B, :2]


# -------------------- bf16-matched reference (same math) ------------------- #
def net2_folded_reference(x_cat, x_cont, folded):
    """Pure-JAX replay of the kernel's exact bf16 arithmetic (tight check)."""
    f32, bf16 = jnp.float32, jnp.bfloat16
    embs = [tbl[x_cat[:, i]] for i, tbl in enumerate(folded["emb"])]
    x = jnp.concatenate(embs + [x_cont.astype(f32)], axis=1).astype(bf16)
    h = jnp.dot(x, folded["w1"], preferred_element_type=f32)
    h = jnp.maximum(h.astype(bf16) + folded["b1"], 0)
    h = jnp.dot(h, folded["w2"], preferred_element_type=f32)
    h = jnp.maximum(h.astype(bf16) + folded["b2"], 0)
    for _ in range(15):
        z = jnp.dot(h, folded["wf"], preferred_element_type=f32)
        h = jnp.maximum(z.astype(bf16) + folded["bf"], 0)
    out = jnp.dot(h, folded["wt"], preferred_element_type=f32) + folded["bt"]
    return out[:, :2]


# --------------------------- pure-JAX f32 reference ------------------------ #
def net2_reference(x_cat, x_cont, params):
    """Exact f32 module semantics (loose check against the bf16 kernel)."""
    hp = jax.lax.Precision.HIGHEST
    embs = [tbl[x_cat[:, i]] for i, tbl in enumerate(params["emb"])]
    x = jnp.concatenate(embs, axis=1)
    s1, sh1 = params["bn1"]
    x2 = x_cont * s1 + sh1
    x = jnp.concatenate([x, x2], axis=1)
    w1, b1 = params["lin1"]
    x = jnp.maximum(jnp.dot(x, w1, precision=hp) + b1, 0.0)
    s2, sh2 = params["bn2"]
    x = x * s2 + sh2
    w2, b2 = params["lin2"]
    x = jnp.maximum(jnp.dot(x, w2, precision=hp) + b2, 0.0)
    wf, bf = params["fcmod_lin"]
    sf, shf = params["fcmod_bn"]
    for _ in range(15):
        x = jnp.maximum((jnp.dot(x, wf, precision=hp) + bf) * sf + shf, 0.0)
    w2f, b2f = params["lin2f"]
    x = jnp.dot(x, w2f, precision=hp) + b2f
    s3, sh3 = params["bn3"]
    x = x * s3 + sh3
    w3, b3 = params["lin3"]
    return jnp.dot(x, w3, precision=hp) + b3


# ---------------------------------- main ----------------------------------- #
if __name__ == "__main__":
    key = jax.random.PRNGKey(0)
    k_param, k_cat, k_cont = jax.random.split(key, 3)

    embedding_sizes = [(10, 4), (8, 5), (6, 3)]   # n_emb = 12
    n_cont = 4
    B = 8

    params = init_params(k_param, embedding_sizes, n_cont)
    folded = fold_params(params)                  # host-side, outside jit

    maxes = jnp.array([c for c, _ in embedding_sizes], jnp.int32)
    x_cat = jax.random.randint(k_cat, (B, len(embedding_sizes)), 0, 6).astype(jnp.int32)
    x_cat = jnp.minimum(x_cat, maxes - 1)
    x_cont = jax.random.normal(k_cont, (B, n_cont), jnp.float32)

    out = net2_forward(x_cat, x_cont, folded)
    out = jax.block_until_ready(out)

    ref_bf16 = net2_folded_reference(x_cat, x_cont, folded)  # same bf16 math
    ref_f32 = net2_reference(x_cat, x_cont, params)          # exact module math

    assert out.shape == (B, 2)
    assert jnp.allclose(out, ref_bf16, rtol=5e-3, atol=5e-3), "mismatch vs bf16 reference"
    assert jnp.allclose(out, ref_f32, rtol=5e-2, atol=5e-2), "mismatch vs f32 reference"

    print("KERNEL_OK")
</pallas_src>

<mosaic_0001>
module attributes {stable_mosaic.version = 11 : i64} {
  func.func @net2_mlp_kernel(%arg0: i32, %arg1: memref<8x16xbf16, #tpu.memory_space<vmem>>, %arg2: memref<16x300xbf16, #tpu.memory_space<vmem>>, %arg3: memref<1x300xbf16, #tpu.memory_space<vmem>>, %arg4: memref<300x300xbf16, #tpu.memory_space<vmem>>, %arg5: memref<1x300xbf16, #tpu.memory_space<vmem>>, %arg6: memref<300x300xbf16, #tpu.memory_space<vmem>>, %arg7: memref<1x300xbf16, #tpu.memory_space<vmem>>, %arg8: memref<300x128xbf16, #tpu.memory_space<vmem>>, %arg9: memref<1x128xf32, #tpu.memory_space<vmem>>, %arg10: memref<8x128xf32, #tpu.memory_space<vmem>>) attributes {dimension_semantics = [#tpu.dimension_semantics<parallel>], iteration_bounds = array<i64: 1>, scalar_prefetch = 0 : i64, scratch_operands = 0 : i64, tpu.core_type = #tpu.core_type<tc>, window_params = [{transform_indices = @transform_0, window_bounds = array<i64: 8, 16>}, {pipeline_mode = #tpu.pipeline_mode<synchronous>, transform_indices = @transform_1, window_bounds = array<i64: 16, 300>}, {pipeline_mode = #tpu.pipeline_mode<synchronous>, transform_indices = @transform_2, window_bounds = array<i64: 1, 300>}, {pipeline_mode = #tpu.pipeline_mode<synchronous>, transform_indices = @transform_3, window_bounds = array<i64: 300, 300>}, {pipeline_mode = #tpu.pipeline_mode<synchronous>, transform_indices = @transform_4, window_bounds = array<i64: 1, 300>}, {pipeline_mode = #tpu.pipeline_mode<synchronous>, transform_indices = @transform_5, window_bounds = array<i64: 300, 300>}, {pipeline_mode = #tpu.pipeline_mode<synchronous>, transform_indices = @transform_6, window_bounds = array<i64: 1, 300>}, {pipeline_mode = #tpu.pipeline_mode<synchronous>, transform_indices = @transform_7, window_bounds = array<i64: 300, 128>}, {pipeline_mode = #tpu.pipeline_mode<synchronous>, transform_indices = @transform_8, window_bounds = array<i64: 1, 128>}, {transform_indices = @transform_9, window_bounds = array<i64: 8, 128>}]} {
    %c0 = arith.constant 0 : index
    %c0_0 = arith.constant 0 : index
    %0 = vector.load %arg1[%c0, %c0_0] : memref<8x16xbf16, #tpu.memory_space<vmem>>, vector<8x16xbf16>
    %c0_1 = arith.constant 0 : index
    %c0_2 = arith.constant 0 : index
    %1 = vector.load %arg2[%c0_1, %c0_2] : memref<16x300xbf16, #tpu.memory_space<vmem>>, vector<16x300xbf16>
    %cst = arith.constant dense<0.000000e+00> : vector<8x300xf32>
    %2 = tpu.matmul %0, %1, %cst {dimension_numbers = #tpu.dot_dimension_numbers<[1], [0], [0], [1], [0, 0, 1, 1], [], []>} : vector<8x16xbf16>, vector<16x300xbf16>, vector<8x300xf32> -> vector<8x300xf32>
    %3 = arith.truncf %2 : vector<8x300xf32> to vector<8x300xbf16>
    %c0_3 = arith.constant 0 : index
    %c0_4 = arith.constant 0 : index
    %4 = vector.load %arg3[%c0_3, %c0_4] : memref<1x300xbf16, #tpu.memory_space<vmem>>, vector<1x300xbf16>
    %5 = vector.broadcast %4 : vector<1x300xbf16> to vector<8x300xbf16>
    %6 = arith.addf %3, %5 : vector<8x300xbf16>
    %cst_5 = arith.constant 0.000000e+00 : bf16
    %7 = vector.broadcast %cst_5 : bf16 to vector<8x300xbf16>
    %8 = arith.maximumf %6, %7 : vector<8x300xbf16>
    %c0_6 = arith.constant 0 : index
    %c0_7 = arith.constant 0 : index
    %9 = vector.load %arg4[%c0_6, %c0_7] : memref<300x300xbf16, #tpu.memory_space<vmem>>, vector<300x300xbf16>
    %cst_8 = arith.constant dense<0.000000e+00> : vector<8x300xf32>
    %10 = tpu.matmul %8, %9, %cst_8 {dimension_numbers = #tpu.dot_dimension_numbers<[1], [0], [0], [1], [0, 0, 1, 1], [], []>} : vector<8x300xbf16>, vector<300x300xbf16>, vector<8x300xf32> -> vector<8x300xf32>
    %11 = arith.truncf %10 : vector<8x300xf32> to vector<8x300xbf16>
    %c0_9 = arith.constant 0 : index
    %c0_10 = arith.constant 0 : index
    %12 = vector.load %arg5[%c0_9, %c0_10] : memref<1x300xbf16, #tpu.memory_space<vmem>>, vector<1x300xbf16>
    %13 = vector.broadcast %12 : vector<1x300xbf16> to vector<8x300xbf16>
    %14 = arith.addf %11, %13 : vector<8x300xbf16>
    %cst_11 = arith.constant 0.000000e+00 : bf16
    %15 = vector.broadcast %cst_11 : bf16 to vector<8x300xbf16>
    %16 = arith.maximumf %14, %15 : vector<8x300xbf16>
    %c0_12 = arith.constant 0 : index
    %c0_13 = arith.constant 0 : index
    %17 = vector.load %arg6[%c0_12, %c0_13] : memref<300x300xbf16, #tpu.memory_space<vmem>>, vector<300x300xbf16>
    %c0_14 = arith.constant 0 : index
    %c0_15 = arith.constant 0 : index
    %18 = vector.load %arg7[%c0_14, %c0_15] : memref<1x300xbf16, #tpu.memory_space<vmem>>, vector<1x300xbf16>
    %19 = vector.shape_cast %18 : vector<1x300xbf16> to vector<1x300xbf16>
    %20 = vector.broadcast %19 : vector<1x300xbf16> to vector<8x300xbf16>
    %c0_i32 = arith.constant 0 : i32
    %cst_16 = arith.constant dense<0.000000e+00> : vector<8x300xf32>
    %21 = tpu.matmul %16, %17, %cst_16 {dimension_numbers = #tpu.dot_dimension_numbers<[1], [0], [0], [1], [0, 0, 1, 1], [], []>} : vector<8x300xbf16>, vector<300x300xbf16>, vector<8x300xf32> -> vector<8x300xf32>
    %22 = arith.truncf %21 : vector<8x300xf32> to vector<8x300xbf16>
    %23 = arith.addf %22, %20 : vector<8x300xbf16>
    %cst_17 = arith.constant 0.000000e+00 : bf16
    %24 = vector.broadcast %cst_17 : bf16 to vector<8x300xbf16>
    %25 = arith.maximumf %23, %24 : vector<8x300xbf16>
    %c1_i32 = arith.constant 1 : i32
    %cst_18 = arith.constant dense<0.000000e+00> : vector<8x300xf32>
    %26 = tpu.matmul %25, %17, %cst_18 {dimension_numbers = #tpu.dot_dimension_numbers<[1], [0], [0], [1], [0, 0, 1, 1], [], []>} : vector<8x300xbf16>, vector<300x300xbf16>, vector<8x300xf32> -> vector<8x300xf32>
    %27 = arith.truncf %26 : vector<8x300xf32> to vector<8x300xbf16>
    %28 = arith.addf %27, %20 : vector<8x300xbf16>
    %cst_19 = arith.constant 0.000000e+00 : bf16
    %29 = vector.broadcast %cst_19 : bf16 to vector<8x300xbf16>
    %30 = arith.maximumf %28, %29 : vector<8x300xbf16>
    %c2_i32 = arith.constant 2 : i32
    %cst_20 = arith.constant dense<0.000000e+00> : vector<8x300xf32>
    %31 = tpu.matmul %30, %17, %cst_20 {dimension_numbers = #tpu.dot_dimension_numbers<[1], [0], [0], [1], [0, 0, 1, 1], [], []>} : vector<8x300xbf16>, vector<300x300xbf16>, vector<8x300xf32> -> vector<8x300xf32>
    %32 = arith.truncf %31 : vector<8x300xf32> to vector<8x300xbf16>
    %33 = arith.addf %32, %20 : vector<8x300xbf16>
    %cst_21 = arith.constant 0.000000e+00 : bf16
    %34 = vector.broadcast %cst_21 : bf16 to vector<8x300xbf16>
    %35 = arith.maximumf %33, %34 : vector<8x300xbf16>
    %c3_i32 = arith.constant 3 : i32
    %cst_22 = arith.constant dense<0.000000e+00> : vector<8x300xf32>
    %36 = tpu.matmul %35, %17, %cst_22 {dimension_numbers = #tpu.dot_dimension_numbers<[1], [0], [0], [1], [0, 0, 1, 1], [], []>} : vector<8x300xbf16>, vector<300x300xbf16>, vector<8x300xf32> -> vector<8x300xf32>
    %37 = arith.truncf %36 : vector<8x300xf32> to vector<8x300xbf16>
    %38 = arith.addf %37, %20 : vector<8x300xbf16>
    %cst_23 = arith.constant 0.000000e+00 : bf16
    %39 = vector.broadcast %cst_23 : bf16 to vector<8x300xbf16>
    %40 = arith.maximumf %38, %39 : vector<8x300xbf16>
    %c4_i32 = arith.constant 4 : i32
    %cst_24 = arith.constant dense<0.000000e+00> : vector<8x300xf32>
    %41 = tpu.matmul %40, %17, %cst_24 {dimension_numbers = #tpu.dot_dimension_numbers<[1], [0], [0], [1], [0, 0, 1, 1], [], []>} : vector<8x300xbf16>, vector<300x300xbf16>, vector<8x300xf32> -> vector<8x300xf32>
    %42 = arith.truncf %41 : vector<8x300xf32> to vector<8x300xbf16>
    %43 = arith.addf %42, %20 : vector<8x300xbf16>
    %cst_25 = arith.constant 0.000000e+00 : bf16
    %44 = vector.broadcast %cst_25 : bf16 to vector<8x300xbf16>
    %45 = arith.maximumf %43, %44 : vector<8x300xbf16>
    %c5_i32 = arith.constant 5 : i32
    %cst_26 = arith.constant dense<0.000000e+00> : vector<8x300xf32>
    %46 = tpu.matmul %45, %17, %cst_26 {dimension_numbers = #tpu.dot_dimension_numbers<[1], [0], [0], [1], [0, 0, 1, 1], [], []>} : vector<8x300xbf16>, vector<300x300xbf16>, vector<8x300xf32> -> vector<8x300xf32>
    %47 = arith.truncf %46 : vector<8x300xf32> to vector<8x300xbf16>
    %48 = arith.addf %47, %20 : vector<8x300xbf16>
    %cst_27 = arith.constant 0.000000e+00 : bf16
    %49 = vector.broadcast %cst_27 : bf16 to vector<8x300xbf16>
    %50 = arith.maximumf %48, %49 : vector<8x300xbf16>
    %c6_i32 = arith.constant 6 : i32
    %cst_28 = arith.constant dense<0.000000e+00> : vector<8x300xf32>
    %51 = tpu.matmul %50, %17, %cst_28 {dimension_numbers = #tpu.dot_dimension_numbers<[1], [0], [0], [1], [0, 0, 1, 1], [], []>} : vector<8x300xbf16>, vector<300x300xbf16>, vector<8x300xf32> -> vector<8x300xf32>
    %52 = arith.truncf %51 : vector<8x300xf32> to vector<8x300xbf16>
    %53 = arith.addf %52, %20 : vector<8x300xbf16>
    %cst_29 = arith.constant 0.000000e+00 : bf16
    %54 = vector.broadcast %cst_29 : bf16 to vector<8x300xbf16>
    %55 = arith.maximumf %53, %54 : vector<8x300xbf16>
    %c7_i32 = arith.constant 7 : i32
    %cst_30 = arith.constant dense<0.000000e+00> : vector<8x300xf32>
    %56 = tpu.matmul %55, %17, %cst_30 {dimension_numbers = #tpu.dot_dimension_numbers<[1], [0], [0], [1], [0, 0, 1, 1], [], []>} : vector<8x300xbf16>, vector<300x300xbf16>, vector<8x300xf32> -> vector<8x300xf32>
    %57 = arith.truncf %56 : vector<8x300xf32> to vector<8x300xbf16>
    %58 = arith.addf %57, %20 : vector<8x300xbf16>
    %cst_31 = arith.constant 0.000000e+00 : bf16
    %59 = vector.broadcast %cst_31 : bf16 to vector<8x300xbf16>
    %60 = arith.maximumf %58, %59 : vector<8x300xbf16>
    %c8_i32 = arith.constant 8 : i32
    %cst_32 = arith.constant dense<0.000000e+00> : vector<8x300xf32>
    %61 = tpu.matmul %60, %17, %cst_32 {dimension_numbers = #tpu.dot_dimension_numbers<[1], [0], [0], [1], [0, 0, 1, 1], [], []>} : vector<8x300xbf16>, vector<300x300xbf16>, vector<8x300xf32> -> vector<8x300xf32>
    %62 = arith.truncf %61 : vector<8x300xf32> to vector<8x300xbf16>
    %63 = arith.addf %62, %20 : vector<8x300xbf16>
    %cst_33 = arith.constant 0.000000e+00 : bf16
    %64 = vector.broadcast %cst_33 : bf16 to vector<8x300xbf16>
    %65 = arith.maximumf %63, %64 : vector<8x300xbf16>
    %c9_i32 = arith.constant 9 : i32
    %cst_34 = arith.constant dense<0.000000e+00> : vector<8x300xf32>
    %66 = tpu.matmul %65, %17, %cst_34 {dimension_numbers = #tpu.dot_dimension_numbers<[1], [0], [0], [1], [0, 0, 1, 1], [], []>} : vector<8x300xbf16>, vector<300x300xbf16>, vector<8x300xf32> -> vector<8x300xf32>
    %67 = arith.truncf %66 : vector<8x300xf32> to vector<8x300xbf16>
    %68 = arith.addf %67, %20 : vector<8x300xbf16>
    %cst_35 = arith.constant 0.000000e+00 : bf16
    %69 = vector.broadcast %cst_35 : bf16 to vector<8x300xbf16>
    %70 = arith.maximumf %68, %69 : vector<8x300xbf16>
    %c10_i32 = arith.constant 10 : i32
    %cst_36 = arith.constant dense<0.000000e+00> : vector<8x300xf32>
    %71 = tpu.matmul %70, %17, %cst_36 {dimension_numbers = #tpu.dot_dimension_numbers<[1], [0], [0], [1], [0, 0, 1, 1], [], []>} : vector<8x300xbf16>, vector<300x300xbf16>, vector<8x300xf32> -> vector<8x300xf32>
    %72 = arith.truncf %71 : vector<8x300xf32> to vector<8x300xbf16>
    %73 = arith.addf %72, %20 : vector<8x300xbf16>
    %cst_37 = arith.constant 0.000000e+00 : bf16
    %74 = vector.broadcast %cst_37 : bf16 to vector<8x300xbf16>
    %75 = arith.maximumf %73, %74 : vector<8x300xbf16>
    %c11_i32 = arith.constant 11 : i32
    %cst_38 = arith.constant dense<0.000000e+00> : vector<8x300xf32>
    %76 = tpu.matmul %75, %17, %cst_38 {dimension_numbers = #tpu.dot_dimension_numbers<[1], [0], [0], [1], [0, 0, 1, 1], [], []>} : vector<8x300xbf16>, vector<300x300xbf16>, vector<8x300xf32> -> vector<8x300xf32>
    %77 = arith.truncf %76 : vector<8x300xf32> to vector<8x300xbf16>
    %78 = arith.addf %77, %20 : vector<8x300xbf16>
    %cst_39 = arith.constant 0.000000e+00 : bf16
    %79 = vector.broadcast %cst_39 : bf16 to vector<8x300xbf16>
    %80 = arith.maximumf %78, %79 : vector<8x300xbf16>
    %c12_i32 = arith.constant 12 : i32
    %cst_40 = arith.constant dense<0.000000e+00> : vector<8x300xf32>
    %81 = tpu.matmul %80, %17, %cst_40 {dimension_numbers = #tpu.dot_dimension_numbers<[1], [0], [0], [1], [0, 0, 1, 1], [], []>} : vector<8x300xbf16>, vector<300x300xbf16>, vector<8x300xf32> -> vector<8x300xf32>
    %82 = arith.truncf %81 : vector<8x300xf32> to vector<8x300xbf16>
    %83 = arith.addf %82, %20 : vector<8x300xbf16>
    %cst_41 = arith.constant 0.000000e+00 : bf16
    %84 = vector.broadcast %cst_41 : bf16 to vector<8x300xbf16>
    %85 = arith.maximumf %83, %84 : vector<8x300xbf16>
    %c13_i32 = arith.constant 13 : i32
    %cst_42 = arith.constant dense<0.000000e+00> : vector<8x300xf32>
    %86 = tpu.matmul %85, %17, %cst_42 {dimension_numbers = #tpu.dot_dimension_numbers<[1], [0], [0], [1], [0, 0, 1, 1], [], []>} : vector<8x300xbf16>, vector<300x300xbf16>, vector<8x300xf32> -> vector<8x300xf32>
    %87 = arith.truncf %86 : vector<8x300xf32> to vector<8x300xbf16>
    %88 = arith.addf %87, %20 : vector<8x300xbf16>
    %cst_43 = arith.constant 0.000000e+00 : bf16
    %89 = vector.broadcast %cst_43 : bf16 to vector<8x300xbf16>
    %90 = arith.maximumf %88, %89 : vector<8x300xbf16>
    %c14_i32 = arith.constant 14 : i32
    %cst_44 = arith.constant dense<0.000000e+00> : vector<8x300xf32>
    %91 = tpu.matmul %90, %17, %cst_44 {dimension_numbers = #tpu.dot_dimension_numbers<[1], [0], [0], [1], [0, 0, 1, 1], [], []>} : vector<8x300xbf16>, vector<300x300xbf16>, vector<8x300xf32> -> vector<8x300xf32>
    %92 = arith.truncf %91 : vector<8x300xf32> to vector<8x300xbf16>
    %93 = arith.addf %92, %20 : vector<8x300xbf16>
    %cst_45 = arith.constant 0.000000e+00 : bf16
    %94 = vector.broadcast %cst_45 : bf16 to vector<8x300xbf16>
    %95 = arith.maximumf %93, %94 : vector<8x300xbf16>
    %c0_46 = arith.constant 0 : index
    %c0_47 = arith.constant 0 : index
    %96 = vector.load %arg8[%c0_46, %c0_47] : memref<300x128xbf16, #tpu.memory_space<vmem>>, vector<300x128xbf16>
    %cst_48 = arith.constant dense<0.000000e+00> : vector<8x128xf32>
    %97 = tpu.matmul %95, %96, %cst_48 {dimension_numbers = #tpu.dot_dimension_numbers<[1], [0], [0], [1], [0, 0, 1, 1], [], []>} : vector<8x300xbf16>, vector<300x128xbf16>, vector<8x128xf32> -> vector<8x128xf32>
    %c0_49 = arith.constant 0 : index
    %c0_50 = arith.constant 0 : index
    %98 = vector.load %arg9[%c0_49, %c0_50] : memref<1x128xf32, #tpu.memory_space<vmem>>, vector<1x128xf32>
    %99 = vector.broadcast %98 : vector<1x128xf32> to vector<8x128xf32>
    %100 = arith.addf %97, %99 : vector<8x128xf32>
    %c0_51 = arith.constant 0 : index
    %c0_52 = arith.constant 0 : index
    %101 = vector.load %arg10[%c0_51, %c0_52] : memref<8x128xf32, #tpu.memory_space<vmem>>, vector<8x128xf32>
    tpu.vector_store %arg10[%c0_51, %c0_52], %100 {strides = array<i32>} : memref<8x128xf32, #tpu.memory_space<vmem>>, vector<8x128xf32>,
    return
  }
  func.func @transform_0(%arg0: i32) -> (i32, i32) {
    %c0_i32 = arith.constant 0 : i32
    %c0_i32_0 = arith.constant 0 : i32
    return %arg0, %c0_i32 : i32, i32
  }
  func.func @transform_1(%arg0: i32) -> (i32, i32) {
    %c0_i32 = arith.constant 0 : i32
    %c0_i32_0 = arith.constant 0 : i32
    %c0_i32_1 = arith.constant 0 : i32
    return %c0_i32, %c0_i32_0 : i32, i32
  }
  func.func @transform_2(%arg0: i32) -> (i32, i32) {
    %c0_i32 = arith.constant 0 : i32
    %c0_i32_0 = arith.constant 0 : i32
    %c0_i32_1 = arith.constant 0 : i32
    return %c0_i32, %c0_i32_0 : i32, i32
  }
  func.func @transform_3(%arg0: i32) -> (i32, i32) {
    %c0_i32 = arith.constant 0 : i32
    %c0_i32_0 = arith.constant 0 : i32
    %c0_i32_1 = arith.constant 0 : i32
    return %c0_i32, %c0_i32_0 : i32, i32
  }
  func.func @transform_4(%arg0: i32) -> (i32, i32) {
    %c0_i32 = arith.constant 0 : i32
    %c0_i32_0 = arith.constant 0 : i32
    %c0_i32_1 = arith.constant 0 : i32
    return %c0_i32, %c0_i32_0 : i32, i32
  }
  func.func @transform_5(%arg0: i32) -> (i32, i32) {
    %c0_i32 = arith.constant 0 : i32
    %c0_i32_0 = arith.constant 0 : i32
    %c0_i32_1 = arith.constant 0 : i32
    return %c0_i32, %c0_i32_0 : i32, i32
  }
  func.func @transform_6(%arg0: i32) -> (i32, i32) {
    %c0_i32 = arith.constant 0 : i32
    %c0_i32_0 = arith.constant 0 : i32
    %c0_i32_1 = arith.constant 0 : i32
    return %c0_i32, %c0_i32_0 : i32, i32
  }
  func.func @transform_7(%arg0: i32) -> (i32, i32) {
    %c0_i32 = arith.constant 0 : i32
    %c0_i32_0 = arith.constant 0 : i32
    %c0_i32_1 = arith.constant 0 : i32
    return %c0_i32, %c0_i32_0 : i32, i32
  }
  func.func @transform_8(%arg0: i32) -> (i32, i32) {
    %c0_i32 = arith.constant 0 : i32
    %c0_i32_0 = arith.constant 0 : i32
    %c0_i32_1 = arith.constant 0 : i32
    return %c0_i32, %c0_i32_0 : i32, i32
  }
  func.func @transform_9(%arg0: i32) -> (i32, i32) {
    %c0_i32 = arith.constant 0 : i32
    %c0_i32_0 = arith.constant 0 : i32
    return %arg0, %c0_i32 : i32, i32
  }
}

</mosaic_0001>

<bundles_post_ra>
// kernel: net2_forward.1
= control target key start
LH: loop header
LB: loop body
LE: loop exit
PB: predicated region body
PF: predicated region fallthrough
CT: control target
= control target key end

     0   :  { %14 = vsyncpa [#allocation3], 0  ;;  %s6976_s0 = inlined_call_operand.vmem [shape: bf16[8,16], index: 0, kind: input, shape index: {}]   ;;  %s6977_s1 = inlined_call_operand.vmem [shape: bf16[16,300], index: 1, kind: input, shape index: {}]   ;;  %s6978_s2 = inlined_call_operand.vmem [shape: bf16[1,300], index: 2, kind: input, shape index: {}]   ;;  %s6979_s3 = inlined_call_operand.hbm [shape: bf16[300,300], index: 3, kind: input, shape index: {}]   ;;  %s6980_s4 = inlined_call_operand.vmem [shape: bf16[1,300], index: 4, kind: input, shape index: {}]   ;;  %s6981_s5 = inlined_call_operand.hbm [shape: bf16[300,300], index: 5, kind: input, shape index: {}]   ;;  %s6982_s6 = inlined_call_operand.vmem [shape: bf16[1,300], index: 6, kind: input, shape index: {}]   ;;  %s6983_s7 = inlined_call_operand.vmem [shape: bf16[300,128], index: 7, kind: input, shape index: {}]   ;;  %s6984_s8 = inlined_call_operand.vmem [shape: f32[1,128], index: 8, kind: input, shape index: {}]   ;;  %s6985_s9 = inlined_call_operand.vmem [shape: f32[8,128], index: 9, kind: output, shape index: {}]  }
   0x1   :  { %15 = vsyncpa [#allocation5], 0  ;;  %s5337_s30 = smov [#allocation2]   ;;  %s5289_s13 = scalar_lea.hbm %s6979_s3, 7296 }
   0x2   :  { %s27_s10 = sshll.u32 %s5337_s30, 4  ;;  %p5290_p0 = scmp.ne.s32.totalorder %s6979_s3, %s5289_s13  ;;  %s28_s10 = int_to_ptr.vmem [resolvable:$true] %s27_s10 }
   0x3   :  { %p5293_p1 = scmp.lt.u32.totalorder %s5289_s13, %s6979_s3 }
   0x5   :  { %p5295_p2 = pnand %p5293_p1, %p5290_p0 }
   0x7   :  { %5298 = shalt.err (!%p5295_p2)
}
   0x8   :  { %s5299_s18 = scalar_lea.vmem %s28_s10, 7296  ;;  %p5304_p4 = scmp.lt.s32.totalorder %s28_s10, %s28_s10 }
   0x9   :  { %p5300_p3 = scmp.ne.s32.totalorder %s28_s10, %s5299_s18  ;;  %p5305_p5 = scmp.lt.s32.totalorder %s5299_s18, %s5299_s18 }
   0xb   :  { %p5306_p6 = por %p5305_p5, %p5304_p4 }
   0xd   :  { %p5307_p7 = pnand %p5306_p6, %p5300_p3 }
   0xf   :  { %5310 = shalt.err (!%p5307_p7)
}
  0x10   :  { %s5338_s19 = smov 192   ;;  %s5339_s20 = smov 12  }
  0x11   :  { %33 = dma.hbm_to_vmem [thread:$0]  %s6979_s3, 7296, %s28_s10, [#allocation3], %s5338_s19, %s5338_s19, %s5339_s20  }
  0x12   :  { %s5340_s23 = smov [#allocation4]   ;;  %s5311_s27 = scalar_lea.hbm %s6981_s5, 7296 }
  0x13   :  { %s41_s24 = sshll.u32 %s5340_s23, 4  ;;  %p5312_p8 = scmp.ne.s32.totalorder %s6981_s5, %s5311_s27  ;;  %s42_s24 = int_to_ptr.vmem [resolvable:$true] %s41_s24 }
  0x14   :  { %p5315_p9 = scmp.lt.u32.totalorder %s5311_s27, %s6981_s5 }
  0x16   :  { %p5317_p10 = pnand %p5315_p9, %p5312_p8 }
  0x18   :  { %5320 = shalt.err (!%p5317_p10)
}
  0x19   :  { %s5321_s12 = scalar_lea.vmem %s42_s24, 7296  ;;  %p5326_p12 = scmp.lt.s32.totalorder %s42_s24, %s42_s24 }
  0x1a   :  { %p5322_p11 = scmp.ne.s32.totalorder %s42_s24, %s5321_s12  ;;  %p5327_p13 = scmp.lt.s32.totalorder %s5321_s12, %s5321_s12 }
  0x1c   :  { %p5328_p0 = por %p5327_p13, %p5326_p12 }
  0x1e   :  { %p5329_p1 = pnand %p5328_p0, %p5322_p11 }
  0x20   :  { %5332 = shalt.err (!%p5329_p1)
}
  0x21   :  { %47 = dma.hbm_to_vmem [thread:$0]  %s6981_s5, 7296, %s42_s24, [#allocation5], %s5338_s19, %s5338_s19, %s5339_s20  }
  0x22   :  { %5333 = dma.done.wait [#allocation3], 7296  }
  0x23   :  { %5334 = vsyncadd [#allocation3], 4294960000 }
  0x24   :  { %5335 = dma.done.wait [#allocation5], 7296  }
  0x25   :  { %5336 = vsyncadd [#allocation5], 4294960000  ;;  %v6986_v0 = vmov 0.0   ;;  %vm5342_vm0 = vmmov 0   ;;  %v6988_v1 = vmov 0   ;;  %vm82_vm1 = vcmask 130048  }
  0x26   :  { %4758 = vmatprep.subr.bf16.mxu1 %v6986_v0  ;;  %4760 = vmatprep.mubr.msk.bf16.mxu1 %vm5342_vm0, %v6986_v0  ;;  %v5004_v2 = vld [vmem:[%s6977_s1 + $0x4] ss:$12 sps:$4 sm:$0xff]   ;;  %v5006_v3 = vld [vmem:[%s6977_s1 + $0x8] ss:$12 sps:$4 sm:$0xff]   ;;  %v5007_v4 = vld [vmem:[%s6977_s1] ss:$12 sps:$4 sm:$0xff]   ;;  %v183_v49 = vlaneseq }
  0x27   :  { %118 = vmatprep.mubr.bf16.mxu0 %v6988_v1  ;;  %86 = vmatprep.subr.bf16.mxu0 %v5004_v2  ;;  %v61_v5 = vld [vmem:[%s6976_s0] sm:$0xf]  ;;  %v5010_v6 = vld [vmem:[#allocation2 + $0x4] ss:$12 sps:$4 sm:$0xff]   ;;  %v5013_v8 = vld [vmem:[#allocation2 + $0x1c] ss:$12 sps:$4 sm:$0xff]  }
  0x28   :  { %4759 = vmatpush3.bf16.msra.mxu1 %v5006_v3  ;;  %87 = vmatpush1.bf16.msra.mxu0 %v5007_v4  ;;  %v5008_v7 = vld [vmem:[#allocation2] ss:$12 sps:$4 sm:$0xff]   ;;  %v5011_v9 = vld [vmem:[#allocation2 + $0x18] ss:$12 sps:$4 sm:$0xff]   ;;  %v5014_v11 = vld [vmem:[#allocation2 + $0x30] ss:$12 sps:$4 sm:$0xff]  }
  0x29   :  { %613 = vmatprep.subr.bf16.mxu0 %v5010_v6  ;;  %v5016_v10 = vld [vmem:[#allocation2 + $0x34] ss:$12 sps:$4 sm:$0xff]   ;;  %v5019_v12 = vld [vmem:[#allocation2 + $0x4c] ss:$12 sps:$4 sm:$0xff]   ;;  %v5022_v14 = vld [vmem:[#allocation2 + $0x64] ss:$12 sps:$4 sm:$0xff]  }
  0x2a   :  { %v5017_v13 = vld [vmem:[#allocation2 + $0x48] ss:$12 sps:$4 sm:$0xff]   ;;  %v5020_v15 = vld [vmem:[#allocation2 + $0x60] ss:$12 sps:$4 sm:$0xff]   ;;  %v5049_v18 = vld [vmem:[#allocation2 + $0x184] ss:$12 sps:$4 sm:$0xff]  }
  0x2b   :  { %4761 = vmatmul.mubr.msk.bf16.vlgmr.msra.gmra.mrb[0].mxu1 %vm82_vm1, %v61_v5  ;;  %4126 = vmatmul.mubr.msk.bf16.vlgmr.msra.gmra.mrb[0].mxu0 %vm82_vm1, %v61_v5  ;;  %v5025_v16 = vld [vmem:[#allocation2 + $0x7c] ss:$12 sps:$4 sm:$0xff]   ;;  %v5047_v17 = vld [vmem:[#allocation2 + $0x180] ss:$12 sps:$4 sm:$0xff]   ;;  %v5023_v19 = vld [vmem:[#allocation2 + $0x78] ss:$12 sps:$4 sm:$0xff]  }
  0x2c   :  { %686 = vmatprep.mubr.bf16.mxu1 %v6988_v1  ;;  %614 = vmatpush1.bf16.msra.mxu0 %v5008_v7  ;;  %v5028_v20 = vld [vmem:[#allocation2 + $0x94] ss:$12 sps:$4 sm:$0xff]   ;;  %v5053_v21 = vld [vmem:[#allocation2 + $0x198] ss:$12 sps:$4 sm:$0xff]   ;;  %v5055_v22 = vld [vmem:[#allocation2 + $0x19c] ss:$12 sps:$4 sm:$0xff]  }
  0x2d   :  { %615 = vmatprep.subr.bf16.mxu0 %v5013_v8  ;;  %654 = vmatprep.subr.bf16.mxu1 %v5049_v18  ;;  %v5026_v23 = vld [vmem:[#allocation2 + $0x90] ss:$12 sps:$4 sm:$0xff]   ;;  %v5031_v24 = vld [vmem:[#allocation2 + $0xac] ss:$12 sps:$4 sm:$0xff]   ;;  %v5029_v25 = vld [vmem:[#allocation2 + $0xa8] ss:$12 sps:$4 sm:$0xff]  }
  0x2e   :  { %655 = vmatpush1.bf16.msra.mxu1 %v5047_v17  ;;  %v5034_v26 = vld [vmem:[#allocation2 + $0xc4] ss:$12 sps:$4 sm:$0xff]   ;;  %v5032_v27 = vld [vmem:[#allocation2 + $0xc0] ss:$12 sps:$4 sm:$0xff]   ;;  %v5037_v28 = vld [vmem:[#allocation2 + $0xdc] ss:$12 sps:$4 sm:$0xff]  }
  0x2f   :  { %656 = vmatprep.subr.bf16.mxu1 %v5055_v22  ;;  %v5035_v29 = vld [vmem:[#allocation2 + $0xd8] ss:$12 sps:$4 sm:$0xff]   ;;  %v5040_v30 = vld [vmem:[#allocation2 + $0xf4] ss:$12 sps:$4 sm:$0xff]   ;;  %v5038_v31 = vld [vmem:[#allocation2 + $0xf0] ss:$12 sps:$4 sm:$0xff]  }
  0x30   :  { %616 = vmatpush1.bf16.msra.mxu0 %v5011_v9  ;;  %v5043_v32 = vld [vmem:[#allocation2 + $0x10c] ss:$12 sps:$4 sm:$0xff]   ;;  %v5041_v33 = vld [vmem:[#allocation2 + $0x108] ss:$12 sps:$4 sm:$0xff]   ;;  %v5046_v34 = vld [vmem:[#allocation2 + $0x124] ss:$12 sps:$4 sm:$0xff]  }
  0x31   :  { %617 = vmatprep.subr.bf16.mxu0 %v5016_v10  ;;  %v5044_v35 = vld [vmem:[#allocation2 + $0x120] ss:$12 sps:$4 sm:$0xff]   ;;  %v5052_v36 = vld [vmem:[#allocation2 + $0x13c] ss:$12 sps:$4 sm:$0xff]   ;;  %v5050_v37 = vld [vmem:[#allocation2 + $0x138] ss:$12 sps:$4 sm:$0xff]  }
  0x32   :  { %657 = vmatpush1.bf16.msra.mxu1 %v5053_v21  ;;  %v5058_v38 = vld [vmem:[#allocation2 + $0x154] ss:$12 sps:$4 sm:$0xff]   ;;  %v5056_v40 = vld [vmem:[#allocation2 + $0x150] ss:$12 sps:$4 sm:$0xff]   ;;  %vm603_vm2 = vcmask 1045504   ;;  %v184_v51 = vshrl.u32 %v183_v49, 7 }
  0x33   :  { %v5059_v39 = vld [vmem:[#allocation2 + $0x1b4] ss:$12 sps:$4 sm:$0x3f]   ;;  %v5061_v41 = vld [vmem:[#allocation2 + $0x1b0] ss:$12 sps:$4 sm:$0x3f]  }
  0x34   :  { %618 = vmatpush1.bf16.msra.mxu0 %v5014_v11  ;;  %4186 = vmatprep.subr.msk.bf16.mxu1 %vm603_vm2, %v5059_v39  ;;  %v605_v42 = vsel %vm603_vm2, %v5061_v41, 0  ;;  %v5064_v43 = vld [vmem:[#allocation2 + $0x16c] ss:$12 sps:$4 sm:$0xff]   ;;  %v5065_v44 = vld [vmem:[#allocation2 + $0xc8] ss:$12 sps:$4 sm:$0xff]   ;;  %v5448_v58 = vsub.s32 0, %v184_v51 }
  0x35   :  { %619 = vmatprep.subr.bf16.mxu0 %v5019_v12  ;;  %v5062_v45 = vld [vmem:[#allocation2 + $0x168] ss:$12 sps:$4 sm:$0xff]   ;;  %v5438_v46 = vld [vmem:[#allocation4 + $0xc8] ss:$12 sps:$4 sm:$0xff]   ;;  %v5344_v47 = vmov 1966171168  }
  0x36   :  { %659 = vmatpush1.bf16.msra.mxu1 %v605_v42  ;;  %v181_v48 = vunpack.c.l.s4 %v5344_v47  ;;  %v4128_v53 = vld.sshfl [vmem:[%s6978_s2] sm:$0x13 pattern:$0x75316420]  ;;  %vm599_vm3 = vcmask 359424  }
  0x37   :  { %4316 = vmatprep.subr.bf16.mxu1 %v5065_v44  ;;  %v179_v55 = vcombine.high %v4128_v53, %v4128_v53  ;;  %v5460_v22 = vld [vmem:[#allocation4 + $0x8] ss:$12 sps:$4 sm:$0xff]   ;;  %v5076_v39 = vld [vmem:[#allocation2 + $0x80] ss:$12 sps:$4 sm:$0xff]   ;;  %v5078_v41 = vld [vmem:[#allocation2 + $0x98] ss:$12 sps:$4 sm:$0xff]  }
  0x38   :  { %620 = vmatpush1.bf16.msra.mxu0 %v5017_v13  ;;  %v182_v50 = vunpack.c.0.s8 %v181_v48  ;;  %v5079_v42 = vld [vmem:[#allocation2 + $0x170] ss:$12 sps:$4 sm:$0xff]   ;;  %v5081_v44 = vld [vmem:[#allocation2 + $0x188] ss:$12 sps:$4 sm:$0xff]   ;;  %v5493_v49 = vld [vmem:[#allocation4 + $0x4] ss:$12 sps:$4 sm:$0xff]  }
  0x39   :  { %621 = vmatprep.subr.bf16.mxu0 %v5022_v14  ;;  %v5083_v47 = vld [vmem:[#allocation2 + $0x1b8] ss:$12 sps:$4 sm:$0x3f]   ;;  %7097 = vst [vmem:[#allocation9_spill] sm:$0xff] %v5493_v49 }
  0x3a   :  { %v5441_v52 = vsub.s32 %v182_v50, %v184_v51  ;;  %v611_v48 = vsel %vm603_vm2, %v5083_v47, 0  ;;  %v5495_v50 = vld [vmem:[#allocation4] ss:$12 sps:$4 sm:$0xff]   ;;  %v5498_v51 = vld [vmem:[#allocation4 + $0x1c] ss:$12 sps:$4 sm:$0xff]  }
  0x3c   :  { %622 = vmatpush1.bf16.msra.mxu0 %v5020_v15  ;;  %7096 = vst [vmem:[#allocation8_spill] sm:$0xff] %v5441_v52  ;;  %v186_v54 = vrot.slane %v4128_v53, %v5441_v52  ;;  %v193_v57 = vrot.slane %v179_v55, %v5441_v52  ;;  %v5066_v15 = vld [vmem:[#allocation2 + $0x8] ss:$12 sps:$4 sm:$0xff]   ;;  %v5503_v53 = vld [vmem:[#allocation4 + $0x18] ss:$12 sps:$4 sm:$0xff]  }
  0x3d   :  { %623 = vmatprep.subr.bf16.mxu0 %v5025_v16  ;;  %v5509_v55 = vld [vmem:[#allocation4 + $0x30] ss:$12 sps:$4 sm:$0xff]  }
  0x3e   :  { %v194_v56 = vcombine.high %v186_v54, %v186_v54  ;;  %v196_v60 = vpack.i.b16 %v186_v54, %v186_v54  ;;  %v203_v61 = vpack.i.b16 %v193_v57, %v193_v57  ;;  %v5506_v54 = vld [vmem:[#allocation4 + $0x34] ss:$12 sps:$4 sm:$0xff]  }
  0x3f   :  { %v5515_v57 = vld [vmem:[#allocation4 + $0x48] ss:$12 sps:$4 sm:$0xff]  }
  0x40   :  { %624 = vmatpush1.bf16.msra.mxu0 %v5023_v19  ;;  %v210_v59 = vpack.i.b16 %v194_v56, %v194_v56  ;;  %v201_v2 = vrot.slane %v196_v60, %v5448_v58  ;;  %v208_v6 = vrot.slane %v203_v61, %v5448_v58  ;;  %v5067_v19 = vld [vmem:[#allocation2 + $0xe0] ss:$12 sps:$4 sm:$0xff]   ;;  %v5521_v60 = vld [vmem:[#allocation4 + $0x60] ss:$12 sps:$4 sm:$0xff]   ;;  %v5524_v61 = vld [vmem:[#allocation4 + $0x7c] ss:$12 sps:$4 sm:$0xff]  }
  0x41   :  { %625 = vmatprep.subr.bf16.mxu0 %v5028_v20  ;;  %v5512_v56 = vld [vmem:[#allocation4 + $0x4c] ss:$12 sps:$4 sm:$0xff]  }
  0x42   :  { %v215_v62 = vrot.slane %v210_v59, %v5448_v58  ;;  %v5518_v59 = vld [vmem:[#allocation4 + $0x64] ss:$12 sps:$4 sm:$0xff]  }
  0x44   :  { %626 = vmatpush1.bf16.msra.mxu0 %v5026_v23  ;;  %v5068_v23 = vld [vmem:[#allocation2 + $0x20] ss:$12 sps:$4 sm:$0xff]  }
  0x45   :  { %627 = vmatprep.subr.bf16.mxu0 %v5031_v24  ;;  %v5462_v24 = vld [vmem:[#allocation4 + $0xe0] ss:$12 sps:$4 sm:$0xff]  }
  0x48   :  { %628 = vmatpush1.bf16.msra.mxu0 %v5029_v25  ;;  %v5069_v25 = vld [vmem:[#allocation2 + $0xf8] ss:$12 sps:$4 sm:$0xff]  }
  0x49   :  { %629 = vmatprep.subr.bf16.mxu0 %v5034_v26  ;;  %v5465_v26 = vld [vmem:[#allocation4 + $0x20] ss:$12 sps:$4 sm:$0xff]  }
  0x4c   :  { %630 = vmatpush1.bf16.msra.mxu0 %v5032_v27  ;;  %v5070_v27 = vld [vmem:[#allocation2 + $0x38] ss:$12 sps:$4 sm:$0xff]  }
  0x4d   :  { %631 = vmatprep.subr.bf16.mxu0 %v5037_v28  ;;  %v5468_v28 = vld [vmem:[#allocation4 + $0xf8] ss:$12 sps:$4 sm:$0xff]  }
  0x50   :  { %632 = vmatpush1.bf16.msra.mxu0 %v5035_v29  ;;  %v5071_v29 = vld [vmem:[#allocation2 + $0x110] ss:$12 sps:$4 sm:$0xff]  }
  0x51   :  { %633 = vmatprep.subr.bf16.mxu0 %v5040_v30  ;;  %v5471_v30 = vld [vmem:[#allocation4 + $0x38] ss:$12 sps:$4 sm:$0xff]  }
  0x54   :  { %634 = vmatpush1.bf16.msra.mxu0 %v5038_v31  ;;  %v5072_v31 = vld [vmem:[#allocation2 + $0x50] ss:$12 sps:$4 sm:$0xff]  }
  0x55   :  { %635 = vmatprep.subr.bf16.mxu0 %v5043_v32  ;;  %v5474_v32 = vld [vmem:[#allocation4 + $0x110] ss:$12 sps:$4 sm:$0xff]  }
  0x58   :  { %636 = vmatpush1.bf16.msra.mxu0 %v5041_v33  ;;  %v5073_v33 = vld [vmem:[#allocation2 + $0x128] ss:$12 sps:$4 sm:$0xff]  }
  0x59   :  { %637 = vmatprep.subr.bf16.mxu0 %v5046_v34  ;;  %v5477_v34 = vld [vmem:[#allocation4 + $0x50] ss:$12 sps:$4 sm:$0xff]  }
  0x5c   :  { %638 = vmatpush1.bf16.msra.mxu0 %v5044_v35  ;;  %v5074_v35 = vld [vmem:[#allocation2 + $0x68] ss:$12 sps:$4 sm:$0xff]  }
  0x5d   :  { %639 = vmatprep.subr.bf16.mxu0 %v5052_v36  ;;  %v5480_v36 = vld [vmem:[#allocation4 + $0x128] ss:$12 sps:$4 sm:$0xff]  }
  0x60   :  { %640 = vmatpush1.bf16.msra.mxu0 %v5050_v37  ;;  %v5075_v37 = vld [vmem:[#allocation2 + $0x140] ss:$12 sps:$4 sm:$0xff]  }
  0x61   :  { %641 = vmatprep.subr.bf16.mxu0 %v5058_v38  ;;  %v5483_v38 = vld [vmem:[#allocation4 + $0x68] ss:$12 sps:$4 sm:$0xff]  }
  0x64   :  { %642 = vmatpush1.bf16.msra.mxu0 %v5056_v40  ;;  %v5077_v40 = vld [vmem:[#allocation2 + $0x158] ss:$12 sps:$4 sm:$0xff]  }
  0x65   :  { %643 = vmatprep.subr.bf16.mxu0 %v5064_v43  ;;  %v5080_v43 = vld [vmem:[#allocation2 + $0xb0] ss:$12 sps:$4 sm:$0xff]  }
  0x68   :  { %644 = vmatpush1.bf16.msra.mxu0 %v5062_v45  ;;  %v5082_v45 = vld [vmem:[#allocation2 + $0x1a0] ss:$12 sps:$4 sm:$0xff]  }
  0x69   :  { %4342 = vmatprep.subr.bf16.mxu0 %v5438_v46 }
  0xfe   :  { %v161_v63 = vpop.f32.mrb[0].mxu1  ;;  %v120_v4 = vpop.f32.mrb[0].mxu0 }
  0xff   :  { %v169_v3 = vpack.c.bf16 %v161_v63, %v161_v63  ;;  %v4762_v5 = vpop.f32.mrb[1].mxu1  ;;  %v167_v7 = vpack.c.bf16 %v120_v4, %v120_v4  ;;  %v122_v8 = vpop.f32.mrb[1].mxu0  ;;  %v5530_v63 = vld [vmem:[#allocation4 + $0x94] ss:$12 sps:$4 sm:$0xff]  }
 0x100   :  { %v164_v9 = vpop.f32.mrb[2].mxu1  ;;  %v168_v11 = vpack.c.bf16 %v122_v8, %v122_v8  ;;  %v124_v13 = vpop.f32.mrb[2].mxu0  ;;  %v5539_v4 = vld [vmem:[#allocation4 + $0xa8] ss:$12 sps:$4 sm:$0xff]   ;;  %v5542_v5 = vld [vmem:[#allocation4 + $0xc4] ss:$12 sps:$4 sm:$0xff]  }
 0x101   :  { %v218_v10 = vadd.bf16 %v215_v62, %v169_v3  ;;  %v4763_v12 = vpop.f32.mrb[3].mxu1  ;;  %v216_v14 = vadd.bf16 %v201_v2, %v167_v7  ;;  %v125_v16 = vpop.f32.mrb[3].mxu0  ;;  %v5527_v62 = vld [vmem:[#allocation4 + $0x78] ss:$12 sps:$4 sm:$0xff]   ;;  %v5533_v2 = vld [vmem:[#allocation4 + $0x90] ss:$12 sps:$4 sm:$0xff]  }
 0x102   :  { %v217_v18 = vadd.bf16 %v208_v6, %v168_v11  ;;  %v5536_v3 = vld [vmem:[#allocation4 + $0xac] ss:$12 sps:$4 sm:$0xff]   ;;  %7098 = vst [vmem:[#allocation10_spill] sm:$0xff] %v5542_v5  ;;  %v5548_v7 = vld [vmem:[#allocation4 + $0xdc] ss:$12 sps:$4 sm:$0xff]  }
 0x103   :  { %v5454_v17 = vmax.bf16 %v6988_v1, %v218_v10  ;;  %v219_v20 = vmax.bf16 %v6988_v1, %v216_v14  ;;  %v5545_v6 = vld [vmem:[#allocation4 + $0xc0] ss:$12 sps:$4 sm:$0xff]   ;;  %7100 = vst [vmem:[#allocation12_spill] sm:$0xff] %v5548_v7  ;;  %v5551_v8 = vld [vmem:[#allocation4 + $0xd8] ss:$12 sps:$4 sm:$0xff]  }
 0x104   :  { %v220_v21 = vmax.bf16 %v6988_v1, %v217_v18  ;;  %7099 = vst [vmem:[#allocation11_spill] sm:$0xff] %v5545_v6  ;;  %7101 = vst [vmem:[#allocation13_spill] sm:$0xff] %v5551_v8  ;;  %v5554_v9 = vld [vmem:[#allocation4 + $0xf4] ss:$12 sps:$4 sm:$0xff]   ;;  %v5557_v10 = vld [vmem:[#allocation4 + $0xf0] ss:$12 sps:$4 sm:$0xff]  }
 0x105   :  { %4187 = vmatmul.mubr.msk.bf16.vlgmr.msra.gmra.mrb[4].mxu1 %vm599_vm3, %v5454_v17  ;;  %7102 = vst [vmem:[#allocation14_spill] sm:$0xff] %v5554_v9  ;;  %7103 = vst [vmem:[#allocation15_spill] sm:$0xff] %v5557_v10  ;;  %v5560_v11 = vld [vmem:[#allocation4 + $0x10c] ss:$12 sps:$4 sm:$0xff]   ;;  %v5565_v13 = vld [vmem:[#allocation4 + $0x108] ss:$12 sps:$4 sm:$0xff]  }
 0x106   :  { %4317 = vmatpush3.bf16.msra.mxu1 %v5066_v15  ;;  %645 = vmatprep.mubr.bf16.mxu0 %v220_v21  ;;  %7104 = vst [vmem:[#allocation16_spill] sm:$0xff] %v5560_v11  ;;  %v5562_v12 = vld [vmem:[#allocation4 + $0x140] ss:$12 sps:$4 sm:$0xff]   ;;  %7105 = vst [vmem:[#allocation17_spill] sm:$0xff] %v5565_v13  ;;  %v5568_v14 = vld [vmem:[#allocation4 + $0x124] ss:$12 sps:$4 sm:$0xff]  }
 0x107   :  { %4318 = vmatprep.subr.bf16.mxu1 %v5067_v19  ;;  %646 = vmatmul.mubr.bf16.vlgmr.msra.gmra.mrb[4].mxu0 %v219_v20  ;;  %7106 = vst [vmem:[#allocation18_spill] sm:$0xff] %v5568_v14  ;;  %v5571_v15 = vld [vmem:[#allocation4 + $0x80] ss:$12 sps:$4 sm:$0xff]   ;;  %v5574_v16 = vld [vmem:[#allocation4 + $0x158] ss:$12 sps:$4 sm:$0xff]  }
 0x108   :  { %727 = vmatprep.mubr.bf16.mxu1 %v220_v21  ;;  %4343 = vmatpush3.bf16.msra.mxu0 %v5460_v22  ;;  %v5579_v18 = vld [vmem:[#allocation4 + $0x98] ss:$12 sps:$4 sm:$0xff]   ;;  %v5582_v19 = vld [vmem:[#allocation4 + $0x13c] ss:$12 sps:$4 sm:$0xff]  }
 0x109   :  { %4344 = vmatprep.subr.bf16.mxu0 %v5462_v24  ;;  %7108 = vst [vmem:[#allocation20_spill] sm:$0xff] %v5582_v19  ;;  %v5589_v21 = vld [vmem:[#allocation4 + $0x138] ss:$12 sps:$4 sm:$0xff]  }
 0x10a   :  { %4319 = vmatpush3.bf16.msra.mxu1 %v5068_v23  ;;  %7109 = vst [vmem:[#allocation21_spill] sm:$0xff] %v5589_v21  ;;  %v5591_v23 = vld [vmem:[#allocation4 + $0xb0] ss:$12 sps:$4 sm:$0xff]  }
 0x10b   :  { %4320 = vmatprep.subr.bf16.mxu1 %v5069_v25  ;;  %v5594_v25 = vld [vmem:[#allocation4 + $0x154] ss:$12 sps:$4 sm:$0xff]  }
 0x10c   :  { %4345 = vmatpush3.bf16.msra.mxu0 %v5465_v26  ;;  %7110 = vst [vmem:[#allocation22_spill] sm:$0xff] %v5594_v25 }
 0x10d   :  { %4346 = vmatprep.subr.bf16.mxu0 %v5468_v28 }
 0x10e   :  { %4321 = vmatpush3.bf16.msra.mxu1 %v5070_v27  ;;  %v5599_v27 = vld [vmem:[#allocation4 + $0x150] ss:$12 sps:$4 sm:$0xff]  }
 0x10f   :  { %4322 = vmatprep.subr.bf16.mxu1 %v5071_v29  ;;  %7111 = vst [vmem:[#allocation23_spill] sm:$0xff] %v5599_v27  ;;  %v5603_v29 = vld [vmem:[#allocation4 + $0x16c] ss:$12 sps:$4 sm:$0xff]  }
 0x110   :  { %4347 = vmatpush3.bf16.msra.mxu0 %v5471_v30  ;;  %7112 = vst [vmem:[#allocation24_spill] sm:$0xff] %v5603_v29 }
 0x111   :  { %4348 = vmatprep.subr.bf16.mxu0 %v5474_v32 }
 0x112   :  { %4323 = vmatpush3.bf16.msra.mxu1 %v5072_v31  ;;  %v5606_v31 = vld [vmem:[#allocation4 + $0x168] ss:$12 sps:$4 sm:$0xff]  }
 0x113   :  { %4324 = vmatprep.subr.bf16.mxu1 %v5073_v33  ;;  %7113 = vst [vmem:[#allocation25_spill] sm:$0xff] %v5606_v31  ;;  %v5610_v33 = vld [vmem:[#allocation4 + $0x184] ss:$12 sps:$4 sm:$0xff]  }
 0x114   :  { %4349 = vmatpush3.bf16.msra.mxu0 %v5477_v34  ;;  %7114 = vst [vmem:[#allocation26_spill] sm:$0xff] %v5610_v33 }
 0x115   :  { %4350 = vmatprep.subr.bf16.mxu0 %v5480_v36 }
 0x116   :  { %4325 = vmatpush3.bf16.msra.mxu1 %v5074_v35  ;;  %v4189_v35 = vld.sshfl [vmem:[%s6980_s4] sm:$0x13 pattern:$0x75316420] }
 0x117   :  { %4326 = vmatprep.subr.bf16.mxu1 %v5075_v37  ;;  %v787_v37 = vcombine.high %v4189_v35, %v4189_v35 }
 0x118   :  { %4351 = vmatpush3.bf16.msra.mxu0 %v5483_v38 }
 0x119   :  { %4352 = vmatprep.subr.bf16.mxu0 %v5562_v12 }
 0x11a   :  { %4327 = vmatpush3.bf16.msra.mxu1 %v5076_v39  ;;  %v794_v39 = vrot.slane %v4189_v35, %v5441_v52 }
 0x11b   :  { %4328 = vmatprep.subr.bf16.mxu1 %v5077_v40  ;;  %v801_v40 = vrot.slane %v787_v37, %v5441_v52  ;;  %v7115_v52 = vmov 0  }
 0x11c   :  { %4353 = vmatpush3.bf16.msra.mxu0 %v5571_v15 }
 0x11d   :  { %4354 = vmatprep.subr.bf16.mxu0 %v5574_v16 }
 0x11e   :  { %4329 = vmatpush3.bf16.msra.mxu1 %v5078_v41 }
 0x11f   :  { %4330 = vmatprep.subr.bf16.mxu1 %v5079_v42  ;;  %v804_v42 = vpack.i.b16 %v794_v39, %v794_v39 }
 0x120   :  { %4355 = vmatpush3.bf16.msra.mxu0 %v5579_v18 }
 0x121   :  { %v809_v1 = vrot.slane %v804_v42, %v5448_v58 }
 0x122   :  { %4331 = vmatpush3.bf16.msra.mxu1 %v5080_v43 }
 0x123   :  { %4764 = vmatprep.subr.bf16.mxu1 %v6986_v0 }
 0x125   :  { %728 = vmatmul.mubr.bf16.vlgmr.msra.gmra.mrb[8].mxu1 %v219_v20  ;;  %v5586_v20 = vld [vmem:[#allocation4 + $0x170] ss:$12 sps:$4 sm:$0xff]  }
 0x126   :  { %4765 = vmatpush3.bf16.msra.mxu1 %v5081_v44  ;;  %4770 = vmatprep.mubr.msk.bf16.mxu1 %vm5342_vm0, %v6986_v0  ;;  %v811_v44 = vpack.i.b16 %v801_v40, %v801_v40  ;;  %v5623_v40 = vld [vmem:[#allocation4 + $0x188] ss:$12 sps:$4 sm:$0xff]  }
 0x127   :  { %4766 = vmatprep.subr.bf16.mxu1 %v6986_v0  ;;  %4356 = vmatprep.subr.bf16.mxu0 %v5586_v20 }
 0x128   :  { %4357 = vmatpush3.bf16.msra.mxu0 %v5591_v23 }
 0x129   :  { %4774 = vmatprep.subr.bf16.mxu0 %v6986_v0 }
 0x12a   :  { %4767 = vmatpush3.bf16.msra.mxu1 %v5082_v45 }
 0x12b   :  { %4768 = vmatprep.subr.bf16.mxu1 %v6986_v0 }
 0x12e   :  { %4769 = vmatpush3.bf16.msra.mxu1 %v611_v48 }
 0x12f   :  { %1265 = vmatprep.subr.bf16.mxu1 %v5493_v49 }
 0x131   :  { %4771 = vmatmul.mubr.msk.bf16.vlgmr.msra.gmra.mrb[12].mxu1 %vm599_vm3, %v5454_v17  ;;  %v5577_v17 = vld [vmem:[#allocation4 + $0x120] ss:$12 sps:$4 sm:$0xff]  }
 0x132   :  { %1266 = vmatpush1.bf16.msra.mxu1 %v5495_v50  ;;  %7107 = vst [vmem:[#allocation19_spill] sm:$0xff] %v5577_v17 }
 0x133   :  { %1267 = vmatprep.subr.bf16.mxu1 %v5498_v51 }
 0x136   :  { %1268 = vmatpush1.bf16.msra.mxu1 %v5503_v53 }
 0x137   :  { %1269 = vmatprep.subr.bf16.mxu1 %v5506_v54 }
 0x13a   :  { %1270 = vmatpush1.bf16.msra.mxu1 %v5509_v55 }
 0x13b   :  { %1271 = vmatprep.subr.bf16.mxu1 %v5512_v56 }
 0x13e   :  { %1272 = vmatpush1.bf16.msra.mxu1 %v5515_v57 }
 0x13f   :  { %1273 = vmatprep.subr.bf16.mxu1 %v5518_v59 }
 0x142   :  { %1274 = vmatpush1.bf16.msra.mxu1 %v5521_v60 }
 0x143   :  { %1275 = vmatprep.subr.bf16.mxu1 %v5524_v61 }
 0x146   :  { %1276 = vmatpush1.bf16.msra.mxu1 %v5527_v62 }
 0x147   :  { %1277 = vmatprep.subr.bf16.mxu1 %v5530_v63 }
 0x14a   :  { %1278 = vmatpush1.bf16.msra.mxu1 %v5533_v2 }
 0x14b   :  { %1279 = vmatprep.subr.bf16.mxu1 %v5536_v3 }
 0x14e   :  { %1280 = vmatpush1.bf16.msra.mxu1 %v5539_v4 }
 0x14f   :  { %1281 = vmatprep.subr.bf16.mxu1 %v5542_v5 }
 0x152   :  { %1282 = vmatpush1.bf16.msra.mxu1 %v5545_v6 }
 0x153   :  { %1283 = vmatprep.subr.bf16.mxu1 %v5548_v7 }
 0x156   :  { %1284 = vmatpush1.bf16.msra.mxu1 %v5551_v8 }
 0x157   :  { %1285 = vmatprep.subr.bf16.mxu1 %v5554_v9 }
 0x15a   :  { %1286 = vmatpush1.bf16.msra.mxu1 %v5557_v10 }
 0x15b   :  { %1287 = vmatprep.subr.bf16.mxu1 %v5560_v11 }
 0x15e   :  { %1288 = vmatpush1.bf16.msra.mxu1 %v5565_v13 }
 0x15f   :  { %1289 = vmatprep.subr.bf16.mxu1 %v5568_v14  ;;  %v5621_v14 = vld [vmem:[#allocation4 + $0x180] ss:$12 sps:$4 sm:$0xff]  }
 0x162   :  { %1290 = vmatpush1.bf16.msra.mxu1 %v5577_v17 }
 0x163   :  { %1291 = vmatprep.subr.bf16.mxu1 %v5582_v19 }
 0x166   :  { %1292 = vmatpush1.bf16.msra.mxu1 %v5589_v21 }
 0x167   :  { %1293 = vmatprep.subr.bf16.mxu1 %v5594_v25 }
 0x16a   :  { %1294 = vmatpush1.bf16.msra.mxu1 %v5599_v27 }
 0x16b   :  { %1295 = vmatprep.subr.bf16.mxu1 %v5603_v29  ;;  %v816_v29 = vrot.slane %v811_v44, %v5448_v58 }
 0x16e   :  { %1296 = vmatpush1.bf16.msra.mxu1 %v5606_v31 }
 0x16f   :  { %1306 = vmatprep.subr.bf16.mxu1 %v5610_v33 }
 0x1d8   :  { %v688_v41 = vpop.f32.mrb[4].mxu1 }
 0x1d9   :  { %v690_v43 = vpop.f32.mrb[5].mxu1 }
 0x1da   :  { %v692_v45 = vpop.f32.mrb[6].mxu1  ;;  %v647_v47 = vpop.f32.mrb[4].mxu0 }
 0x1db   :  { %v693_v48 = vpop.f32.mrb[7].mxu1  ;;  %v689_v0 = vadd.f32 %v688_v41, %v647_v47  ;;  %v649_v33 = vpop.f32.mrb[5].mxu0  ;;  %v5626_v45 = vld [vmem:[#allocation4 + $0x19c] ss:$12 sps:$4 sm:$0xff]   ;;  %v802_v47 = vcombine.high %v794_v39, %v794_v39  ;;  %v7121_v39 = vld [vmem:[#allocation19_spill] sm:$0xff] }
 0x1dc   :  { %v691_v31 = vadd.f32 %v690_v43, %v649_v33  ;;  %v651_v27 = vpop.f32.mrb[6].mxu0 }
 0x1dd   :  { %v775_v25 = vpack.c.bf16 %v689_v0, %v689_v0  ;;  %v652_v21 = vpop.f32.mrb[7].mxu0  ;;  %v5628_v27 = vld [vmem:[#allocation4 + $0x198] ss:$12 sps:$4 sm:$0xff]   ;;  %v5632_v0 = vld [vmem:[#allocation4 + $0x1a0] ss:$12 sps:$4 sm:$0xff]   ;;  %v818_v48 = vpack.i.b16 %v802_v47, %v802_v47 }
 0x1de   :  { %v776_v35 = vpack.c.bf16 %v691_v31, %v691_v31  ;;  %v7117_v21 = vmov 0.0  }
 0x1df   :  { %v824_v19 = vadd.bf16 %v809_v1, %v775_v25  ;;  %v5634_v1 = vld [vmem:[#allocation4 + $0x1b4] ss:$12 sps:$4 sm:$0x3f]   ;;  %v5159_v25 = vld [vmem:[#allocation4 + $0x1b8] ss:$12 sps:$4 sm:$0x3f]  }
 0x1e0   :  { %v825_v37 = vadd.bf16 %v816_v29, %v776_v35  ;;  %7116 = vst [vmem:[#allocation27_spill] sm:$0xff] %v5634_v1  ;;  %v5650_v29 = vsel %vm603_vm2, %v5159_v25, 0 }
 0x1e1   :  { %v827_v41 = vmax.bf16 %v7115_v52, %v824_v19  ;;  %v5158_v19 = vld [vmem:[#allocation4 + $0x1b0] ss:$12 sps:$4 sm:$0x3f]   ;;  %7119 = vst [vmem:[#allocation29_spill] sm:$0xff] %v5650_v29 }
 0x1e2   :  { %v828_v17 = vmax.bf16 %v7115_v52, %v825_v37 }
 0x1e4   :  { %1297 = vmatprep.mubr.bf16.mxu1 %v828_v17  ;;  %1379 = vmatprep.mubr.bf16.mxu0 %v828_v17  ;;  %v5646_v17 = vsel %vm603_vm2, %v5158_v19, 0 }
 0x1e5   :  { %1298 = vmatmul.mubr.bf16.vlgmr.msra.gmra.mrb[16].mxu1 %v827_v41  ;;  %1380 = vmatmul.mubr.bf16.vlgmr.msra.gmra.mrb[8].mxu0 %v827_v41  ;;  %7118 = vst [vmem:[#allocation28_spill] sm:$0xff] %v5646_v17  ;;  %v823_v41 = vrot.slane %v818_v48, %v5448_v58 }
 0x1e6   :  { %1307 = vmatpush1.bf16.msra.mxu1 %v5621_v14  ;;  %4775 = vmatpush3.bf16.msra.mxu0 %v5623_v40 }
 0x1e7   :  { %1308 = vmatprep.subr.bf16.mxu1 %v5626_v45  ;;  %4776 = vmatprep.subr.bf16.mxu0 %v7117_v21 }
 0x1e8   :  { %1338 = vmatprep.mubr.bf16.mxu1 %v7115_v52  ;;  %4780 = vmatprep.mubr.msk.bf16.mxu0 %vm5342_vm0, %v7117_v21 }
 0x1ea   :  { %1309 = vmatpush1.bf16.msra.mxu1 %v5628_v27  ;;  %4777 = vmatpush3.bf16.msra.mxu0 %v5632_v0 }
 0x1eb   :  { %4248 = vmatprep.subr.msk.bf16.mxu1 %vm603_vm2, %v5634_v1  ;;  %4778 = vmatprep.subr.bf16.mxu0 %v7117_v21 }
 0x1ee   :  { %1311 = vmatpush1.bf16.msra.mxu1 %v5646_v17  ;;  %4779 = vmatpush3.bf16.msra.mxu0 %v5650_v29 }
 0x1ef   :  { %1439 = vmatprep.subr.bf16.mxu0 %v5493_v49  ;;  %4368 = vmatprep.subr.bf16.mxu1 %v5438_v46 }
 0x1f8   :  { %v4332_v31 = vpop.f32.mrb[8].mxu1 }
 0x1f9   :  { %v4333_v33 = vpop.f32.mrb[9].mxu1 }
 0x1fa   :  { %v4334_v42 = vadd.f32 %v4333_v33, %v4332_v31  ;;  %v4335_v43 = vpop.f32.mrb[10].mxu1  ;;  %v7125_v31 = vld [vmem:[#allocation23_spill] sm:$0xff]  ;;  %v7126_v33 = vld [vmem:[#allocation24_spill] sm:$0xff] }
 0x1fb   :  { %v4336_v44 = vpop.f32.mrb[11].mxu1  ;;  %v7128_v43 = vld [vmem:[#allocation26_spill] sm:$0xff] }
 0x204   :  { %v769_v35 = vpop.f32.mrb[12].mxu1 }
 0x205   :  { %v770_v37 = vadd.f32 %v4334_v42, %v769_v35  ;;  %v4772_v19 = vpop.f32.mrb[13].mxu1  ;;  %v7127_v42 = vld [vmem:[#allocation25_spill] sm:$0xff] }
 0x206   :  { %v772_v25 = vpop.f32.mrb[14].mxu1 }
 0x207   :  { %v777_v17 = vpack.c.bf16 %v770_v37, %v770_v37  ;;  %v4773_v1 = vpop.f32.mrb[15].mxu1  ;;  %v7129_v25 = vld [vmem:[#allocation8_spill] sm:$0xff] }
 0x208   :  { %v7122_v1 = vld [vmem:[#allocation20_spill] sm:$0xff] }
 0x209   :  { %v826_v29 = vadd.bf16 %v823_v41, %v777_v17  ;;  %v7123_v17 = vld [vmem:[#allocation21_spill] sm:$0xff]  ;;  %v4190_v41 = vld.sshfl [vmem:[%s6982_s6] sm:$0x13 pattern:$0x75316420] }
 0x20a   :  { %v915_v19 = vcombine.high %v4190_v41, %v4190_v41 }
 0x20b   :  { %v829_v49 = vmax.bf16 %v7115_v52, %v826_v29  ;;  %v7124_v29 = vld [vmem:[#allocation22_spill] sm:$0xff] }
 0x20d   :  { %4249 = vmatmul.mubr.msk.bf16.vlgmr.msra.gmra.mrb[16].mxu1 %vm599_vm3, %v829_v49  ;;  %4781 = vmatmul.mubr.msk.bf16.vlgmr.msra.gmra.mrb[12].mxu0 %vm599_vm3, %v829_v49  ;;  %v7120_v49 = vld [vmem:[#allocation18_spill] sm:$0xff] }
 0x20e   :  { %1440 = vmatpush1.bf16.msra.mxu0 %v5495_v50  ;;  %4369 = vmatpush3.bf16.msra.mxu1 %v5460_v22 }
 0x20f   :  { %1441 = vmatprep.subr.bf16.mxu0 %v5498_v51  ;;  %4370 = vmatprep.subr.bf16.mxu1 %v5462_v24 }
 0x212   :  { %1442 = vmatpush1.bf16.msra.mxu0 %v5503_v53  ;;  %4371 = vmatpush3.bf16.msra.mxu1 %v5465_v26 }
 0x213   :  { %1443 = vmatprep.subr.bf16.mxu0 %v5506_v54  ;;  %4372 = vmatprep.subr.bf16.mxu1 %v5468_v28 }
 0x216   :  { %1444 = vmatpush1.bf16.msra.mxu0 %v5509_v55  ;;  %4373 = vmatpush3.bf16.msra.mxu1 %v5471_v30 }
 0x217   :  { %1445 = vmatprep.subr.bf16.mxu0 %v5512_v56  ;;  %4374 = vmatprep.subr.bf16.mxu1 %v5474_v32 }
 0x21a   :  { %1446 = vmatpush1.bf16.msra.mxu0 %v5515_v57  ;;  %4375 = vmatpush3.bf16.msra.mxu1 %v5477_v34 }
 0x21b   :  { %1447 = vmatprep.subr.bf16.mxu0 %v5518_v59  ;;  %4376 = vmatprep.subr.bf16.mxu1 %v5480_v36 }
 0x21e   :  { %1448 = vmatpush1.bf16.msra.mxu0 %v5521_v60  ;;  %4377 = vmatpush3.bf16.msra.mxu1 %v5483_v38 }
 0x21f   :  { %1449 = vmatprep.subr.bf16.mxu0 %v5524_v61  ;;  %4378 = vmatprep.subr.bf16.mxu1 %v5562_v12 }
 0x222   :  { %1450 = vmatpush1.bf16.msra.mxu0 %v5527_v62  ;;  %4379 = vmatpush3.bf16.msra.mxu1 %v5571_v15 }
 0x223   :  { %1451 = vmatprep.subr.bf16.mxu0 %v5530_v63  ;;  %4380 = vmatprep.subr.bf16.mxu1 %v5574_v16 }
 0x226   :  { %1452 = vmatpush1.bf16.msra.mxu0 %v5533_v2  ;;  %4381 = vmatpush3.bf16.msra.mxu1 %v5579_v18 }
 0x227   :  { %1453 = vmatprep.subr.bf16.mxu0 %v5536_v3  ;;  %4382 = vmatprep.subr.bf16.mxu1 %v5586_v20 }
 0x22a   :  { %1454 = vmatpush1.bf16.msra.mxu0 %v5539_v4  ;;  %4383 = vmatpush3.bf16.msra.mxu1 %v5591_v23 }
 0x22b   :  { %1455 = vmatprep.subr.bf16.mxu0 %v5542_v5  ;;  %4784 = vmatprep.subr.bf16.mxu1 %v7117_v21 }
 0x22e   :  { %1456 = vmatpush1.bf16.msra.mxu0 %v5545_v6 }
 0x22f   :  { %1457 = vmatprep.subr.bf16.mxu0 %v5548_v7 }
 0x232   :  { %1458 = vmatpush1.bf16.msra.mxu0 %v5551_v8 }
 0x233   :  { %1459 = vmatprep.subr.bf16.mxu0 %v5554_v9 }
 0x236   :  { %1460 = vmatpush1.bf16.msra.mxu0 %v5557_v10 }
 0x237   :  { %1461 = vmatprep.subr.bf16.mxu0 %v5560_v11 }
 0x23a   :  { %1462 = vmatpush1.bf16.msra.mxu0 %v5565_v13 }
 0x23b   :  { %1463 = vmatprep.subr.bf16.mxu0 %v7120_v49 }
 0x23e   :  { %1464 = vmatpush1.bf16.msra.mxu0 %v7121_v39 }
 0x23f   :  { %1465 = vmatprep.subr.bf16.mxu0 %v7122_v1 }
 0x242   :  { %1466 = vmatpush1.bf16.msra.mxu0 %v7123_v17 }
 0x243   :  { %1467 = vmatprep.subr.bf16.mxu0 %v7124_v29  ;;  %v922_v29 = vrot.slane %v4190_v41, %v7129_v25 }
 0x245   :  { %v932_v17 = vpack.i.b16 %v922_v29, %v922_v29  ;;  %v930_v41 = vcombine.high %v922_v29, %v922_v29  ;;  %v7134_v29 = vld [vmem:[#allocation14_spill] sm:$0xff] }
 0x246   :  { %1468 = vmatpush1.bf16.msra.mxu0 %v7125_v31  ;;  %v929_v31 = vrot.slane %v915_v19, %v7129_v25 }
 0x247   :  { %1469 = vmatprep.subr.bf16.mxu0 %v7126_v33 }
 0x248   :  { %v939_v33 = vpack.i.b16 %v929_v31, %v929_v31 }
 0x24a   :  { %1470 = vmatpush1.bf16.msra.mxu0 %v7127_v42  ;;  %v5714_v42 = vrot.slane %v932_v17, %v5448_v58 }
 0x24b   :  { %1480 = vmatprep.subr.bf16.mxu0 %v7128_v43  ;;  %v5717_v43 = vrot.slane %v939_v33, %v5448_v58  ;;  %v946_v33 = vpack.i.b16 %v930_v41, %v930_v41  ;;  %v7140_v41 = vld [vmem:[#allocation20_spill] sm:$0xff] }
 0x2b8   :  { %v4358_v44 = vpop.f32.mrb[8].mxu0 }
 0x2b9   :  { %v4359_v47 = vpop.f32.mrb[9].mxu0 }
 0x2ba   :  { %v4360_v48 = vadd.f32 %v4359_v47, %v4358_v44  ;;  %v4361_v35 = vpop.f32.mrb[10].mxu0 }
 0x2bb   :  { %v4362_v37 = vpop.f32.mrb[11].mxu0 }
 0x2e0   :  { %v1340_v44 = vpop.f32.mrb[16].mxu1  ;;  %v1421_v47 = vpop.f32.mrb[12].mxu0 }
 0x2e1   :  { %v1427_v35 = vpack.c.bf16 %v1340_v44, %v1340_v44  ;;  %v1422_v37 = vadd.f32 %v4360_v48, %v1421_v47  ;;  %v1342_v1 = vpop.f32.mrb[17].mxu1  ;;  %v4782_v39 = vpop.f32.mrb[13].mxu0  ;;  %v7135_v48 = vld [vmem:[#allocation15_spill] sm:$0xff]  ;;  %v7136_v44 = vld [vmem:[#allocation16_spill] sm:$0xff]  ;;  %v7137_v47 = vld [vmem:[#allocation17_spill] sm:$0xff] }
 0x2e2   :  { %v1428_v49 = vpack.c.bf16 %v1342_v1, %v1342_v1  ;;  %v1344_v13 = vpop.f32.mrb[18].mxu1  ;;  %v1424_v11 = vpop.f32.mrb[14].mxu0  ;;  %v7133_v1 = vld [vmem:[#allocation9_spill] sm:$0xff] }
 0x2e3   :  { %v1430_v19 = vadd.bf16 %v1427_v35, %v5714_v42  ;;  %v1345_v25 = vpop.f32.mrb[19].mxu1  ;;  %v4783_v31 = vpop.f32.mrb[15].mxu0  ;;  %v5726_v11 = vrot.slane %v946_v33, %v5448_v58  ;;  %v1429_v13 = vpack.c.bf16 %v1422_v37, %v1422_v37  ;;  %v7131_v58 = vld [vmem:[#allocation28_spill] sm:$0xff]  ;;  %v7138_v35 = vld [vmem:[#allocation18_spill] sm:$0xff]  ;;  %v7139_v37 = vld [vmem:[#allocation19_spill] sm:$0xff] }
 0x2e4   :  { %v1431_v17 = vadd.bf16 %v1428_v49, %v5717_v43  ;;  %v7132_v49 = vld [vmem:[#allocation29_spill] sm:$0xff]  ;;  %v7142_v25 = vld [vmem:[#allocation22_spill] sm:$0xff]  ;;  %v7143_v31 = vld [vmem:[#allocation23_spill] sm:$0xff] }
 0x2e5   :  { %v1433_v9 = vmax.bf16 %v7115_v52, %v1430_v19  ;;  %v7141_v19 = vld [vmem:[#allocation21_spill] sm:$0xff] }
 0x2e6   :  { %v1434_v10 = vmax.bf16 %v7115_v52, %v1431_v17  ;;  %v7144_v17 = vld [vmem:[#allocation24_spill] sm:$0xff]  ;;  %v7145_v33 = vld [vmem:[#allocation25_spill] sm:$0xff] }
 0x2e8   :  { %1471 = vmatprep.mubr.bf16.mxu0 %v1434_v10  ;;  %1553 = vmatprep.mubr.bf16.mxu1 %v1434_v10  ;;  %v7130_v10 = vld [vmem:[#allocation27_spill] sm:$0xff] }
 0x2e9   :  { %1472 = vmatmul.mubr.bf16.vlgmr.msra.gmra.mrb[16].mxu0 %v1433_v9  ;;  %1554 = vmatmul.mubr.bf16.vlgmr.msra.gmra.mrb[20].mxu1 %v1433_v9  ;;  %v1432_v9 = vadd.bf16 %v1429_v13, %v5726_v11  ;;  %v7146_v13 = vld [vmem:[#allocation26_spill] sm:$0xff] }
 0x2ea   :  { %1481 = vmatpush1.bf16.msra.mxu0 %v5621_v14  ;;  %4785 = vmatpush3.bf16.msra.mxu1 %v5623_v40 }
 0x2eb   :  { %1482 = vmatprep.subr.bf16.mxu0 %v5626_v45  ;;  %4786 = vmatprep.subr.bf16.mxu1 %v7117_v21  ;;  %v1435_v39 = vmax.bf16 %v7115_v52, %v1432_v9 }
 0x2ec   :  { %4790 = vmatprep.mubr.msk.bf16.mxu1 %vm5342_vm0, %v7117_v21  ;;  %1512 = vmatprep.mubr.bf16.mxu0 %v7115_v52 }
 0x2ee   :  { %1483 = vmatpush1.bf16.msra.mxu0 %v5628_v27  ;;  %4787 = vmatpush3.bf16.msra.mxu1 %v5632_v0 }
 0x2ef   :  { %4251 = vmatprep.subr.msk.bf16.mxu0 %vm603_vm2, %v7130_v10  ;;  %4788 = vmatprep.subr.bf16.mxu1 %v7117_v21 }
 0x2f2   :  { %1485 = vmatpush1.bf16.msra.mxu0 %v7131_v58  ;;  %4789 = vmatpush3.bf16.msra.mxu1 %v7132_v49 }
 0x2f3   :  { %1613 = vmatprep.subr.bf16.mxu1 %v7133_v1  ;;  %4394 = vmatprep.subr.bf16.mxu0 %v5438_v46 }
 0x2f5   :  { %4791 = vmatmul.mubr.msk.bf16.vlgmr.msra.gmra.mrb[24].mxu1 %vm599_vm3, %v1435_v39  ;;  %4252 = vmatmul.mubr.msk.bf16.vlgmr.msra.gmra.mrb[16].mxu0 %vm599_vm3, %v1435_v39 }
 0x2f6   :  { %1614 = vmatpush1.bf16.msra.mxu1 %v5495_v50  ;;  %4395 = vmatpush3.bf16.msra.mxu0 %v5460_v22 }
 0x2f7   :  { %1615 = vmatprep.subr.bf16.mxu1 %v5498_v51  ;;  %4396 = vmatprep.subr.bf16.mxu0 %v5462_v24 }
 0x2fa   :  { %1616 = vmatpush1.bf16.msra.mxu1 %v5503_v53  ;;  %4397 = vmatpush3.bf16.msra.mxu0 %v5465_v26 }
 0x2fb   :  { %1617 = vmatprep.subr.bf16.mxu1 %v5506_v54  ;;  %4398 = vmatprep.subr.bf16.mxu0 %v5468_v28 }
 0x2fe   :  { %1618 = vmatpush1.bf16.msra.mxu1 %v5509_v55  ;;  %4399 = vmatpush3.bf16.msra.mxu0 %v5471_v30 }
 0x2ff   :  { %1619 = vmatprep.subr.bf16.mxu1 %v5512_v56  ;;  %4400 = vmatprep.subr.bf16.mxu0 %v5474_v32 }
 0x302   :  { %1620 = vmatpush1.bf16.msra.mxu1 %v5515_v57  ;;  %4401 = vmatpush3.bf16.msra.mxu0 %v5477_v34 }
 0x303   :  { %1621 = vmatprep.subr.bf16.mxu1 %v5518_v59  ;;  %4402 = vmatprep.subr.bf16.mxu0 %v5480_v36 }
 0x306   :  { %1622 = vmatpush1.bf16.msra.mxu1 %v5521_v60  ;;  %4403 = vmatpush3.bf16.msra.mxu0 %v5483_v38 }
 0x307   :  { %1623 = vmatprep.subr.bf16.mxu1 %v5524_v61  ;;  %4404 = vmatprep.subr.bf16.mxu0 %v5562_v12 }
 0x30a   :  { %1624 = vmatpush1.bf16.msra.mxu1 %v5527_v62  ;;  %4405 = vmatpush3.bf16.msra.mxu0 %v5571_v15 }
 0x30b   :  { %1625 = vmatprep.subr.bf16.mxu1 %v5530_v63  ;;  %4406 = vmatprep.subr.bf16.mxu0 %v5574_v16 }
 0x30e   :  { %1626 = vmatpush1.bf16.msra.mxu1 %v5533_v2  ;;  %4407 = vmatpush3.bf16.msra.mxu0 %v5579_v18 }
 0x30f   :  { %1627 = vmatprep.subr.bf16.mxu1 %v5536_v3  ;;  %4408 = vmatprep.subr.bf16.mxu0 %v5586_v20 }
 0x312   :  { %1628 = vmatpush1.bf16.msra.mxu1 %v5539_v4  ;;  %4409 = vmatpush3.bf16.msra.mxu0 %v5591_v23 }
 0x313   :  { %1629 = vmatprep.subr.bf16.mxu1 %v5542_v5  ;;  %4794 = vmatprep.subr.bf16.mxu0 %v7117_v21 }
 0x316   :  { %1630 = vmatpush1.bf16.msra.mxu1 %v5545_v6 }
 0x317   :  { %1631 = vmatprep.subr.bf16.mxu1 %v5548_v7 }
 0x31a   :  { %1632 = vmatpush1.bf16.msra.mxu1 %v5551_v8 }
 0x31b   :  { %1633 = vmatprep.subr.bf16.mxu1 %v7134_v29 }
 0x31e   :  { %1634 = vmatpush1.bf16.msra.mxu1 %v7135_v48 }
 0x31f   :  { %1635 = vmatprep.subr.bf16.mxu1 %v7136_v44 }
 0x322   :  { %1636 = vmatpush1.bf16.msra.mxu1 %v7137_v47 }
 0x323   :  { %1637 = vmatprep.subr.bf16.mxu1 %v7138_v35 }
 0x326   :  { %1638 = vmatpush1.bf16.msra.mxu1 %v7139_v37 }
 0x327   :  { %1639 = vmatprep.subr.bf16.mxu1 %v7140_v41 }
 0x32a   :  { %1640 = vmatpush1.bf16.msra.mxu1 %v7141_v19 }
 0x32b   :  { %1641 = vmatprep.subr.bf16.mxu1 %v7142_v25 }
 0x32e   :  { %1642 = vmatpush1.bf16.msra.mxu1 %v7143_v31 }
 0x32f   :  { %1643 = vmatprep.subr.bf16.mxu1 %v7144_v17 }
 0x332   :  { %1644 = vmatpush1.bf16.msra.mxu1 %v7145_v33 }
 0x333   :  { %1654 = vmatprep.subr.bf16.mxu1 %v7146_v13 }
 0x3bc   :  { %v4384_v9 = vpop.f32.mrb[20].mxu1 }
 0x3bd   :  { %v4385_v39 = vpop.f32.mrb[21].mxu1 }
 0x3be   :  { %v4386_v47 = vadd.f32 %v4385_v39, %v4384_v9  ;;  %v4387_v35 = vpop.f32.mrb[22].mxu1  ;;  %v7161_v9 = vld [vmem:[#allocation24_spill] sm:$0xff]  ;;  %v7162_v39 = vld [vmem:[#allocation25_spill] sm:$0xff] }
 0x3bf   :  { %v4388_v44 = vpop.f32.mrb[23].mxu1 }
 0x3c0   :  { %v7151_v44 = vld [vmem:[#allocation14_spill] sm:$0xff] }
 0x3c8   :  { %v1595_v37 = vpop.f32.mrb[24].mxu1  ;;  %v1514_v48 = vpop.f32.mrb[16].mxu0 }
 0x3c9   :  { %v1596_v41 = vadd.f32 %v4386_v47, %v1595_v37  ;;  %v1601_v29 = vpack.c.bf16 %v1514_v48, %v1514_v48  ;;  %v4792_v19 = vpop.f32.mrb[25].mxu1  ;;  %v1516_v8 = vpop.f32.mrb[17].mxu0  ;;  %v7150_v48 = vld [vmem:[#allocation13_spill] sm:$0xff]  ;;  %v7152_v47 = vld [vmem:[#allocation15_spill] sm:$0xff]  ;;  %v7153_v37 = vld [vmem:[#allocation16_spill] sm:$0xff] }
 0x3ca   :  { %v1602_v25 = vpack.c.bf16 %v1516_v8, %v1516_v8  ;;  %v1598_v7 = vpop.f32.mrb[26].mxu1  ;;  %v1518_v31 = vpop.f32.mrb[18].mxu0  ;;  %v7148_v8 = vld [vmem:[#allocation11_spill] sm:$0xff]  ;;  %v7155_v19 = vld [vmem:[#allocation18_spill] sm:$0xff] }
 0x3cb   :  { %v1604_v17 = vadd.bf16 %v1601_v29, %v5714_v42  ;;  %v4793_v6 = vpop.f32.mrb[27].mxu1  ;;  %v1519_v33 = vpop.f32.mrb[19].mxu0  ;;  %v1603_v7 = vpack.c.bf16 %v1596_v41, %v1596_v41  ;;  %v7149_v29 = vld [vmem:[#allocation12_spill] sm:$0xff]  ;;  %v7154_v41 = vld [vmem:[#allocation17_spill] sm:$0xff] }
 0x3cc   :  { %v1605_v13 = vadd.bf16 %v1602_v25, %v5717_v43  ;;  %v7156_v25 = vld [vmem:[#allocation19_spill] sm:$0xff]  ;;  %v7157_v31 = vld [vmem:[#allocation20_spill] sm:$0xff]  ;;  %v7159_v33 = vld [vmem:[#allocation22_spill] sm:$0xff] }
 0x3cd   :  { %v1607_v35 = vmax.bf16 %v7115_v52, %v1604_v17  ;;  %v7158_v17 = vld [vmem:[#allocation21_spill] sm:$0xff] }
 0x3ce   :  { %v1608_v5 = vmax.bf16 %v7115_v52, %v1605_v13  ;;  %v7160_v13 = vld [vmem:[#allocation23_spill] sm:$0xff] }
 0x3d0   :  { %1645 = vmatprep.mubr.bf16.mxu1 %v1608_v5  ;;  %1727 = vmatprep.mubr.bf16.mxu0 %v1608_v5  ;;  %v1606_v5 = vadd.bf16 %v1603_v7, %v5726_v11 }
 0x3d1   :  { %1646 = vmatmul.mubr.bf16.vlgmr.msra.gmra.mrb[28].mxu1 %v1607_v35  ;;  %1728 = vmatmul.mubr.bf16.vlgmr.msra.gmra.mrb[20].mxu0 %v1607_v35  ;;  %v7163_v35 = vld [vmem:[#allocation26_spill] sm:$0xff] }
 0x3d2   :  { %1655 = vmatpush1.bf16.msra.mxu1 %v5621_v14  ;;  %4795 = vmatpush3.bf16.msra.mxu0 %v5623_v40  ;;  %v1609_v6 = vmax.bf16 %v7115_v52, %v1606_v5 }
 0x3d3   :  { %1656 = vmatprep.subr.bf16.mxu1 %v5626_v45  ;;  %4796 = vmatprep.subr.bf16.mxu0 %v7117_v21 }
 0x3d4   :  { %4800 = vmatprep.mubr.msk.bf16.mxu0 %vm5342_vm0, %v7117_v21  ;;  %1686 = vmatprep.mubr.bf16.mxu1 %v7115_v52 }
 0x3d6   :  { %1657 = vmatpush1.bf16.msra.mxu1 %v5628_v27  ;;  %4797 = vmatpush3.bf16.msra.mxu0 %v5632_v0 }
 0x3d7   :  { %4254 = vmatprep.subr.msk.bf16.mxu1 %vm603_vm2, %v7130_v10  ;;  %4798 = vmatprep.subr.bf16.mxu0 %v7117_v21 }
 0x3da   :  { %1659 = vmatpush1.bf16.msra.mxu1 %v7131_v58  ;;  %4799 = vmatpush3.bf16.msra.mxu0 %v7132_v49 }
 0x3db   :  { %1787 = vmatprep.subr.bf16.mxu0 %v7133_v1  ;;  %4420 = vmatprep.subr.bf16.mxu1 %v5438_v46  ;;  %v7147_v46 = vld [vmem:[#allocation10_spill] sm:$0xff] }
 0x3dd   :  { %4801 = vmatmul.mubr.msk.bf16.vlgmr.msra.gmra.mrb[24].mxu0 %vm599_vm3, %v1609_v6  ;;  %4255 = vmatmul.mubr.msk.bf16.vlgmr.msra.gmra.mrb[28].mxu1 %vm599_vm3, %v1609_v6 }
 0x3de   :  { %1788 = vmatpush1.bf16.msra.mxu0 %v5495_v50  ;;  %4421 = vmatpush3.bf16.msra.mxu1 %v5460_v22 }
 0x3df   :  { %1789 = vmatprep.subr.bf16.mxu0 %v5498_v51  ;;  %4422 = vmatprep.subr.bf16.mxu1 %v5462_v24 }
 0x3e2   :  { %1790 = vmatpush1.bf16.msra.mxu0 %v5503_v53  ;;  %4423 = vmatpush3.bf16.msra.mxu1 %v5465_v26 }
 0x3e3   :  { %1791 = vmatprep.subr.bf16.mxu0 %v5506_v54  ;;  %4424 = vmatprep.subr.bf16.mxu1 %v5468_v28 }
 0x3e6   :  { %1792 = vmatpush1.bf16.msra.mxu0 %v5509_v55  ;;  %4425 = vmatpush3.bf16.msra.mxu1 %v5471_v30 }
 0x3e7   :  { %1793 = vmatprep.subr.bf16.mxu0 %v5512_v56  ;;  %4426 = vmatprep.subr.bf16.mxu1 %v5474_v32 }
 0x3ea   :  { %1794 = vmatpush1.bf16.msra.mxu0 %v5515_v57  ;;  %4427 = vmatpush3.bf16.msra.mxu1 %v5477_v34 }
 0x3eb   :  { %1795 = vmatprep.subr.bf16.mxu0 %v5518_v59  ;;  %4428 = vmatprep.subr.bf16.mxu1 %v5480_v36 }
 0x3ee   :  { %1796 = vmatpush1.bf16.msra.mxu0 %v5521_v60  ;;  %4429 = vmatpush3.bf16.msra.mxu1 %v5483_v38 }
 0x3ef   :  { %1797 = vmatprep.subr.bf16.mxu0 %v5524_v61  ;;  %4430 = vmatprep.subr.bf16.mxu1 %v5562_v12 }
 0x3f2   :  { %1798 = vmatpush1.bf16.msra.mxu0 %v5527_v62  ;;  %4431 = vmatpush3.bf16.msra.mxu1 %v5571_v15 }
 0x3f3   :  { %1799 = vmatprep.subr.bf16.mxu0 %v5530_v63  ;;  %4432 = vmatprep.subr.bf16.mxu1 %v5574_v16 }
 0x3f6   :  { %1800 = vmatpush1.bf16.msra.mxu0 %v5533_v2  ;;  %4433 = vmatpush3.bf16.msra.mxu1 %v5579_v18 }
 0x3f7   :  { %1801 = vmatprep.subr.bf16.mxu0 %v5536_v3  ;;  %4434 = vmatprep.subr.bf16.mxu1 %v5586_v20 }
 0x3fa   :  { %1802 = vmatpush1.bf16.msra.mxu0 %v5539_v4  ;;  %4435 = vmatpush3.bf16.msra.mxu1 %v5591_v23 }
 0x3fb   :  { %1803 = vmatprep.subr.bf16.mxu0 %v7147_v46  ;;  %4804 = vmatprep.subr.bf16.mxu1 %v7117_v21 }
 0x3fe   :  { %1804 = vmatpush1.bf16.msra.mxu0 %v7148_v8 }
 0x3ff   :  { %1805 = vmatprep.subr.bf16.mxu0 %v7149_v29 }
 0x402   :  { %1806 = vmatpush1.bf16.msra.mxu0 %v7150_v48 }
 0x403   :  { %1807 = vmatprep.subr.bf16.mxu0 %v7151_v44 }
 0x406   :  { %1808 = vmatpush1.bf16.msra.mxu0 %v7152_v47 }
 0x407   :  { %1809 = vmatprep.subr.bf16.mxu0 %v7153_v37 }
 0x40a   :  { %1810 = vmatpush1.bf16.msra.mxu0 %v7154_v41 }
 0x40b   :  { %1811 = vmatprep.subr.bf16.mxu0 %v7155_v19 }
 0x40e   :  { %1812 = vmatpush1.bf16.msra.mxu0 %v7156_v25 }
 0x40f   :  { %1813 = vmatprep.subr.bf16.mxu0 %v7157_v31 }
 0x412   :  { %1814 = vmatpush1.bf16.msra.mxu0 %v7158_v17 }
 0x413   :  { %1815 = vmatprep.subr.bf16.mxu0 %v7159_v33 }
 0x416   :  { %1816 = vmatpush1.bf16.msra.mxu0 %v7160_v13 }
 0x417   :  { %1817 = vmatprep.subr.bf16.mxu0 %v7161_v9 }
 0x41a   :  { %1818 = vmatpush1.bf16.msra.mxu0 %v7162_v39 }
 0x41b   :  { %1828 = vmatprep.subr.bf16.mxu0 %v7163_v35 }
 0x4a4   :  { %v4410_v7 = vpop.f32.mrb[20].mxu0 }
 0x4a5   :  { %v4411_v5 = vpop.f32.mrb[21].mxu0 }
 0x4a6   :  { %v4412_v6 = vadd.f32 %v4411_v5, %v4410_v7  ;;  %v4413_v19 = vpop.f32.mrb[22].mxu0 }
 0x4a7   :  { %v4414_v41 = vpop.f32.mrb[23].mxu0 }
 0x4b0   :  { %v1769_v25 = vpop.f32.mrb[24].mxu0  ;;  %v1688_v37 = vpop.f32.mrb[28].mxu1 }
 0x4b1   :  { %v1770_v31 = vadd.f32 %v4412_v6, %v1769_v25  ;;  %v1775_v47 = vpack.c.bf16 %v1688_v37, %v1688_v37  ;;  %v4802_v17 = vpop.f32.mrb[25].mxu0  ;;  %v1690_v44 = vpop.f32.mrb[29].mxu1  ;;  %v5960_v6 = vld [vmem:[#allocation4 + $0x4] ss:$12 sps:$4 sm:$0xff]  }
 0x4b2   :  { %v1776_v33 = vpack.c.bf16 %v1690_v44, %v1690_v44  ;;  %v1772_v48 = vpop.f32.mrb[26].mxu0  ;;  %v1692_v13 = vpop.f32.mrb[30].mxu1  ;;  %v5887_v44 = vld [vmem:[#allocation4 + $0xc8] ss:$12 sps:$4 sm:$0xff]  }
 0x4b3   :  { %v1778_v9 = vadd.bf16 %v1775_v47, %v5714_v42  ;;  %v4803_v29 = vpop.f32.mrb[27].mxu0  ;;  %v1693_v39 = vpop.f32.mrb[31].mxu1  ;;  %v1777_v48 = vpack.c.bf16 %v1770_v31, %v1770_v31 }
 0x4b4   :  { %v1779_v35 = vadd.bf16 %v1776_v33, %v5717_v43 }
 0x4b5   :  { %v1781_v19 = vmax.bf16 %v7115_v52, %v1778_v9 }
 0x4b6   :  { %v1782_v8 = vmax.bf16 %v7115_v52, %v1779_v35 }
 0x4b8   :  { %1819 = vmatprep.mubr.bf16.mxu0 %v1782_v8  ;;  %1901 = vmatprep.mubr.bf16.mxu1 %v1782_v8  ;;  %v1780_v8 = vadd.bf16 %v1777_v48, %v5726_v11  ;;  %v5969_v48 = vld [vmem:[#allocation4 + $0x8] ss:$12 sps:$4 sm:$0xff]  }
 0x4b9   :  { %1820 = vmatmul.mubr.bf16.vlgmr.msra.gmra.mrb[28].mxu0 %v1781_v19  ;;  %1902 = vmatmul.mubr.bf16.vlgmr.msra.gmra.mrb[32].mxu1 %v1781_v19  ;;  %v5966_v19 = vld [vmem:[#allocation4] ss:$12 sps:$4 sm:$0xff]  }
 0x4ba   :  { %1829 = vmatpush1.bf16.msra.mxu0 %v5621_v14  ;;  %4805 = vmatpush3.bf16.msra.mxu1 %v5623_v40  ;;  %v1783_v29 = vmax.bf16 %v7115_v52, %v1780_v8  ;;  %v5972_v8 = vld [vmem:[#allocation4 + $0x1c] ss:$12 sps:$4 sm:$0xff]  }
 0x4bb   :  { %1830 = vmatprep.subr.bf16.mxu0 %v5626_v45  ;;  %4806 = vmatprep.subr.bf16.mxu1 %v7117_v21 }
 0x4bc   :  { %4810 = vmatprep.mubr.msk.bf16.mxu1 %vm5342_vm0, %v7117_v21  ;;  %1860 = vmatprep.mubr.bf16.mxu0 %v7115_v52 }
 0x4be   :  { %1831 = vmatpush1.bf16.msra.mxu0 %v5628_v27  ;;  %4807 = vmatpush3.bf16.msra.mxu1 %v5632_v0 }
 0x4bf   :  { %4257 = vmatprep.subr.msk.bf16.mxu0 %vm603_vm2, %v7130_v10  ;;  %4808 = vmatprep.subr.bf16.mxu1 %v7117_v21 }
 0x4c2   :  { %1833 = vmatpush1.bf16.msra.mxu0 %v7131_v58  ;;  %4809 = vmatpush3.bf16.msra.mxu1 %v7132_v49 }
 0x4c3   :  { %1961 = vmatprep.subr.bf16.mxu1 %v7133_v1  ;;  %4446 = vmatprep.subr.bf16.mxu0 %v5887_v44 }
 0x4c5   :  { %4811 = vmatmul.mubr.msk.bf16.vlgmr.msra.gmra.mrb[36].mxu1 %vm599_vm3, %v1783_v29  ;;  %4258 = vmatmul.mubr.msk.bf16.vlgmr.msra.gmra.mrb[28].mxu0 %vm599_vm3, %v1783_v29  ;;  %v5975_v29 = vld [vmem:[#allocation4 + $0xe0] ss:$12 sps:$4 sm:$0xff]  }
 0x4c6   :  { %1962 = vmatpush1.bf16.msra.mxu1 %v5495_v50  ;;  %4447 = vmatpush3.bf16.msra.mxu0 %v5460_v22  ;;  %v7164_v22 = vld [vmem:[#allocation11_spill] sm:$0xff]  ;;  %v7173_v50 = vld [vmem:[#allocation20_spill] sm:$0xff] }
 0x4c7   :  { %1963 = vmatprep.subr.bf16.mxu1 %v5498_v51  ;;  %4448 = vmatprep.subr.bf16.mxu0 %v5462_v24  ;;  %v7165_v24 = vld [vmem:[#allocation12_spill] sm:$0xff]  ;;  %v7174_v51 = vld [vmem:[#allocation21_spill] sm:$0xff] }
 0x4ca   :  { %1964 = vmatpush1.bf16.msra.mxu1 %v5503_v53  ;;  %4449 = vmatpush3.bf16.msra.mxu0 %v5465_v26  ;;  %v7166_v26 = vld [vmem:[#allocation13_spill] sm:$0xff]  ;;  %v7175_v53 = vld [vmem:[#allocation22_spill] sm:$0xff] }
 0x4cb   :  { %1965 = vmatprep.subr.bf16.mxu1 %v5506_v54  ;;  %4450 = vmatprep.subr.bf16.mxu0 %v5468_v28  ;;  %v7167_v28 = vld [vmem:[#allocation14_spill] sm:$0xff]  ;;  %v7176_v54 = vld [vmem:[#allocation23_spill] sm:$0xff] }
 0x4ce   :  { %1966 = vmatpush1.bf16.msra.mxu1 %v5509_v55  ;;  %4451 = vmatpush3.bf16.msra.mxu0 %v5471_v30  ;;  %v7168_v30 = vld [vmem:[#allocation15_spill] sm:$0xff]  ;;  %v7177_v55 = vld [vmem:[#allocation24_spill] sm:$0xff] }
 0x4cf   :  { %1967 = vmatprep.subr.bf16.mxu1 %v5512_v56  ;;  %4452 = vmatprep.subr.bf16.mxu0 %v5474_v32  ;;  %v7169_v32 = vld [vmem:[#allocation16_spill] sm:$0xff]  ;;  %v7178_v56 = vld [vmem:[#allocation25_spill] sm:$0xff] }
 0x4d2   :  { %1968 = vmatpush1.bf16.msra.mxu1 %v5515_v57  ;;  %4453 = vmatpush3.bf16.msra.mxu0 %v5477_v34  ;;  %v7170_v34 = vld [vmem:[#allocation17_spill] sm:$0xff]  ;;  %v7179_v57 = vld [vmem:[#allocation26_spill] sm:$0xff] }
 0x4d3   :  { %1969 = vmatprep.subr.bf16.mxu1 %v5518_v59  ;;  %4454 = vmatprep.subr.bf16.mxu0 %v5480_v36  ;;  %v7171_v36 = vld [vmem:[#allocation18_spill] sm:$0xff] }
 0x4d6   :  { %1970 = vmatpush1.bf16.msra.mxu1 %v5521_v60  ;;  %4455 = vmatpush3.bf16.msra.mxu0 %v5483_v38  ;;  %v7172_v38 = vld [vmem:[#allocation19_spill] sm:$0xff] }
 0x4d7   :  { %1971 = vmatprep.subr.bf16.mxu1 %v5524_v61  ;;  %4456 = vmatprep.subr.bf16.mxu0 %v5562_v12 }
 0x4da   :  { %1972 = vmatpush1.bf16.msra.mxu1 %v5527_v62  ;;  %4457 = vmatpush3.bf16.msra.mxu0 %v5571_v15 }
 0x4db   :  { %1973 = vmatprep.subr.bf16.mxu1 %v5530_v63  ;;  %4458 = vmatprep.subr.bf16.mxu0 %v5574_v16 }
 0x4de   :  { %1974 = vmatpush1.bf16.msra.mxu1 %v5533_v2  ;;  %4459 = vmatpush3.bf16.msra.mxu0 %v5579_v18 }
 0x4df   :  { %1975 = vmatprep.subr.bf16.mxu1 %v5536_v3  ;;  %4460 = vmatprep.subr.bf16.mxu0 %v5586_v20 }
 0x4e2   :  { %1976 = vmatpush1.bf16.msra.mxu1 %v5539_v4  ;;  %4461 = vmatpush3.bf16.msra.mxu0 %v5591_v23 }
 0x4e3   :  { %1977 = vmatprep.subr.bf16.mxu1 %v7147_v46  ;;  %4814 = vmatprep.subr.bf16.mxu0 %v7117_v21 }
 0x4e6   :  { %1978 = vmatpush1.bf16.msra.mxu1 %v7164_v22  ;;  %v5978_v22 = vld [vmem:[#allocation4 + $0x18] ss:$12 sps:$4 sm:$0xff]  }
 0x4e7   :  { %1979 = vmatprep.subr.bf16.mxu1 %v7165_v24  ;;  %v5981_v24 = vld [vmem:[#allocation4 + $0x20] ss:$12 sps:$4 sm:$0xff]  }
 0x4ea   :  { %1980 = vmatpush1.bf16.msra.mxu1 %v7166_v26  ;;  %v5984_v26 = vld [vmem:[#allocation4 + $0x34] ss:$12 sps:$4 sm:$0xff]  }
 0x4eb   :  { %1981 = vmatprep.subr.bf16.mxu1 %v7167_v28  ;;  %v5987_v28 = vld [vmem:[#allocation4 + $0xf8] ss:$12 sps:$4 sm:$0xff]  }
 0x4ee   :  { %1982 = vmatpush1.bf16.msra.mxu1 %v7168_v30  ;;  %v5990_v30 = vld [vmem:[#allocation4 + $0x30] ss:$12 sps:$4 sm:$0xff]  }
 0x4ef   :  { %1983 = vmatprep.subr.bf16.mxu1 %v7169_v32  ;;  %v5993_v32 = vld [vmem:[#allocation4 + $0x38] ss:$12 sps:$4 sm:$0xff]  }
 0x4f2   :  { %1984 = vmatpush1.bf16.msra.mxu1 %v7170_v34  ;;  %v5996_v34 = vld [vmem:[#allocation4 + $0x4c] ss:$12 sps:$4 sm:$0xff]  }
 0x4f3   :  { %1985 = vmatprep.subr.bf16.mxu1 %v7171_v36  ;;  %v5999_v36 = vld [vmem:[#allocation4 + $0x110] ss:$12 sps:$4 sm:$0xff]  }
 0x4f6   :  { %1986 = vmatpush1.bf16.msra.mxu1 %v7172_v38 }
 0x4f7   :  { %1987 = vmatprep.subr.bf16.mxu1 %v7173_v50 }
 0x4fa   :  { %1988 = vmatpush1.bf16.msra.mxu1 %v7174_v51 }
 0x4fb   :  { %1989 = vmatprep.subr.bf16.mxu1 %v7175_v53 }
 0x4fe   :  { %1990 = vmatpush1.bf16.msra.mxu1 %v7176_v54 }
 0x4ff   :  { %1991 = vmatprep.subr.bf16.mxu1 %v7177_v55 }
 0x502   :  { %1992 = vmatpush1.bf16.msra.mxu1 %v7178_v56 }
 0x503   :  { %2002 = vmatprep.subr.bf16.mxu1 %v7179_v57 }
 0x58c   :  { %v4436_v59 = vpop.f32.mrb[32].mxu1 }
 0x58d   :  { %v4437_v60 = vpop.f32.mrb[33].mxu1 }
 0x58e   :  { %v4438_v61 = vadd.f32 %v4437_v60, %v4436_v59  ;;  %v4439_v62 = vpop.f32.mrb[34].mxu1  ;;  %v6002_v59 = vld [vmem:[#allocation4 + $0x48] ss:$12 sps:$4 sm:$0xff]   ;;  %v6005_v60 = vld [vmem:[#allocation4 + $0x50] ss:$12 sps:$4 sm:$0xff]  }
 0x58f   :  { %v4440_v63 = vpop.f32.mrb[35].mxu1  ;;  %v6011_v62 = vld [vmem:[#allocation4 + $0x128] ss:$12 sps:$4 sm:$0xff]  }
 0x590   :  { %v6014_v63 = vld [vmem:[#allocation4 + $0x60] ss:$12 sps:$4 sm:$0xff]  }
 0x598   :  { %v1943_v2 = vpop.f32.mrb[36].mxu1  ;;  %v1862_v3 = vpop.f32.mrb[28].mxu0 }
 0x599   :  { %v1944_v4 = vadd.f32 %v4438_v61, %v1943_v2  ;;  %v1949_v1 = vpack.c.bf16 %v1862_v3, %v1862_v3  ;;  %v4812_v46 = vpop.f32.mrb[37].mxu1  ;;  %v1864_v47 = vpop.f32.mrb[29].mxu0  ;;  %v6008_v61 = vld [vmem:[#allocation4 + $0x64] ss:$12 sps:$4 sm:$0xff]   ;;  %v6017_v2 = vld [vmem:[#allocation4 + $0x68] ss:$12 sps:$4 sm:$0xff]  }
 0x59a   :  { %v1950_v37 = vpack.c.bf16 %v1864_v47, %v1864_v47  ;;  %v1946_v41 = vpop.f32.mrb[38].mxu1  ;;  %v1866_v25 = vpop.f32.mrb[30].mxu0  ;;  %v6020_v3 = vld [vmem:[#allocation4 + $0x7c] ss:$12 sps:$4 sm:$0xff]   ;;  %v6036_v47 = vld [vmem:[#allocation4 + $0xac] ss:$12 sps:$4 sm:$0xff]  }
 0x59b   :  { %v1952_v31 = vadd.bf16 %v1949_v1, %v5714_v42  ;;  %v4813_v17 = vpop.f32.mrb[39].mxu1  ;;  %v1867_v33 = vpop.f32.mrb[31].mxu0  ;;  %v1951_v35 = vpack.c.bf16 %v1944_v4, %v1944_v4  ;;  %v6024_v4 = vld [vmem:[#allocation4 + $0x78] ss:$12 sps:$4 sm:$0xff]   ;;  %v6028_v1 = vld [vmem:[#allocation4 + $0x94] ss:$12 sps:$4 sm:$0xff]  }
 0x59c   :  { %v1953_v13 = vadd.bf16 %v1950_v37, %v5717_v43  ;;  %v6032_v46 = vld [vmem:[#allocation4 + $0x90] ss:$12 sps:$4 sm:$0xff]   ;;  %v6057_v37 = vld [vmem:[#allocation4 + $0xf4] ss:$12 sps:$4 sm:$0xff]   ;;  %v6063_v41 = vld [vmem:[#allocation4 + $0x10c] ss:$12 sps:$4 sm:$0xff]  }
 0x59d   :  { %v1955_v39 = vmax.bf16 %v7115_v52, %v1952_v31  ;;  %v1954_v7 = vadd.bf16 %v1951_v35, %v5726_v11  ;;  %7184 = vst [vmem:[#allocation9_spill] sm:$0xff] %v6057_v37  ;;  %7186 = vst [vmem:[#allocation11_spill] sm:$0xff] %v6063_v41  ;;  %v6066_v25 = vld [vmem:[#allocation4 + $0x108] ss:$12 sps:$4 sm:$0xff]   ;;  %v6069_v31 = vld [vmem:[#allocation4 + $0x124] ss:$12 sps:$4 sm:$0xff]  }
 0x59e   :  { %v1956_v9 = vmax.bf16 %v7115_v52, %v1953_v13  ;;  %7187 = vst [vmem:[#allocation12_spill] sm:$0xff] %v6066_v25  ;;  %7188 = vst [vmem:[#allocation13_spill] sm:$0xff] %v6069_v31 }
 0x59f   :  { %v1957_v5 = vmax.bf16 %v7115_v52, %v1954_v7 }
 0x5a0   :  { %1993 = vmatprep.mubr.bf16.mxu1 %v1956_v9  ;;  %2075 = vmatprep.mubr.bf16.mxu0 %v1956_v9 }
 0x5a1   :  { %1994 = vmatmul.mubr.bf16.vlgmr.msra.gmra.mrb[40].mxu1 %v1955_v39  ;;  %2076 = vmatmul.mubr.bf16.vlgmr.msra.gmra.mrb[32].mxu0 %v1955_v39 }
 0x5a2   :  { %2003 = vmatpush1.bf16.msra.mxu1 %v5621_v14  ;;  %4815 = vmatpush3.bf16.msra.mxu0 %v5623_v40 }
 0x5a3   :  { %2004 = vmatprep.subr.bf16.mxu1 %v5626_v45  ;;  %4816 = vmatprep.subr.bf16.mxu0 %v7117_v21 }
 0x5a4   :  { %4820 = vmatprep.mubr.msk.bf16.mxu0 %vm5342_vm0, %v7117_v21  ;;  %2034 = vmatprep.mubr.bf16.mxu1 %v7115_v52 }
 0x5a6   :  { %2005 = vmatpush1.bf16.msra.mxu1 %v5628_v27  ;;  %4817 = vmatpush3.bf16.msra.mxu0 %v5632_v0 }
 0x5a7   :  { %4260 = vmatprep.subr.msk.bf16.mxu1 %vm603_vm2, %v7130_v10  ;;  %4818 = vmatprep.subr.bf16.mxu0 %v7117_v21 }
 0x5aa   :  { %2007 = vmatpush1.bf16.msra.mxu1 %v7131_v58  ;;  %4819 = vmatpush3.bf16.msra.mxu0 %v7132_v49 }
 0x5ab   :  { %2135 = vmatprep.subr.bf16.mxu0 %v5960_v6  ;;  %4472 = vmatprep.subr.bf16.mxu1 %v5887_v44 }
 0x5ad   :  { %4821 = vmatmul.mubr.msk.bf16.vlgmr.msra.gmra.mrb[36].mxu0 %vm599_vm3, %v1957_v5  ;;  %4261 = vmatmul.mubr.msk.bf16.vlgmr.msra.gmra.mrb[40].mxu1 %vm599_vm3, %v1957_v5 }
 0x5ae   :  { %2136 = vmatpush1.bf16.msra.mxu0 %v5966_v19  ;;  %4473 = vmatpush3.bf16.msra.mxu1 %v5969_v48 }
 0x5af   :  { %2137 = vmatprep.subr.bf16.mxu0 %v5972_v8  ;;  %4474 = vmatprep.subr.bf16.mxu1 %v5975_v29 }
 0x5b2   :  { %2138 = vmatpush1.bf16.msra.mxu0 %v5978_v22  ;;  %4475 = vmatpush3.bf16.msra.mxu1 %v5981_v24 }
 0x5b3   :  { %2139 = vmatprep.subr.bf16.mxu0 %v5984_v26  ;;  %4476 = vmatprep.subr.bf16.mxu1 %v5987_v28 }
 0x5b6   :  { %2140 = vmatpush1.bf16.msra.mxu0 %v5990_v30  ;;  %4477 = vmatpush3.bf16.msra.mxu1 %v5993_v32 }
 0x5b7   :  { %2141 = vmatprep.subr.bf16.mxu0 %v5996_v34  ;;  %4478 = vmatprep.subr.bf16.mxu1 %v5999_v36 }
 0x5ba   :  { %2142 = vmatpush1.bf16.msra.mxu0 %v6002_v59  ;;  %4479 = vmatpush3.bf16.msra.mxu1 %v6005_v60 }
 0x5bb   :  { %2143 = vmatprep.subr.bf16.mxu0 %v6008_v61  ;;  %4480 = vmatprep.subr.bf16.mxu1 %v6011_v62 }
 0x5be   :  { %2144 = vmatpush1.bf16.msra.mxu0 %v6014_v63  ;;  %4481 = vmatpush3.bf16.msra.mxu1 %v6017_v2 }
 0x5bf   :  { %2145 = vmatprep.subr.bf16.mxu0 %v6020_v3  ;;  %4482 = vmatprep.subr.bf16.mxu1 %v5562_v12  ;;  %v6040_v12 = vld [vmem:[#allocation4 + $0xa8] ss:$12 sps:$4 sm:$0xff]  }
 0x5c2   :  { %2146 = vmatpush1.bf16.msra.mxu0 %v6024_v4  ;;  %4483 = vmatpush3.bf16.msra.mxu1 %v5571_v15  ;;  %v6044_v15 = vld [vmem:[#allocation4 + $0xc4] ss:$12 sps:$4 sm:$0xff]  }
 0x5c3   :  { %2147 = vmatprep.subr.bf16.mxu0 %v6028_v1  ;;  %4484 = vmatprep.subr.bf16.mxu1 %v5574_v16  ;;  %7180 = vst [vmem:[#allocation8_spill] sm:$0xff] %v6044_v15  ;;  %v6048_v16 = vld [vmem:[#allocation4 + $0xc0] ss:$12 sps:$4 sm:$0xff]  }
 0x5c4   :  { %7181 = vst [vmem:[#allocation27_spill] sm:$0xff] %v6048_v16 }
 0x5c6   :  { %2148 = vmatpush1.bf16.msra.mxu0 %v6032_v46  ;;  %4485 = vmatpush3.bf16.msra.mxu1 %v5579_v18  ;;  %v6051_v18 = vld [vmem:[#allocation4 + $0xdc] ss:$12 sps:$4 sm:$0xff]  }
 0x5c7   :  { %2149 = vmatprep.subr.bf16.mxu0 %v6036_v47  ;;  %4486 = vmatprep.subr.bf16.mxu1 %v5586_v20  ;;  %7182 = vst [vmem:[#allocation28_spill] sm:$0xff] %v6051_v18  ;;  %v6054_v20 = vld [vmem:[#allocation4 + $0xd8] ss:$12 sps:$4 sm:$0xff]  }
 0x5c8   :  { %7183 = vst [vmem:[#allocation29_spill] sm:$0xff] %v6054_v20 }
 0x5ca   :  { %2150 = vmatpush1.bf16.msra.mxu0 %v6040_v12  ;;  %4487 = vmatpush3.bf16.msra.mxu1 %v5591_v23  ;;  %v6060_v23 = vld [vmem:[#allocation4 + $0xf0] ss:$12 sps:$4 sm:$0xff]  }
 0x5cb   :  { %2151 = vmatprep.subr.bf16.mxu0 %v6044_v15  ;;  %4824 = vmatprep.subr.bf16.mxu1 %v7117_v21  ;;  %7185 = vst [vmem:[#allocation10_spill] sm:$0xff] %v6060_v23 }
 0x5ce   :  { %2152 = vmatpush1.bf16.msra.mxu0 %v6048_v16 }
 0x5cf   :  { %2153 = vmatprep.subr.bf16.mxu0 %v6051_v18 }
 0x5d2   :  { %2154 = vmatpush1.bf16.msra.mxu0 %v6054_v20 }
 0x5d3   :  { %2155 = vmatprep.subr.bf16.mxu0 %v6057_v37 }
 0x5d6   :  { %2156 = vmatpush1.bf16.msra.mxu0 %v6060_v23 }
 0x5d7   :  { %2157 = vmatprep.subr.bf16.mxu0 %v6063_v41 }
 0x5da   :  { %2158 = vmatpush1.bf16.msra.mxu0 %v6066_v25 }
 0x5db   :  { %2159 = vmatprep.subr.bf16.mxu0 %v6069_v31 }
 0x5de   :  { %2160 = vmatpush1.bf16.msra.mxu0 %v7172_v38 }
 0x5df   :  { %2161 = vmatprep.subr.bf16.mxu0 %v7173_v50 }
 0x5e2   :  { %2162 = vmatpush1.bf16.msra.mxu0 %v7174_v51 }
 0x5e3   :  { %2163 = vmatprep.subr.bf16.mxu0 %v7175_v53 }
 0x5e6   :  { %2164 = vmatpush1.bf16.msra.mxu0 %v7176_v54 }
 0x5e7   :  { %2165 = vmatprep.subr.bf16.mxu0 %v7177_v55 }
 0x5ea   :  { %2166 = vmatpush1.bf16.msra.mxu0 %v7178_v56 }
 0x5eb   :  { %2176 = vmatprep.subr.bf16.mxu0 %v7179_v57 }
 0x674   :  { %v4462_v17 = vpop.f32.mrb[32].mxu0 }
 0x675   :  { %v4463_v33 = vpop.f32.mrb[33].mxu0 }
 0x676   :  { %v4464_v13 = vadd.f32 %v4463_v33, %v4462_v17  ;;  %v4465_v9 = vpop.f32.mrb[34].mxu0  ;;  %v7189_v33 = vld [vmem:[#allocation11_spill] sm:$0xff] }
 0x677   :  { %v4466_v39 = vpop.f32.mrb[35].mxu0  ;;  %v7191_v9 = vld [vmem:[#allocation13_spill] sm:$0xff] }
 0x678   :  { %v6156_v39 = vld [vmem:[#allocation4 + $0x120] ss:$12 sps:$4 sm:$0xff]  }
 0x679   :  { %7192 = vst [vmem:[#allocation14_spill] sm:$0xff] %v6156_v39 }
 0x680   :  { %v2117_v38 = vpop.f32.mrb[36].mxu0  ;;  %v2036_v35 = vpop.f32.mrb[40].mxu1 }
 0x681   :  { %v2118_v50 = vadd.f32 %v4464_v13, %v2117_v38  ;;  %v2123_v7 = vpack.c.bf16 %v2036_v35, %v2036_v35  ;;  %v4822_v51 = vpop.f32.mrb[37].mxu0  ;;  %v2038_v5 = vpop.f32.mrb[41].mxu1  ;;  %v7190_v13 = vld [vmem:[#allocation12_spill] sm:$0xff]  ;;  %v6162_v35 = vld [vmem:[#allocation4 + $0x138] ss:$12 sps:$4 sm:$0xff]  }
 0x682   :  { %v2124_v53 = vpack.c.bf16 %v2038_v5, %v2038_v5  ;;  %v2120_v31 = vpop.f32.mrb[38].mxu0  ;;  %v2040_v54 = vpop.f32.mrb[42].mxu1  ;;  %v6159_v38 = vld [vmem:[#allocation4 + $0x13c] ss:$12 sps:$4 sm:$0xff]   ;;  %7194 = vst [vmem:[#allocation16_spill] sm:$0xff] %v6162_v35 }
 0x683   :  { %v2126_v55 = vadd.bf16 %v2123_v7, %v5714_v42  ;;  %v4823_v25 = vpop.f32.mrb[39].mxu0  ;;  %v2041_v56 = vpop.f32.mrb[43].mxu1  ;;  %v2125_v31 = vpack.c.bf16 %v2118_v50, %v2118_v50  ;;  %7193 = vst [vmem:[#allocation15_spill] sm:$0xff] %v6159_v38  ;;  %v6165_v50 = vld [vmem:[#allocation4 + $0x154] ss:$12 sps:$4 sm:$0xff]  }
 0x684   :  { %v2127_v57 = vadd.bf16 %v2124_v53, %v5717_v43  ;;  %v6143_v25 = vld [vmem:[#allocation4 + $0xb0] ss:$12 sps:$4 sm:$0xff]   ;;  %7195 = vst [vmem:[#allocation17_spill] sm:$0xff] %v6165_v50  ;;  %v6171_v51 = vld [vmem:[#allocation4 + $0x16c] ss:$12 sps:$4 sm:$0xff]  }
 0x685   :  { %v2129_v17 = vmax.bf16 %v7115_v52, %v2126_v55  ;;  %v6168_v7 = vld [vmem:[#allocation4 + $0x150] ss:$12 sps:$4 sm:$0xff]   ;;  %7197 = vst [vmem:[#allocation19_spill] sm:$0xff] %v6171_v51  ;;  %v6174_v5 = vld [vmem:[#allocation4 + $0x168] ss:$12 sps:$4 sm:$0xff]  }
 0x686   :  { %v2130_v41 = vmax.bf16 %v7115_v52, %v2127_v57  ;;  %7196 = vst [vmem:[#allocation18_spill] sm:$0xff] %v6168_v7  ;;  %7198 = vst [vmem:[#allocation20_spill] sm:$0xff] %v6174_v5  ;;  %v6177_v53 = vld [vmem:[#allocation4 + $0x184] ss:$12 sps:$4 sm:$0xff]  }
 0x687   :  { %7199 = vst [vmem:[#allocation21_spill] sm:$0xff] %v6177_v53 }
 0x688   :  { %2167 = vmatprep.mubr.bf16.mxu0 %v2130_v41  ;;  %2249 = vmatprep.mubr.bf16.mxu1 %v2130_v41  ;;  %v2128_v41 = vadd.bf16 %v2125_v31, %v5726_v11 }
 0x689   :  { %2168 = vmatmul.mubr.bf16.vlgmr.msra.gmra.mrb[40].mxu0 %v2129_v17  ;;  %2250 = vmatmul.mubr.bf16.vlgmr.msra.gmra.mrb[44].mxu1 %v2129_v17 }
 0x68a   :  { %2177 = vmatpush1.bf16.msra.mxu0 %v5621_v14  ;;  %4825 = vmatpush3.bf16.msra.mxu1 %v5623_v40  ;;  %v2131_v14 = vmax.bf16 %v7115_v52, %v2128_v41  ;;  %v6123_v40 = vld [vmem:[#allocation4 + $0x140] ss:$12 sps:$4 sm:$0xff]  }
 0x68b   :  { %2178 = vmatprep.subr.bf16.mxu0 %v5626_v45  ;;  %4826 = vmatprep.subr.bf16.mxu1 %v7117_v21  ;;  %v6127_v45 = vld [vmem:[#allocation4 + $0x80] ss:$12 sps:$4 sm:$0xff]  }
 0x68c   :  { %4830 = vmatprep.mubr.msk.bf16.mxu1 %vm5342_vm0, %v7117_v21  ;;  %2208 = vmatprep.mubr.bf16.mxu0 %v7115_v52 }
 0x68e   :  { %2179 = vmatpush1.bf16.msra.mxu0 %v5628_v27  ;;  %4827 = vmatpush3.bf16.msra.mxu1 %v5632_v0  ;;  %v6131_v27 = vld [vmem:[#allocation4 + $0x158] ss:$12 sps:$4 sm:$0xff]  }
 0x68f   :  { %4263 = vmatprep.subr.msk.bf16.mxu0 %vm603_vm2, %v7130_v10  ;;  %4828 = vmatprep.subr.bf16.mxu1 %v7117_v21  ;;  %v6135_v0 = vld [vmem:[#allocation4 + $0x98] ss:$12 sps:$4 sm:$0xff]   ;;  %v6139_v10 = vld [vmem:[#allocation4 + $0x170] ss:$12 sps:$4 sm:$0xff]  }
 0x692   :  { %2181 = vmatpush1.bf16.msra.mxu0 %v7131_v58  ;;  %4829 = vmatpush3.bf16.msra.mxu1 %v7132_v49 }
 0x693   :  { %2309 = vmatprep.subr.bf16.mxu1 %v5960_v6  ;;  %4498 = vmatprep.subr.bf16.mxu0 %v5887_v44 }
 0x695   :  { %4831 = vmatmul.mubr.msk.bf16.vlgmr.msra.gmra.mrb[48].mxu1 %vm599_vm3, %v2131_v14  ;;  %4264 = vmatmul.mubr.msk.bf16.vlgmr.msra.gmra.mrb[40].mxu0 %vm599_vm3, %v2131_v14 }
 0x696   :  { %2310 = vmatpush1.bf16.msra.mxu1 %v5966_v19  ;;  %4499 = vmatpush3.bf16.msra.mxu0 %v5969_v48 }
 0x697   :  { %2311 = vmatprep.subr.bf16.mxu1 %v5972_v8  ;;  %4500 = vmatprep.subr.bf16.mxu0 %v5975_v29 }
 0x69a   :  { %2312 = vmatpush1.bf16.msra.mxu1 %v5978_v22  ;;  %4501 = vmatpush3.bf16.msra.mxu0 %v5981_v24 }
 0x69b   :  { %2313 = vmatprep.subr.bf16.mxu1 %v5984_v26  ;;  %4502 = vmatprep.subr.bf16.mxu0 %v5987_v28 }
 0x69e   :  { %2314 = vmatpush1.bf16.msra.mxu1 %v5990_v30  ;;  %4503 = vmatpush3.bf16.msra.mxu0 %v5993_v32 }
 0x69f   :  { %2315 = vmatprep.subr.bf16.mxu1 %v5996_v34  ;;  %4504 = vmatprep.subr.bf16.mxu0 %v5999_v36 }
 0x6a2   :  { %2316 = vmatpush1.bf16.msra.mxu1 %v6002_v59  ;;  %4505 = vmatpush3.bf16.msra.mxu0 %v6005_v60 }
 0x6a3   :  { %2317 = vmatprep.subr.bf16.mxu1 %v6008_v61  ;;  %4506 = vmatprep.subr.bf16.mxu0 %v6011_v62 }
 0x6a6   :  { %2318 = vmatpush1.bf16.msra.mxu1 %v6014_v63  ;;  %4507 = vmatpush3.bf16.msra.mxu0 %v6017_v2 }
 0x6a7   :  { %2319 = vmatprep.subr.bf16.mxu1 %v6020_v3  ;;  %4508 = vmatprep.subr.bf16.mxu0 %v6123_v40 }
 0x6aa   :  { %2320 = vmatpush1.bf16.msra.mxu1 %v6024_v4  ;;  %4509 = vmatpush3.bf16.msra.mxu0 %v6127_v45 }
 0x6ab   :  { %2321 = vmatprep.subr.bf16.mxu1 %v6028_v1  ;;  %4510 = vmatprep.subr.bf16.mxu0 %v6131_v27 }
 0x6ae   :  { %2322 = vmatpush1.bf16.msra.mxu1 %v6032_v46  ;;  %4511 = vmatpush3.bf16.msra.mxu0 %v6135_v0 }
 0x6af   :  { %2323 = vmatprep.subr.bf16.mxu1 %v6036_v47  ;;  %4512 = vmatprep.subr.bf16.mxu0 %v6139_v10 }
 0x6b2   :  { %2324 = vmatpush1.bf16.msra.mxu1 %v6040_v12  ;;  %4513 = vmatpush3.bf16.msra.mxu0 %v6143_v25 }
 0x6b3   :  { %2325 = vmatprep.subr.bf16.mxu1 %v6044_v15  ;;  %4834 = vmatprep.subr.bf16.mxu0 %v7117_v21 }
 0x6b6   :  { %2326 = vmatpush1.bf16.msra.mxu1 %v6048_v16 }
 0x6b7   :  { %2327 = vmatprep.subr.bf16.mxu1 %v6051_v18 }
 0x6ba   :  { %2328 = vmatpush1.bf16.msra.mxu1 %v6054_v20 }
 0x6bb   :  { %2329 = vmatprep.subr.bf16.mxu1 %v6057_v37 }
 0x6be   :  { %2330 = vmatpush1.bf16.msra.mxu1 %v6060_v23 }
 0x6bf   :  { %2331 = vmatprep.subr.bf16.mxu1 %v7189_v33 }
 0x6c2   :  { %2332 = vmatpush1.bf16.msra.mxu1 %v7190_v13 }
 0x6c3   :  { %2333 = vmatprep.subr.bf16.mxu1 %v7191_v9 }
 0x6c6   :  { %2334 = vmatpush1.bf16.msra.mxu1 %v6156_v39 }
 0x6c7   :  { %2335 = vmatprep.subr.bf16.mxu1 %v6159_v38 }
 0x6ca   :  { %2336 = vmatpush1.bf16.msra.mxu1 %v6162_v35 }
 0x6cb   :  { %2337 = vmatprep.subr.bf16.mxu1 %v6165_v50 }
 0x6ce   :  { %2338 = vmatpush1.bf16.msra.mxu1 %v6168_v7 }
 0x6cf   :  { %2339 = vmatprep.subr.bf16.mxu1 %v6171_v51 }
 0x6d2   :  { %2340 = vmatpush1.bf16.msra.mxu1 %v6174_v5 }
 0x6d3   :  { %2350 = vmatprep.subr.bf16.mxu1 %v6177_v53 }
 0x75c   :  { %v4488_v54 = vpop.f32.mrb[44].mxu1 }
 0x75d   :  { %v4489_v55 = vpop.f32.mrb[45].mxu1 }
 0x75e   :  { %v4490_v56 = vadd.f32 %v4489_v55, %v4488_v54  ;;  %v4491_v57 = vpop.f32.mrb[46].mxu1  ;;  %v6184_v55 = vld [vmem:[#allocation4 + $0x180] ss:$12 sps:$4 sm:$0xff]  }
 0x75f   :  { %v4492_v17 = vpop.f32.mrb[47].mxu1  ;;  %v7204_v57 = vld [vmem:[#allocation15_spill] sm:$0xff] }
 0x760   :  { %v7205_v17 = vld [vmem:[#allocation16_spill] sm:$0xff] }
 0x768   :  { %v2291_v31 = vpop.f32.mrb[48].mxu1  ;;  %v2210_v41 = vpop.f32.mrb[40].mxu0 }
 0x769   :  { %v2292_v14 = vadd.f32 %v4490_v56, %v2291_v31  ;;  %v2297_v7 = vpack.c.bf16 %v2210_v41, %v2210_v41  ;;  %v4832_v50 = vpop.f32.mrb[49].mxu1  ;;  %v2212_v35 = vpop.f32.mrb[41].mxu0  ;;  %v7203_v56 = vld [vmem:[#allocation14_spill] sm:$0xff]  ;;  %v7206_v31 = vld [vmem:[#allocation17_spill] sm:$0xff] }
 0x76a   :  { %v2298_v51 = vpack.c.bf16 %v2212_v35, %v2212_v35  ;;  %v2294_v38 = vpop.f32.mrb[50].mxu1  ;;  %v2214_v39 = vpop.f32.mrb[42].mxu0  ;;  %v6204_v50 = vld [vmem:[#allocation4 + $0x1b4] ss:$12 sps:$4 sm:$0x3f]   ;;  %v7207_v41 = vld [vmem:[#allocation18_spill] sm:$0xff] }
 0x76b   :  { %v2300_v5 = vadd.bf16 %v2297_v7, %v5714_v42  ;;  %v4833_v9 = vpop.f32.mrb[51].mxu1  ;;  %v2215_v13 = vpop.f32.mrb[43].mxu0  ;;  %v6187_v38 = vld [vmem:[#allocation4 + $0x188] ss:$12 sps:$4 sm:$0xff]   ;;  %v6200_v39 = vld [vmem:[#allocation4 + $0x1a0] ss:$12 sps:$4 sm:$0xff]  }
 0x76c   :  { %v2301_v53 = vadd.bf16 %v2298_v51, %v5717_v43  ;;  %v2299_v9 = vpack.c.bf16 %v2292_v14, %v2292_v14  ;;  %v6190_v13 = vld [vmem:[#allocation4 + $0x19c] ss:$12 sps:$4 sm:$0xff]   ;;  %v7200_v51 = vld [vmem:[#allocation11_spill] sm:$0xff] }
 0x76d   :  { %v2303_v54 = vmax.bf16 %v7115_v52, %v2300_v5  ;;  %v7201_v5 = vld [vmem:[#allocation12_spill] sm:$0xff]  ;;  %v7208_v14 = vld [vmem:[#allocation19_spill] sm:$0xff] }
 0x76e   :  { %v2304_v33 = vmax.bf16 %v7115_v52, %v2301_v53  ;;  %v2302_v35 = vadd.bf16 %v2299_v9, %v5726_v11  ;;  %v7202_v53 = vld [vmem:[#allocation13_spill] sm:$0xff] }
 0x76f   :  { %v7210_v9 = vld [vmem:[#allocation21_spill] sm:$0xff] }
 0x770   :  { %2341 = vmatprep.mubr.bf16.mxu1 %v2304_v33  ;;  %2423 = vmatprep.mubr.bf16.mxu0 %v2304_v33  ;;  %v6197_v33 = vld [vmem:[#allocation4 + $0x198] ss:$12 sps:$4 sm:$0xff]   ;;  %v2305_v7 = vmax.bf16 %v7115_v52, %v2302_v35 }
 0x771   :  { %2342 = vmatmul.mubr.bf16.vlgmr.msra.gmra.mrb[52].mxu1 %v2303_v54  ;;  %2424 = vmatmul.mubr.bf16.vlgmr.msra.gmra.mrb[44].mxu0 %v2303_v54  ;;  %v7209_v54 = vld [vmem:[#allocation20_spill] sm:$0xff] }
 0x772   :  { %2351 = vmatpush1.bf16.msra.mxu1 %v6184_v55  ;;  %4835 = vmatpush3.bf16.msra.mxu0 %v6187_v38 }
 0x773   :  { %2352 = vmatprep.subr.bf16.mxu1 %v6190_v13  ;;  %4836 = vmatprep.subr.bf16.mxu0 %v7117_v21 }
 0x774   :  { %4840 = vmatprep.mubr.msk.bf16.mxu0 %vm5342_vm0, %v7117_v21  ;;  %2382 = vmatprep.mubr.bf16.mxu1 %v7115_v52 }
 0x776   :  { %2353 = vmatpush1.bf16.msra.mxu1 %v6197_v33  ;;  %4837 = vmatpush3.bf16.msra.mxu0 %v6200_v39 }
 0x777   :  { %4266 = vmatprep.subr.msk.bf16.mxu1 %vm603_vm2, %v6204_v50  ;;  %4838 = vmatprep.subr.bf16.mxu0 %v7117_v21 }
 0x77a   :  { %2355 = vmatpush1.bf16.msra.mxu1 %v7131_v58  ;;  %4839 = vmatpush3.bf16.msra.mxu0 %v7132_v49 }
 0x77b   :  { %2483 = vmatprep.subr.bf16.mxu0 %v5960_v6  ;;  %4524 = vmatprep.subr.bf16.mxu1 %v5887_v44 }
 0x77d   :  { %4841 = vmatmul.mubr.msk.bf16.vlgmr.msra.gmra.mrb[48].mxu0 %vm599_vm3, %v2305_v7  ;;  %4267 = vmatmul.mubr.msk.bf16.vlgmr.msra.gmra.mrb[52].mxu1 %vm599_vm3, %v2305_v7 }
 0x77e   :  { %2484 = vmatpush1.bf16.msra.mxu0 %v5966_v19  ;;  %4525 = vmatpush3.bf16.msra.mxu1 %v5969_v48 }
 0x77f   :  { %2485 = vmatprep.subr.bf16.mxu0 %v5972_v8  ;;  %4526 = vmatprep.subr.bf16.mxu1 %v5975_v29 }
 0x782   :  { %2486 = vmatpush1.bf16.msra.mxu0 %v5978_v22  ;;  %4527 = vmatpush3.bf16.msra.mxu1 %v5981_v24 }
 0x783   :  { %2487 = vmatprep.subr.bf16.mxu0 %v5984_v26  ;;  %4528 = vmatprep.subr.bf16.mxu1 %v5987_v28 }
 0x786   :  { %2488 = vmatpush1.bf16.msra.mxu0 %v5990_v30  ;;  %4529 = vmatpush3.bf16.msra.mxu1 %v5993_v32 }
 0x787   :  { %2489 = vmatprep.subr.bf16.mxu0 %v5996_v34  ;;  %4530 = vmatprep.subr.bf16.mxu1 %v5999_v36 }
 0x78a   :  { %2490 = vmatpush1.bf16.msra.mxu0 %v6002_v59  ;;  %4531 = vmatpush3.bf16.msra.mxu1 %v6005_v60 }
 0x78b   :  { %2491 = vmatprep.subr.bf16.mxu0 %v6008_v61  ;;  %4532 = vmatprep.subr.bf16.mxu1 %v6011_v62 }
 0x78e   :  { %2492 = vmatpush1.bf16.msra.mxu0 %v6014_v63  ;;  %4533 = vmatpush3.bf16.msra.mxu1 %v6017_v2 }
 0x78f   :  { %2493 = vmatprep.subr.bf16.mxu0 %v6020_v3  ;;  %4534 = vmatprep.subr.bf16.mxu1 %v6123_v40 }
 0x792   :  { %2494 = vmatpush1.bf16.msra.mxu0 %v6024_v4  ;;  %4535 = vmatpush3.bf16.msra.mxu1 %v6127_v45 }
 0x793   :  { %2495 = vmatprep.subr.bf16.mxu0 %v6028_v1  ;;  %4536 = vmatprep.subr.bf16.mxu1 %v6131_v27 }
 0x796   :  { %2496 = vmatpush1.bf16.msra.mxu0 %v6032_v46  ;;  %4537 = vmatpush3.bf16.msra.mxu1 %v6135_v0 }
 0x797   :  { %2497 = vmatprep.subr.bf16.mxu0 %v6036_v47  ;;  %4538 = vmatprep.subr.bf16.mxu1 %v6139_v10 }
 0x79a   :  { %2498 = vmatpush1.bf16.msra.mxu0 %v6040_v12  ;;  %4539 = vmatpush3.bf16.msra.mxu1 %v6143_v25 }
 0x79b   :  { %2499 = vmatprep.subr.bf16.mxu0 %v6044_v15  ;;  %4844 = vmatprep.subr.bf16.mxu1 %v7117_v21 }
 0x79e   :  { %2500 = vmatpush1.bf16.msra.mxu0 %v6048_v16 }
 0x79f   :  { %2501 = vmatprep.subr.bf16.mxu0 %v6051_v18 }
 0x7a2   :  { %2502 = vmatpush1.bf16.msra.mxu0 %v6054_v20 }
 0x7a3   :  { %2503 = vmatprep.subr.bf16.mxu0 %v6057_v37 }
 0x7a6   :  { %2504 = vmatpush1.bf16.msra.mxu0 %v6060_v23 }
 0x7a7   :  { %2505 = vmatprep.subr.bf16.mxu0 %v7200_v51 }
 0x7aa   :  { %2506 = vmatpush1.bf16.msra.mxu0 %v7201_v5 }
 0x7ab   :  { %2507 = vmatprep.subr.bf16.mxu0 %v7202_v53 }
 0x7ae   :  { %2508 = vmatpush1.bf16.msra.mxu0 %v7203_v56 }
 0x7af   :  { %2509 = vmatprep.subr.bf16.mxu0 %v7204_v57 }
 0x7b2   :  { %2510 = vmatpush1.bf16.msra.mxu0 %v7205_v17 }
 0x7b3   :  { %2511 = vmatprep.subr.bf16.mxu0 %v7206_v31 }
 0x7b6   :  { %2512 = vmatpush1.bf16.msra.mxu0 %v7207_v41 }
 0x7b7   :  { %2513 = vmatprep.subr.bf16.mxu0 %v7208_v14 }
 0x7ba   :  { %2514 = vmatpush1.bf16.msra.mxu0 %v7209_v54 }
 0x7bb   :  { %2524 = vmatprep.subr.bf16.mxu0 %v7210_v9 }
 0x844   :  { %v4514_v35 = vpop.f32.mrb[44].mxu0 }
 0x845   :  { %v4515_v7 = vpop.f32.mrb[45].mxu0 }
 0x846   :  { %v4516_v5 = vadd.f32 %v4515_v7, %v4514_v35  ;;  %v4517_v53 = vpop.f32.mrb[46].mxu0  ;;  %v7224_v35 = vld [vmem:[#allocation18_spill] sm:$0xff]  ;;  %v7225_v7 = vld [vmem:[#allocation19_spill] sm:$0xff] }
 0x847   :  { %v4518_v51 = vpop.f32.mrb[47].mxu0 }
 0x848   :  { %v7214_v51 = vld [vmem:[#allocation29_spill] sm:$0xff] }
 0x850   :  { %v2465_v56 = vpop.f32.mrb[48].mxu0  ;;  %v2384_v23 = vpop.f32.mrb[52].mxu1 }
 0x851   :  { %v2466_v57 = vadd.f32 %v4516_v5, %v2465_v56  ;;  %v2471_v37 = vpack.c.bf16 %v2384_v23, %v2384_v23  ;;  %v4842_v17 = vpop.f32.mrb[49].mxu0  ;;  %v2386_v20 = vpop.f32.mrb[53].mxu1  ;;  %v7213_v23 = vld [vmem:[#allocation28_spill] sm:$0xff]  ;;  %v7215_v5 = vld [vmem:[#allocation9_spill] sm:$0xff]  ;;  %v7216_v56 = vld [vmem:[#allocation10_spill] sm:$0xff] }
 0x852   :  { %v2472_v31 = vpack.c.bf16 %v2386_v20, %v2386_v20  ;;  %v2468_v18 = vpop.f32.mrb[50].mxu0  ;;  %v2388_v41 = vpop.f32.mrb[54].mxu1  ;;  %v7211_v20 = vld [vmem:[#allocation8_spill] sm:$0xff] }
 0x853   :  { %v2474_v14 = vadd.bf16 %v2471_v37, %v5714_v42  ;;  %v4843_v16 = vpop.f32.mrb[51].mxu0  ;;  %v2389_v54 = vpop.f32.mrb[55].mxu1  ;;  %v2473_v18 = vpack.c.bf16 %v2466_v57, %v2466_v57  ;;  %v7212_v37 = vld [vmem:[#allocation27_spill] sm:$0xff]  ;;  %v7218_v17 = vld [vmem:[#allocation12_spill] sm:$0xff]  ;;  %v7220_v41 = vld [vmem:[#allocation14_spill] sm:$0xff] }
 0x854   :  { %v2475_v9 = vadd.bf16 %v2472_v31, %v5717_v43  ;;  %v7217_v57 = vld [vmem:[#allocation11_spill] sm:$0xff]  ;;  %v7219_v31 = vld [vmem:[#allocation13_spill] sm:$0xff]  ;;  %v7222_v54 = vld [vmem:[#allocation16_spill] sm:$0xff] }
 0x855   :  { %v2477_v53 = vmax.bf16 %v7115_v52, %v2474_v14  ;;  %v7221_v14 = vld [vmem:[#allocation15_spill] sm:$0xff] }
 0x856   :  { %v2478_v15 = vmax.bf16 %v7115_v52, %v2475_v9  ;;  %v7223_v9 = vld [vmem:[#allocation17_spill] sm:$0xff] }
 0x858   :  { %2515 = vmatprep.mubr.bf16.mxu0 %v2478_v15  ;;  %2597 = vmatprep.mubr.bf16.mxu1 %v2478_v15  ;;  %v2476_v15 = vadd.bf16 %v2473_v18, %v5726_v11  ;;  %v7227_v18 = vld [vmem:[#allocation21_spill] sm:$0xff] }
 0x859   :  { %2516 = vmatmul.mubr.bf16.vlgmr.msra.gmra.mrb[52].mxu0 %v2477_v53  ;;  %2598 = vmatmul.mubr.bf16.vlgmr.msra.gmra.mrb[56].mxu1 %v2477_v53  ;;  %v7226_v53 = vld [vmem:[#allocation20_spill] sm:$0xff] }
 0x85a   :  { %2525 = vmatpush1.bf16.msra.mxu0 %v6184_v55  ;;  %4845 = vmatpush3.bf16.msra.mxu1 %v6187_v38  ;;  %v2479_v16 = vmax.bf16 %v7115_v52, %v2476_v15 }
 0x85b   :  { %2526 = vmatprep.subr.bf16.mxu0 %v6190_v13  ;;  %4846 = vmatprep.subr.bf16.mxu1 %v7117_v21 }
 0x85c   :  { %4850 = vmatprep.mubr.msk.bf16.mxu1 %vm5342_vm0, %v7117_v21  ;;  %2556 = vmatprep.mubr.bf16.mxu0 %v7115_v52 }
 0x85e   :  { %2527 = vmatpush1.bf16.msra.mxu0 %v6197_v33  ;;  %4847 = vmatpush3.bf16.msra.mxu1 %v6200_v39 }
 0x85f   :  { %4269 = vmatprep.subr.msk.bf16.mxu0 %vm603_vm2, %v6204_v50  ;;  %4848 = vmatprep.subr.bf16.mxu1 %v7117_v21 }
 0x862   :  { %2529 = vmatpush1.bf16.msra.mxu0 %v7131_v58  ;;  %4849 = vmatpush3.bf16.msra.mxu1 %v7132_v49 }
 0x863   :  { %2657 = vmatprep.subr.bf16.mxu1 %v5960_v6  ;;  %4550 = vmatprep.subr.bf16.mxu0 %v5887_v44 }
 0x865   :  { %4851 = vmatmul.mubr.msk.bf16.vlgmr.msra.gmra.mrb[60].mxu1 %vm599_vm3, %v2479_v16  ;;  %4270 = vmatmul.mubr.msk.bf16.vlgmr.msra.gmra.mrb[52].mxu0 %vm599_vm3, %v2479_v16 }
 0x866   :  { %2658 = vmatpush1.bf16.msra.mxu1 %v5966_v19  ;;  %4551 = vmatpush3.bf16.msra.mxu0 %v5969_v48 }
 0x867   :  { %2659 = vmatprep.subr.bf16.mxu1 %v5972_v8  ;;  %4552 = vmatprep.subr.bf16.mxu0 %v5975_v29 }
 0x86a   :  { %2660 = vmatpush1.bf16.msra.mxu1 %v5978_v22  ;;  %4553 = vmatpush3.bf16.msra.mxu0 %v5981_v24 }
 0x86b   :  { %2661 = vmatprep.subr.bf16.mxu1 %v5984_v26  ;;  %4554 = vmatprep.subr.bf16.mxu0 %v5987_v28 }
 0x86e   :  { %2662 = vmatpush1.bf16.msra.mxu1 %v5990_v30  ;;  %4555 = vmatpush3.bf16.msra.mxu0 %v5993_v32 }
 0x86f   :  { %2663 = vmatprep.subr.bf16.mxu1 %v5996_v34  ;;  %4556 = vmatprep.subr.bf16.mxu0 %v5999_v36 }
 0x872   :  { %2664 = vmatpush1.bf16.msra.mxu1 %v6002_v59  ;;  %4557 = vmatpush3.bf16.msra.mxu0 %v6005_v60 }
 0x873   :  { %2665 = vmatprep.subr.bf16.mxu1 %v6008_v61  ;;  %4558 = vmatprep.subr.bf16.mxu0 %v6011_v62 }
 0x876   :  { %2666 = vmatpush1.bf16.msra.mxu1 %v6014_v63  ;;  %4559 = vmatpush3.bf16.msra.mxu0 %v6017_v2 }
 0x877   :  { %2667 = vmatprep.subr.bf16.mxu1 %v6020_v3  ;;  %4560 = vmatprep.subr.bf16.mxu0 %v6123_v40 }
 0x87a   :  { %2668 = vmatpush1.bf16.msra.mxu1 %v6024_v4  ;;  %4561 = vmatpush3.bf16.msra.mxu0 %v6127_v45 }
 0x87b   :  { %2669 = vmatprep.subr.bf16.mxu1 %v6028_v1  ;;  %4562 = vmatprep.subr.bf16.mxu0 %v6131_v27 }
 0x87e   :  { %2670 = vmatpush1.bf16.msra.mxu1 %v6032_v46  ;;  %4563 = vmatpush3.bf16.msra.mxu0 %v6135_v0 }
 0x87f   :  { %2671 = vmatprep.subr.bf16.mxu1 %v6036_v47  ;;  %4564 = vmatprep.subr.bf16.mxu0 %v6139_v10 }
 0x882   :  { %2672 = vmatpush1.bf16.msra.mxu1 %v6040_v12  ;;  %4565 = vmatpush3.bf16.msra.mxu0 %v6143_v25 }
 0x883   :  { %2673 = vmatprep.subr.bf16.mxu1 %v7211_v20  ;;  %4854 = vmatprep.subr.bf16.mxu0 %v7117_v21 }
 0x886   :  { %2674 = vmatpush1.bf16.msra.mxu1 %v7212_v37 }
 0x887   :  { %2675 = vmatprep.subr.bf16.mxu1 %v7213_v23 }
 0x88a   :  { %2676 = vmatpush1.bf16.msra.mxu1 %v7214_v51 }
 0x88b   :  { %2677 = vmatprep.subr.bf16.mxu1 %v7215_v5 }
 0x88e   :  { %2678 = vmatpush1.bf16.msra.mxu1 %v7216_v56 }
 0x88f   :  { %2679 = vmatprep.subr.bf16.mxu1 %v7217_v57 }
 0x892   :  { %2680 = vmatpush1.bf16.msra.mxu1 %v7218_v17 }
 0x893   :  { %2681 = vmatprep.subr.bf16.mxu1 %v7219_v31 }
 0x896   :  { %2682 = vmatpush1.bf16.msra.mxu1 %v7220_v41 }
 0x897   :  { %2683 = vmatprep.subr.bf16.mxu1 %v7221_v14 }
 0x89a   :  { %2684 = vmatpush1.bf16.msra.mxu1 %v7222_v54 }
 0x89b   :  { %2685 = vmatprep.subr.bf16.mxu1 %v7223_v9 }
 0x89e   :  { %2686 = vmatpush1.bf16.msra.mxu1 %v7224_v35 }
 0x89f   :  { %2687 = vmatprep.subr.bf16.mxu1 %v7225_v7 }
 0x8a2   :  { %2688 = vmatpush1.bf16.msra.mxu1 %v7226_v53 }
 0x8a3   :  { %2698 = vmatprep.subr.bf16.mxu1 %v7227_v18 }
 0x92c   :  { %v4540_v15 = vpop.f32.mrb[56].mxu1 }
 0x92d   :  { %v4541_v16 = vpop.f32.mrb[57].mxu1 }
 0x92e   :  { %v4542_v17 = vadd.f32 %v4541_v16, %v4540_v15  ;;  %v4543_v31 = vpop.f32.mrb[58].mxu1  ;;  %v7242_v15 = vld [vmem:[#allocation19_spill] sm:$0xff]  ;;  %v7243_v16 = vld [vmem:[#allocation20_spill] sm:$0xff] }
 0x92f   :  { %v4544_v57 = vpop.f32.mrb[59].mxu1 }
 0x930   :  { %v7232_v57 = vld [vmem:[#allocation9_spill] sm:$0xff] }
 0x938   :  { %v2639_v41 = vpop.f32.mrb[60].mxu1  ;;  %v2558_v56 = vpop.f32.mrb[52].mxu0 }
 0x939   :  { %v2640_v14 = vadd.f32 %v4542_v17, %v2639_v41  ;;  %v2645_v5 = vpack.c.bf16 %v2558_v56, %v2558_v56  ;;  %v4852_v54 = vpop.f32.mrb[61].mxu1  ;;  %v2560_v51 = vpop.f32.mrb[53].mxu0  ;;  %v7231_v56 = vld [vmem:[#allocation29_spill] sm:$0xff]  ;;  %v7233_v17 = vld [vmem:[#allocation10_spill] sm:$0xff]  ;;  %v7234_v41 = vld [vmem:[#allocation11_spill] sm:$0xff] }
 0x93a   :  { %v2646_v9 = vpack.c.bf16 %v2560_v51, %v2560_v51  ;;  %v2642_v23 = vpop.f32.mrb[62].mxu1  ;;  %v2562_v35 = vpop.f32.mrb[54].mxu0  ;;  %v7229_v51 = vld [vmem:[#allocation27_spill] sm:$0xff]  ;;  %v7236_v54 = vld [vmem:[#allocation13_spill] sm:$0xff] }
 0x93b   :  { %v2648_v7 = vadd.bf16 %v2645_v5, %v5714_v42  ;;  %v4853_v37 = vpop.f32.mrb[63].mxu1  ;;  %v2563_v53 = vpop.f32.mrb[55].mxu0  ;;  %v2647_v23 = vpack.c.bf16 %v2640_v14, %v2640_v14  ;;  %v7230_v5 = vld [vmem:[#allocation28_spill] sm:$0xff]  ;;  %v7238_v35 = vld [vmem:[#allocation15_spill] sm:$0xff] }
 0x93c   :  { %v2649_v18 = vadd.bf16 %v2646_v9, %v5717_v43  ;;  %v7235_v14 = vld [vmem:[#allocation12_spill] sm:$0xff]  ;;  %v7237_v9 = vld [vmem:[#allocation14_spill] sm:$0xff]  ;;  %v7240_v53 = vld [vmem:[#allocation17_spill] sm:$0xff] }
 0x93d   :  { %v2651_v31 = vmax.bf16 %v7115_v52, %v2648_v7  ;;  %v7239_v7 = vld [vmem:[#allocation16_spill] sm:$0xff] }
 0x93e   :  { %v2652_v20 = vmax.bf16 %v7115_v52, %v2649_v18  ;;  %v7241_v18 = vld [vmem:[#allocation18_spill] sm:$0xff] }
 0x940   :  { %2689 = vmatprep.mubr.bf16.mxu1 %v2652_v20  ;;  %2771 = vmatprep.mubr.bf16.mxu0 %v2652_v20  ;;  %v2650_v20 = vadd.bf16 %v2647_v23, %v5726_v11 }
 0x941   :  { %2690 = vmatmul.mubr.bf16.vlgmr.msra.gmra.mrb[64].mxu1 %v2651_v31  ;;  %2772 = vmatmul.mubr.bf16.vlgmr.msra.gmra.mrb[56].mxu0 %v2651_v31  ;;  %v7244_v31 = vld [vmem:[#allocation21_spill] sm:$0xff] }
 0x942   :  { %2699 = vmatpush1.bf16.msra.mxu1 %v6184_v55  ;;  %4855 = vmatpush3.bf16.msra.mxu0 %v6187_v38  ;;  %v2653_v37 = vmax.bf16 %v7115_v52, %v2650_v20 }
 0x943   :  { %2700 = vmatprep.subr.bf16.mxu1 %v6190_v13  ;;  %4856 = vmatprep.subr.bf16.mxu0 %v7117_v21 }
 0x944   :  { %4860 = vmatprep.mubr.msk.bf16.mxu0 %vm5342_vm0, %v7117_v21  ;;  %2730 = vmatprep.mubr.bf16.mxu1 %v7115_v52 }
 0x946   :  { %2701 = vmatpush1.bf16.msra.mxu1 %v6197_v33  ;;  %4857 = vmatpush3.bf16.msra.mxu0 %v6200_v39 }
 0x947   :  { %4272 = vmatprep.subr.msk.bf16.mxu1 %vm603_vm2, %v6204_v50  ;;  %4858 = vmatprep.subr.bf16.mxu0 %v7117_v21 }
 0x94a   :  { %2703 = vmatpush1.bf16.msra.mxu1 %v7131_v58  ;;  %4859 = vmatpush3.bf16.msra.mxu0 %v7132_v49 }
 0x94b   :  { %2831 = vmatprep.subr.bf16.mxu0 %v5960_v6  ;;  %4576 = vmatprep.subr.bf16.mxu1 %v5887_v44  ;;  %v7228_v44 = vld [vmem:[#allocation8_spill] sm:$0xff] }
 0x94d   :  { %4861 = vmatmul.mubr.msk.bf16.vlgmr.msra.gmra.mrb[60].mxu0 %vm599_vm3, %v2653_v37  ;;  %4273 = vmatmul.mubr.msk.bf16.vlgmr.msra.gmra.mrb[64].mxu1 %vm599_vm3, %v2653_v37 }
 0x94e   :  { %2832 = vmatpush1.bf16.msra.mxu0 %v5966_v19  ;;  %4577 = vmatpush3.bf16.msra.mxu1 %v5969_v48 }
 0x94f   :  { %2833 = vmatprep.subr.bf16.mxu0 %v5972_v8  ;;  %4578 = vmatprep.subr.bf16.mxu1 %v5975_v29 }
 0x952   :  { %2834 = vmatpush1.bf16.msra.mxu0 %v5978_v22  ;;  %4579 = vmatpush3.bf16.msra.mxu1 %v5981_v24 }
 0x953   :  { %2835 = vmatprep.subr.bf16.mxu0 %v5984_v26  ;;  %4580 = vmatprep.subr.bf16.mxu1 %v5987_v28 }
 0x956   :  { %2836 = vmatpush1.bf16.msra.mxu0 %v5990_v30  ;;  %4581 = vmatpush3.bf16.msra.mxu1 %v5993_v32 }
 0x957   :  { %2837 = vmatprep.subr.bf16.mxu0 %v5996_v34  ;;  %4582 = vmatprep.subr.bf16.mxu1 %v5999_v36 }
 0x95a   :  { %2838 = vmatpush1.bf16.msra.mxu0 %v6002_v59  ;;  %4583 = vmatpush3.bf16.msra.mxu1 %v6005_v60 }
 0x95b   :  { %2839 = vmatprep.subr.bf16.mxu0 %v6008_v61  ;;  %4584 = vmatprep.subr.bf16.mxu1 %v6011_v62 }
 0x95e   :  { %2840 = vmatpush1.bf16.msra.mxu0 %v6014_v63  ;;  %4585 = vmatpush3.bf16.msra.mxu1 %v6017_v2 }
 0x95f   :  { %2841 = vmatprep.subr.bf16.mxu0 %v6020_v3  ;;  %4586 = vmatprep.subr.bf16.mxu1 %v6123_v40 }
 0x962   :  { %2842 = vmatpush1.bf16.msra.mxu0 %v6024_v4  ;;  %4587 = vmatpush3.bf16.msra.mxu1 %v6127_v45 }
 0x963   :  { %2843 = vmatprep.subr.bf16.mxu0 %v6028_v1  ;;  %4588 = vmatprep.subr.bf16.mxu1 %v6131_v27 }
 0x966   :  { %2844 = vmatpush1.bf16.msra.mxu0 %v6032_v46  ;;  %4589 = vmatpush3.bf16.msra.mxu1 %v6135_v0 }
 0x967   :  { %2845 = vmatprep.subr.bf16.mxu0 %v6036_v47  ;;  %4590 = vmatprep.subr.bf16.mxu1 %v6139_v10 }
 0x96a   :  { %2846 = vmatpush1.bf16.msra.mxu0 %v6040_v12  ;;  %4591 = vmatpush3.bf16.msra.mxu1 %v6143_v25 }
 0x96b   :  { %2847 = vmatprep.subr.bf16.mxu0 %v7228_v44  ;;  %4864 = vmatprep.subr.bf16.mxu1 %v7117_v21 }
 0x96e   :  { %2848 = vmatpush1.bf16.msra.mxu0 %v7229_v51 }
 0x96f   :  { %2849 = vmatprep.subr.bf16.mxu0 %v7230_v5 }
 0x972   :  { %2850 = vmatpush1.bf16.msra.mxu0 %v7231_v56 }
 0x973   :  { %2851 = vmatprep.subr.bf16.mxu0 %v7232_v57 }
 0x976   :  { %2852 = vmatpush1.bf16.msra.mxu0 %v7233_v17 }
 0x977   :  { %2853 = vmatprep.subr.bf16.mxu0 %v7234_v41 }
 0x97a   :  { %2854 = vmatpush1.bf16.msra.mxu0 %v7235_v14 }
 0x97b   :  { %2855 = vmatprep.subr.bf16.mxu0 %v7236_v54 }
 0x97e   :  { %2856 = vmatpush1.bf16.msra.mxu0 %v7237_v9 }
 0x97f   :  { %2857 = vmatprep.subr.bf16.mxu0 %v7238_v35 }
 0x982   :  { %2858 = vmatpush1.bf16.msra.mxu0 %v7239_v7 }
 0x983   :  { %2859 = vmatprep.subr.bf16.mxu0 %v7240_v53 }
 0x986   :  { %2860 = vmatpush1.bf16.msra.mxu0 %v7241_v18 }
 0x987   :  { %2861 = vmatprep.subr.bf16.mxu0 %v7242_v15 }
 0x98a   :  { %2862 = vmatpush1.bf16.msra.mxu0 %v7243_v16 }
 0x98b   :  { %2872 = vmatprep.subr.bf16.mxu0 %v7244_v31 }
 0xa14   :  { %v4566_v23 = vpop.f32.mrb[56].mxu0 }
 0xa15   :  { %v4567_v20 = vpop.f32.mrb[57].mxu0 }
 0xa16   :  { %v4568_v37 = vadd.f32 %v4567_v20, %v4566_v23  ;;  %v4569_v54 = vpop.f32.mrb[58].mxu0 }
 0xa17   :  { %v4570_v14 = vpop.f32.mrb[59].mxu0 }
 0xa20   :  { %v2813_v9 = vpop.f32.mrb[60].mxu0  ;;  %v2732_v41 = vpop.f32.mrb[64].mxu1 }
 0xa21   :  { %v2814_v35 = vadd.f32 %v4568_v37, %v2813_v9  ;;  %v2819_v17 = vpack.c.bf16 %v2732_v41, %v2732_v41  ;;  %v4862_v7 = vpop.f32.mrb[61].mxu0  ;;  %v2734_v57 = vpop.f32.mrb[65].mxu1  ;;  %v6502_v37 = vld [vmem:[#allocation4 + $0x4] ss:$12 sps:$4 sm:$0xff]  }
 0xa22   :  { %v2820_v53 = vpack.c.bf16 %v2734_v57, %v2734_v57  ;;  %v2816_v56 = vpop.f32.mrb[62].mxu0  ;;  %v2736_v18 = vpop.f32.mrb[66].mxu1  ;;  %v6429_v57 = vld [vmem:[#allocation4 + $0xc8] ss:$12 sps:$4 sm:$0xff]  }
 0xa23   :  { %v2822_v15 = vadd.bf16 %v2819_v17, %v5714_v42  ;;  %v4863_v5 = vpop.f32.mrb[63].mxu0  ;;  %v2737_v16 = vpop.f32.mrb[67].mxu1  ;;  %v2821_v56 = vpack.c.bf16 %v2814_v35, %v2814_v35 }
 0xa24   :  { %v2823_v31 = vadd.bf16 %v2820_v53, %v5717_v43 }
 0xa25   :  { %v2825_v54 = vmax.bf16 %v7115_v52, %v2822_v15 }
 0xa26   :  { %v2826_v51 = vmax.bf16 %v7115_v52, %v2823_v31 }
 0xa28   :  { %2863 = vmatprep.mubr.bf16.mxu0 %v2826_v51  ;;  %2945 = vmatprep.mubr.bf16.mxu1 %v2826_v51  ;;  %v2824_v51 = vadd.bf16 %v2821_v56, %v5726_v11  ;;  %v6511_v56 = vld [vmem:[#allocation4 + $0x8] ss:$12 sps:$4 sm:$0xff]  }
 0xa29   :  { %2864 = vmatmul.mubr.bf16.vlgmr.msra.gmra.mrb[64].mxu0 %v2825_v54  ;;  %2946 = vmatmul.mubr.bf16.vlgmr.msra.gmra.mrb[68].mxu1 %v2825_v54  ;;  %v6508_v54 = vld [vmem:[#allocation4] ss:$12 sps:$4 sm:$0xff]  }
 0xa2a   :  { %2873 = vmatpush1.bf16.msra.mxu0 %v6184_v55  ;;  %4865 = vmatpush3.bf16.msra.mxu1 %v6187_v38  ;;  %v2827_v5 = vmax.bf16 %v7115_v52, %v2824_v51  ;;  %v6514_v51 = vld [vmem:[#allocation4 + $0x1c] ss:$12 sps:$4 sm:$0xff]  }
 0xa2b   :  { %2874 = vmatprep.subr.bf16.mxu0 %v6190_v13  ;;  %4866 = vmatprep.subr.bf16.mxu1 %v7117_v21 }
 0xa2c   :  { %4870 = vmatprep.mubr.msk.bf16.mxu1 %vm5342_vm0, %v7117_v21  ;;  %2904 = vmatprep.mubr.bf16.mxu0 %v7115_v52 }
 0xa2e   :  { %2875 = vmatpush1.bf16.msra.mxu0 %v6197_v33  ;;  %4867 = vmatpush3.bf16.msra.mxu1 %v6200_v39 }
 0xa2f   :  { %4275 = vmatprep.subr.msk.bf16.mxu0 %vm603_vm2, %v6204_v50  ;;  %4868 = vmatprep.subr.bf16.mxu1 %v7117_v21 }
 0xa32   :  { %2877 = vmatpush1.bf16.msra.mxu0 %v7131_v58  ;;  %4869 = vmatpush3.bf16.msra.mxu1 %v7132_v49 }
 0xa33   :  { %3005 = vmatprep.subr.bf16.mxu1 %v5960_v6  ;;  %4602 = vmatprep.subr.bf16.mxu0 %v6429_v57  ;;  %v7245_v6 = vld [vmem:[#allocation27_spill] sm:$0xff] }
 0xa35   :  { %4871 = vmatmul.mubr.msk.bf16.vlgmr.msra.gmra.mrb[72].mxu1 %vm599_vm3, %v2827_v5  ;;  %4276 = vmatmul.mubr.msk.bf16.vlgmr.msra.gmra.mrb[64].mxu0 %vm599_vm3, %v2827_v5  ;;  %v6517_v5 = vld [vmem:[#allocation4 + $0xe0] ss:$12 sps:$4 sm:$0xff]  }
 0xa36   :  { %3006 = vmatpush1.bf16.msra.mxu1 %v5966_v19  ;;  %4603 = vmatpush3.bf16.msra.mxu0 %v5969_v48  ;;  %v7246_v19 = vld [vmem:[#allocation28_spill] sm:$0xff]  ;;  %v7247_v48 = vld [vmem:[#allocation29_spill] sm:$0xff] }
 0xa37   :  { %3007 = vmatprep.subr.bf16.mxu1 %v5972_v8  ;;  %4604 = vmatprep.subr.bf16.mxu0 %v5975_v29  ;;  %v7248_v8 = vld [vmem:[#allocation9_spill] sm:$0xff]  ;;  %v7249_v29 = vld [vmem:[#allocation10_spill] sm:$0xff] }
 0xa3a   :  { %3008 = vmatpush1.bf16.msra.mxu1 %v5978_v22  ;;  %4605 = vmatpush3.bf16.msra.mxu0 %v5981_v24  ;;  %v7250_v22 = vld [vmem:[#allocation11_spill] sm:$0xff]  ;;  %v7251_v24 = vld [vmem:[#allocation12_spill] sm:$0xff] }
 0xa3b   :  { %3009 = vmatprep.subr.bf16.mxu1 %v5984_v26  ;;  %4606 = vmatprep.subr.bf16.mxu0 %v5987_v28  ;;  %v7252_v26 = vld [vmem:[#allocation13_spill] sm:$0xff]  ;;  %v7253_v28 = vld [vmem:[#allocation14_spill] sm:$0xff] }
 0xa3e   :  { %3010 = vmatpush1.bf16.msra.mxu1 %v5990_v30  ;;  %4607 = vmatpush3.bf16.msra.mxu0 %v5993_v32  ;;  %v7254_v30 = vld [vmem:[#allocation15_spill] sm:$0xff]  ;;  %v7255_v32 = vld [vmem:[#allocation16_spill] sm:$0xff] }
 0xa3f   :  { %3011 = vmatprep.subr.bf16.mxu1 %v5996_v34  ;;  %4608 = vmatprep.subr.bf16.mxu0 %v5999_v36  ;;  %v7256_v34 = vld [vmem:[#allocation17_spill] sm:$0xff]  ;;  %v7257_v36 = vld [vmem:[#allocation18_spill] sm:$0xff] }
 0xa42   :  { %3012 = vmatpush1.bf16.msra.mxu1 %v6002_v59  ;;  %4609 = vmatpush3.bf16.msra.mxu0 %v6005_v60  ;;  %v7258_v59 = vld [vmem:[#allocation19_spill] sm:$0xff]  ;;  %v7259_v60 = vld [vmem:[#allocation20_spill] sm:$0xff] }
 0xa43   :  { %3013 = vmatprep.subr.bf16.mxu1 %v6008_v61  ;;  %4610 = vmatprep.subr.bf16.mxu0 %v6011_v62  ;;  %v7260_v61 = vld [vmem:[#allocation21_spill] sm:$0xff] }
 0xa46   :  { %3014 = vmatpush1.bf16.msra.mxu1 %v6014_v63  ;;  %4611 = vmatpush3.bf16.msra.mxu0 %v6017_v2 }
 0xa47   :  { %3015 = vmatprep.subr.bf16.mxu1 %v6020_v3  ;;  %4612 = vmatprep.subr.bf16.mxu0 %v6123_v40 }
 0xa4a   :  { %3016 = vmatpush1.bf16.msra.mxu1 %v6024_v4  ;;  %4613 = vmatpush3.bf16.msra.mxu0 %v6127_v45 }
 0xa4b   :  { %3017 = vmatprep.subr.bf16.mxu1 %v6028_v1  ;;  %4614 = vmatprep.subr.bf16.mxu0 %v6131_v27 }
 0xa4e   :  { %3018 = vmatpush1.bf16.msra.mxu1 %v6032_v46  ;;  %4615 = vmatpush3.bf16.msra.mxu0 %v6135_v0 }
 0xa4f   :  { %3019 = vmatprep.subr.bf16.mxu1 %v6036_v47  ;;  %4616 = vmatprep.subr.bf16.mxu0 %v6139_v10 }
 0xa52   :  { %3020 = vmatpush1.bf16.msra.mxu1 %v6040_v12  ;;  %4617 = vmatpush3.bf16.msra.mxu0 %v6143_v25 }
 0xa53   :  { %3021 = vmatprep.subr.bf16.mxu1 %v7228_v44  ;;  %4874 = vmatprep.subr.bf16.mxu0 %v7117_v21 }
 0xa56   :  { %3022 = vmatpush1.bf16.msra.mxu1 %v7245_v6  ;;  %v6520_v6 = vld [vmem:[#allocation4 + $0x18] ss:$12 sps:$4 sm:$0xff]  }
 0xa57   :  { %3023 = vmatprep.subr.bf16.mxu1 %v7246_v19  ;;  %v6523_v19 = vld [vmem:[#allocation4 + $0x20] ss:$12 sps:$4 sm:$0xff]  }
 0xa5a   :  { %3024 = vmatpush1.bf16.msra.mxu1 %v7247_v48  ;;  %v6526_v48 = vld [vmem:[#allocation4 + $0x34] ss:$12 sps:$4 sm:$0xff]  }
 0xa5b   :  { %3025 = vmatprep.subr.bf16.mxu1 %v7248_v8  ;;  %v6529_v8 = vld [vmem:[#allocation4 + $0xf8] ss:$12 sps:$4 sm:$0xff]  }
 0xa5e   :  { %3026 = vmatpush1.bf16.msra.mxu1 %v7249_v29  ;;  %v6532_v29 = vld [vmem:[#allocation4 + $0x30] ss:$12 sps:$4 sm:$0xff]  }
 0xa5f   :  { %3027 = vmatprep.subr.bf16.mxu1 %v7250_v22  ;;  %v6535_v22 = vld [vmem:[#allocation4 + $0x38] ss:$12 sps:$4 sm:$0xff]  }
 0xa62   :  { %3028 = vmatpush1.bf16.msra.mxu1 %v7251_v24  ;;  %v6538_v24 = vld [vmem:[#allocation4 + $0x4c] ss:$12 sps:$4 sm:$0xff]  }
 0xa63   :  { %3029 = vmatprep.subr.bf16.mxu1 %v7252_v26  ;;  %v6541_v26 = vld [vmem:[#allocation4 + $0x110] ss:$12 sps:$4 sm:$0xff]  }
 0xa66   :  { %3030 = vmatpush1.bf16.msra.mxu1 %v7253_v28 }
 0xa67   :  { %3031 = vmatprep.subr.bf16.mxu1 %v7254_v30 }
 0xa6a   :  { %3032 = vmatpush1.bf16.msra.mxu1 %v7255_v32 }
 0xa6b   :  { %3033 = vmatprep.subr.bf16.mxu1 %v7256_v34 }
 0xa6e   :  { %3034 = vmatpush1.bf16.msra.mxu1 %v7257_v36 }
 0xa6f   :  { %3035 = vmatprep.subr.bf16.mxu1 %v7258_v59 }
 0xa72   :  { %3036 = vmatpush1.bf16.msra.mxu1 %v7259_v60 }
 0xa73   :  { %3046 = vmatprep.subr.bf16.mxu1 %v7260_v61 }
 0xafc   :  { %v4592_v62 = vpop.f32.mrb[68].mxu1 }
 0xafd   :  { %v4593_v63 = vpop.f32.mrb[69].mxu1 }
 0xafe   :  { %v4594_v2 = vadd.f32 %v4593_v63, %v4592_v62  ;;  %v4595_v3 = vpop.f32.mrb[70].mxu1  ;;  %v6544_v62 = vld [vmem:[#allocation4 + $0x48] ss:$12 sps:$4 sm:$0xff]   ;;  %v6547_v63 = vld [vmem:[#allocation4 + $0x50] ss:$12 sps:$4 sm:$0xff]  }
 0xaff   :  { %v4596_v4 = vpop.f32.mrb[71].mxu1  ;;  %v6553_v3 = vld [vmem:[#allocation4 + $0x128] ss:$12 sps:$4 sm:$0xff]  }
 0xb00   :  { %v6556_v4 = vld [vmem:[#allocation4 + $0x60] ss:$12 sps:$4 sm:$0xff]  }
 0xb08   :  { %v2987_v1 = vpop.f32.mrb[72].mxu1  ;;  %v2906_v46 = vpop.f32.mrb[64].mxu0 }
 0xb09   :  { %v2988_v47 = vadd.f32 %v4594_v2, %v2987_v1  ;;  %v2993_v12 = vpack.c.bf16 %v2906_v46, %v2906_v46  ;;  %v4872_v44 = vpop.f32.mrb[73].mxu1  ;;  %v2908_v17 = vpop.f32.mrb[65].mxu0  ;;  %v6550_v2 = vld [vmem:[#allocation4 + $0x64] ss:$12 sps:$4 sm:$0xff]   ;;  %v6559_v1 = vld [vmem:[#allocation4 + $0x68] ss:$12 sps:$4 sm:$0xff]  }
 0xb0a   :  { %v2994_v41 = vpack.c.bf16 %v2908_v17, %v2908_v17  ;;  %v2990_v14 = vpop.f32.mrb[74].mxu1  ;;  %v2910_v9 = vpop.f32.mrb[66].mxu0  ;;  %v6562_v46 = vld [vmem:[#allocation4 + $0x7c] ss:$12 sps:$4 sm:$0xff]   ;;  %v6578_v17 = vld [vmem:[#allocation4 + $0xac] ss:$12 sps:$4 sm:$0xff]  }
 0xb0b   :  { %v2996_v35 = vadd.bf16 %v2993_v12, %v5714_v42  ;;  %v4873_v7 = vpop.f32.mrb[75].mxu1  ;;  %v2911_v53 = vpop.f32.mrb[67].mxu0  ;;  %v2995_v31 = vpack.c.bf16 %v2988_v47, %v2988_v47  ;;  %v6566_v47 = vld [vmem:[#allocation4 + $0x78] ss:$12 sps:$4 sm:$0xff]   ;;  %v6570_v12 = vld [vmem:[#allocation4 + $0x94] ss:$12 sps:$4 sm:$0xff]  }
 0xb0c   :  { %v2997_v18 = vadd.bf16 %v2994_v41, %v5717_v43  ;;  %v6574_v44 = vld [vmem:[#allocation4 + $0x90] ss:$12 sps:$4 sm:$0xff]   ;;  %v6599_v41 = vld [vmem:[#allocation4 + $0xf4] ss:$12 sps:$4 sm:$0xff]   ;;  %v6605_v14 = vld [vmem:[#allocation4 + $0x10c] ss:$12 sps:$4 sm:$0xff]  }
 0xb0d   :  { %v2999_v16 = vmax.bf16 %v7115_v52, %v2996_v35  ;;  %v2998_v23 = vadd.bf16 %v2995_v31, %v5726_v11  ;;  %7265 = vst [vmem:[#allocation26_spill] sm:$0xff] %v6599_v41  ;;  %7267 = vst [vmem:[#allocation27_spill] sm:$0xff] %v6605_v14  ;;  %v6608_v9 = vld [vmem:[#allocation4 + $0x108] ss:$12 sps:$4 sm:$0xff]   ;;  %v6611_v35 = vld [vmem:[#allocation4 + $0x124] ss:$12 sps:$4 sm:$0xff]  }
 0xb0e   :  { %v3000_v15 = vmax.bf16 %v7115_v52, %v2997_v18  ;;  %7268 = vst [vmem:[#allocation28_spill] sm:$0xff] %v6608_v9  ;;  %7269 = vst [vmem:[#allocation29_spill] sm:$0xff] %v6611_v35 }
 0xb0f   :  { %v3001_v20 = vmax.bf16 %v7115_v52, %v2998_v23 }
 0xb10   :  { %3037 = vmatprep.mubr.bf16.mxu1 %v3000_v15  ;;  %3119 = vmatprep.mubr.bf16.mxu0 %v3000_v15 }
 0xb11   :  { %3038 = vmatmul.mubr.bf16.vlgmr.msra.gmra.mrb[76].mxu1 %v2999_v16  ;;  %3120 = vmatmul.mubr.bf16.vlgmr.msra.gmra.mrb[68].mxu0 %v2999_v16 }
 0xb12   :  { %3047 = vmatpush1.bf16.msra.mxu1 %v6184_v55  ;;  %4875 = vmatpush3.bf16.msra.mxu0 %v6187_v38 }
 0xb13   :  { %3048 = vmatprep.subr.bf16.mxu1 %v6190_v13  ;;  %4876 = vmatprep.subr.bf16.mxu0 %v7117_v21 }
 0xb14   :  { %4880 = vmatprep.mubr.msk.bf16.mxu0 %vm5342_vm0, %v7117_v21  ;;  %3078 = vmatprep.mubr.bf16.mxu1 %v7115_v52 }
 0xb16   :  { %3049 = vmatpush1.bf16.msra.mxu1 %v6197_v33  ;;  %4877 = vmatpush3.bf16.msra.mxu0 %v6200_v39 }
 0xb17   :  { %4278 = vmatprep.subr.msk.bf16.mxu1 %vm603_vm2, %v6204_v50  ;;  %4878 = vmatprep.subr.bf16.mxu0 %v7117_v21 }
 0xb1a   :  { %3051 = vmatpush1.bf16.msra.mxu1 %v7131_v58  ;;  %4879 = vmatpush3.bf16.msra.mxu0 %v7132_v49 }
 0xb1b   :  { %3179 = vmatprep.subr.bf16.mxu0 %v6502_v37  ;;  %4628 = vmatprep.subr.bf16.mxu1 %v6429_v57 }
 0xb1d   :  { %4881 = vmatmul.mubr.msk.bf16.vlgmr.msra.gmra.mrb[72].mxu0 %vm599_vm3, %v3001_v20  ;;  %4279 = vmatmul.mubr.msk.bf16.vlgmr.msra.gmra.mrb[76].mxu1 %vm599_vm3, %v3001_v20 }
 0xb1e   :  { %3180 = vmatpush1.bf16.msra.mxu0 %v6508_v54  ;;  %4629 = vmatpush3.bf16.msra.mxu1 %v6511_v56 }
 0xb1f   :  { %3181 = vmatprep.subr.bf16.mxu0 %v6514_v51  ;;  %4630 = vmatprep.subr.bf16.mxu1 %v6517_v5 }
 0xb22   :  { %3182 = vmatpush1.bf16.msra.mxu0 %v6520_v6  ;;  %4631 = vmatpush3.bf16.msra.mxu1 %v6523_v19 }
 0xb23   :  { %3183 = vmatprep.subr.bf16.mxu0 %v6526_v48  ;;  %4632 = vmatprep.subr.bf16.mxu1 %v6529_v8 }
 0xb26   :  { %3184 = vmatpush1.bf16.msra.mxu0 %v6532_v29  ;;  %4633 = vmatpush3.bf16.msra.mxu1 %v6535_v22 }
 0xb27   :  { %3185 = vmatprep.subr.bf16.mxu0 %v6538_v24  ;;  %4634 = vmatprep.subr.bf16.mxu1 %v6541_v26 }
 0xb2a   :  { %3186 = vmatpush1.bf16.msra.mxu0 %v6544_v62  ;;  %4635 = vmatpush3.bf16.msra.mxu1 %v6547_v63 }
 0xb2b   :  { %3187 = vmatprep.subr.bf16.mxu0 %v6550_v2  ;;  %4636 = vmatprep.subr.bf16.mxu1 %v6553_v3 }
 0xb2e   :  { %3188 = vmatpush1.bf16.msra.mxu0 %v6556_v4  ;;  %4637 = vmatpush3.bf16.msra.mxu1 %v6559_v1 }
 0xb2f   :  { %3189 = vmatprep.subr.bf16.mxu0 %v6562_v46  ;;  %4638 = vmatprep.subr.bf16.mxu1 %v6123_v40  ;;  %v6582_v40 = vld [vmem:[#allocation4 + $0xa8] ss:$12 sps:$4 sm:$0xff]  }
 0xb32   :  { %3190 = vmatpush1.bf16.msra.mxu0 %v6566_v47  ;;  %4639 = vmatpush3.bf16.msra.mxu1 %v6127_v45  ;;  %v6586_v45 = vld [vmem:[#allocation4 + $0xc4] ss:$12 sps:$4 sm:$0xff]  }
 0xb33   :  { %3191 = vmatprep.subr.bf16.mxu0 %v6570_v12  ;;  %4640 = vmatprep.subr.bf16.mxu1 %v6131_v27  ;;  %7261 = vst [vmem:[#allocation22_spill] sm:$0xff] %v6586_v45  ;;  %v6590_v27 = vld [vmem:[#allocation4 + $0xc0] ss:$12 sps:$4 sm:$0xff]  }
 0xb34   :  { %7262 = vst [vmem:[#allocation23_spill] sm:$0xff] %v6590_v27 }
 0xb36   :  { %3192 = vmatpush1.bf16.msra.mxu0 %v6574_v44  ;;  %4641 = vmatpush3.bf16.msra.mxu1 %v6135_v0  ;;  %v6593_v0 = vld [vmem:[#allocation4 + $0xdc] ss:$12 sps:$4 sm:$0xff]  }
 0xb37   :  { %3193 = vmatprep.subr.bf16.mxu0 %v6578_v17  ;;  %4642 = vmatprep.subr.bf16.mxu1 %v6139_v10  ;;  %7263 = vst [vmem:[#allocation24_spill] sm:$0xff] %v6593_v0  ;;  %v6596_v10 = vld [vmem:[#allocation4 + $0xd8] ss:$12 sps:$4 sm:$0xff]  }
 0xb38   :  { %7264 = vst [vmem:[#allocation25_spill] sm:$0xff] %v6596_v10 }
 0xb3a   :  { %3194 = vmatpush1.bf16.msra.mxu0 %v6582_v40  ;;  %4643 = vmatpush3.bf16.msra.mxu1 %v6143_v25  ;;  %v6602_v25 = vld [vmem:[#allocation4 + $0xf0] ss:$12 sps:$4 sm:$0xff]  }
 0xb3b   :  { %3195 = vmatprep.subr.bf16.mxu0 %v6586_v45  ;;  %4884 = vmatprep.subr.bf16.mxu1 %v7117_v21  ;;  %7266 = vst [vmem:[#allocation8_spill] sm:$0xff] %v6602_v25 }
 0xb3e   :  { %3196 = vmatpush1.bf16.msra.mxu0 %v6590_v27 }
 0xb3f   :  { %3197 = vmatprep.subr.bf16.mxu0 %v6593_v0 }
 0xb42   :  { %3198 = vmatpush1.bf16.msra.mxu0 %v6596_v10 }
 0xb43   :  { %3199 = vmatprep.subr.bf16.mxu0 %v6599_v41 }
 0xb46   :  { %3200 = vmatpush1.bf16.msra.mxu0 %v6602_v25 }
 0xb47   :  { %3201 = vmatprep.subr.bf16.mxu0 %v6605_v14 }
 0xb4a   :  { %3202 = vmatpush1.bf16.msra.mxu0 %v6608_v9 }
 0xb4b   :  { %3203 = vmatprep.subr.bf16.mxu0 %v6611_v35 }
 0xb4e   :  { %3204 = vmatpush1.bf16.msra.mxu0 %v7253_v28 }
 0xb4f   :  { %3205 = vmatprep.subr.bf16.mxu0 %v7254_v30 }
 0xb52   :  { %3206 = vmatpush1.bf16.msra.mxu0 %v7255_v32 }
 0xb53   :  { %3207 = vmatprep.subr.bf16.mxu0 %v7256_v34 }
 0xb56   :  { %3208 = vmatpush1.bf16.msra.mxu0 %v7257_v36 }
 0xb57   :  { %3209 = vmatprep.subr.bf16.mxu0 %v7258_v59 }
 0xb5a   :  { %3210 = vmatpush1.bf16.msra.mxu0 %v7259_v60 }
 0xb5b   :  { %3220 = vmatprep.subr.bf16.mxu0 %v7260_v61 }
 0xbe4   :  { %v4618_v7 = vpop.f32.mrb[68].mxu0 }
 0xbe5   :  { %v4619_v53 = vpop.f32.mrb[69].mxu0 }
 0xbe6   :  { %v4620_v18 = vadd.f32 %v4619_v53, %v4618_v7  ;;  %v4621_v15 = vpop.f32.mrb[70].mxu0  ;;  %v7270_v53 = vld [vmem:[#allocation27_spill] sm:$0xff] }
 0xbe7   :  { %v4622_v16 = vpop.f32.mrb[71].mxu0  ;;  %v7272_v15 = vld [vmem:[#allocation29_spill] sm:$0xff] }
 0xbe8   :  { %v6698_v16 = vld [vmem:[#allocation4 + $0x120] ss:$12 sps:$4 sm:$0xff]  }
 0xbe9   :  { %7273 = vst [vmem:[#allocation9_spill] sm:$0xff] %v6698_v16 }
 0xbf0   :  { %v3161_v28 = vpop.f32.mrb[72].mxu0  ;;  %v3080_v31 = vpop.f32.mrb[76].mxu1 }
 0xbf1   :  { %v3162_v30 = vadd.f32 %v4620_v18, %v3161_v28  ;;  %v3167_v23 = vpack.c.bf16 %v3080_v31, %v3080_v31  ;;  %v4882_v32 = vpop.f32.mrb[73].mxu0  ;;  %v3082_v20 = vpop.f32.mrb[77].mxu1  ;;  %v7271_v18 = vld [vmem:[#allocation28_spill] sm:$0xff]  ;;  %v6704_v31 = vld [vmem:[#allocation4 + $0x138] ss:$12 sps:$4 sm:$0xff]  }
 0xbf2   :  { %v3168_v34 = vpack.c.bf16 %v3082_v20, %v3082_v20  ;;  %v3164_v35 = vpop.f32.mrb[74].mxu0  ;;  %v3084_v36 = vpop.f32.mrb[78].mxu1  ;;  %v6701_v28 = vld [vmem:[#allocation4 + $0x13c] ss:$12 sps:$4 sm:$0xff]   ;;  %7275 = vst [vmem:[#allocation11_spill] sm:$0xff] %v6704_v31 }
 0xbf3   :  { %v3170_v59 = vadd.bf16 %v3167_v23, %v5714_v42  ;;  %v4883_v9 = vpop.f32.mrb[75].mxu0  ;;  %v3085_v60 = vpop.f32.mrb[79].mxu1  ;;  %v3169_v35 = vpack.c.bf16 %v3162_v30, %v3162_v30  ;;  %7274 = vst [vmem:[#allocation10_spill] sm:$0xff] %v6701_v28  ;;  %v6707_v30 = vld [vmem:[#allocation4 + $0x154] ss:$12 sps:$4 sm:$0xff]  }
 0xbf4   :  { %v3171_v61 = vadd.bf16 %v3168_v34, %v5717_v43  ;;  %v6685_v9 = vld [vmem:[#allocation4 + $0xb0] ss:$12 sps:$4 sm:$0xff]   ;;  %7276 = vst [vmem:[#allocation12_spill] sm:$0xff] %v6707_v30  ;;  %v6713_v32 = vld [vmem:[#allocation4 + $0x16c] ss:$12 sps:$4 sm:$0xff]  }
 0xbf5   :  { %v3173_v7 = vmax.bf16 %v7115_v52, %v3170_v59  ;;  %v6710_v23 = vld [vmem:[#allocation4 + $0x150] ss:$12 sps:$4 sm:$0xff]   ;;  %7278 = vst [vmem:[#allocation14_spill] sm:$0xff] %v6713_v32  ;;  %v6716_v20 = vld [vmem:[#allocation4 + $0x168] ss:$12 sps:$4 sm:$0xff]  }
 0xbf6   :  { %v3174_v14 = vmax.bf16 %v7115_v52, %v3171_v61  ;;  %7277 = vst [vmem:[#allocation13_spill] sm:$0xff] %v6710_v23  ;;  %7279 = vst [vmem:[#allocation15_spill] sm:$0xff] %v6716_v20  ;;  %v6719_v34 = vld [vmem:[#allocation4 + $0x184] ss:$12 sps:$4 sm:$0xff]  }
 0xbf7   :  { %7280 = vst [vmem:[#allocation16_spill] sm:$0xff] %v6719_v34 }
 0xbf8   :  { %3211 = vmatprep.mubr.bf16.mxu0 %v3174_v14  ;;  %3293 = vmatprep.mubr.bf16.mxu1 %v3174_v14  ;;  %v3172_v14 = vadd.bf16 %v3169_v35, %v5726_v11 }
 0xbf9   :  { %3212 = vmatmul.mubr.bf16.vlgmr.msra.gmra.mrb[76].mxu0 %v3173_v7  ;;  %3294 = vmatmul.mubr.bf16.vlgmr.msra.gmra.mrb[80].mxu1 %v3173_v7 }
 0xbfa   :  { %3221 = vmatpush1.bf16.msra.mxu0 %v6184_v55  ;;  %4885 = vmatpush3.bf16.msra.mxu1 %v6187_v38  ;;  %v3175_v55 = vmax.bf16 %v7115_v52, %v3172_v14  ;;  %v6665_v38 = vld [vmem:[#allocation4 + $0x140] ss:$12 sps:$4 sm:$0xff]  }
 0xbfb   :  { %3222 = vmatprep.subr.bf16.mxu0 %v6190_v13  ;;  %4886 = vmatprep.subr.bf16.mxu1 %v7117_v21  ;;  %v6669_v13 = vld [vmem:[#allocation4 + $0x80] ss:$12 sps:$4 sm:$0xff]  }
 0xbfc   :  { %4890 = vmatprep.mubr.msk.bf16.mxu1 %vm5342_vm0, %v7117_v21  ;;  %3252 = vmatprep.mubr.bf16.mxu0 %v7115_v52 }
 0xbfe   :  { %3223 = vmatpush1.bf16.msra.mxu0 %v6197_v33  ;;  %4887 = vmatpush3.bf16.msra.mxu1 %v6200_v39  ;;  %v6673_v33 = vld [vmem:[#allocation4 + $0x158] ss:$12 sps:$4 sm:$0xff]  }
 0xbff   :  { %4281 = vmatprep.subr.msk.bf16.mxu0 %vm603_vm2, %v6204_v50  ;;  %4888 = vmatprep.subr.bf16.mxu1 %v7117_v21  ;;  %v6677_v39 = vld [vmem:[#allocation4 + $0x98] ss:$12 sps:$4 sm:$0xff]   ;;  %v6681_v50 = vld [vmem:[#allocation4 + $0x170] ss:$12 sps:$4 sm:$0xff]  }
 0xc02   :  { %3225 = vmatpush1.bf16.msra.mxu0 %v7131_v58  ;;  %4889 = vmatpush3.bf16.msra.mxu1 %v7132_v49 }
 0xc03   :  { %3353 = vmatprep.subr.bf16.mxu1 %v6502_v37  ;;  %4654 = vmatprep.subr.bf16.mxu0 %v6429_v57 }
 0xc05   :  { %4891 = vmatmul.mubr.msk.bf16.vlgmr.msra.gmra.mrb[84].mxu1 %vm599_vm3, %v3175_v55  ;;  %4282 = vmatmul.mubr.msk.bf16.vlgmr.msra.gmra.mrb[76].mxu0 %vm599_vm3, %v3175_v55 }
 0xc06   :  { %3354 = vmatpush1.bf16.msra.mxu1 %v6508_v54  ;;  %4655 = vmatpush3.bf16.msra.mxu0 %v6511_v56 }
 0xc07   :  { %3355 = vmatprep.subr.bf16.mxu1 %v6514_v51  ;;  %4656 = vmatprep.subr.bf16.mxu0 %v6517_v5 }
 0xc0a   :  { %3356 = vmatpush1.bf16.msra.mxu1 %v6520_v6  ;;  %4657 = vmatpush3.bf16.msra.mxu0 %v6523_v19 }
 0xc0b   :  { %3357 = vmatprep.subr.bf16.mxu1 %v6526_v48  ;;  %4658 = vmatprep.subr.bf16.mxu0 %v6529_v8 }
 0xc0e   :  { %3358 = vmatpush1.bf16.msra.mxu1 %v6532_v29  ;;  %4659 = vmatpush3.bf16.msra.mxu0 %v6535_v22 }
 0xc0f   :  { %3359 = vmatprep.subr.bf16.mxu1 %v6538_v24  ;;  %4660 = vmatprep.subr.bf16.mxu0 %v6541_v26 }
 0xc12   :  { %3360 = vmatpush1.bf16.msra.mxu1 %v6544_v62  ;;  %4661 = vmatpush3.bf16.msra.mxu0 %v6547_v63 }
 0xc13   :  { %3361 = vmatprep.subr.bf16.mxu1 %v6550_v2  ;;  %4662 = vmatprep.subr.bf16.mxu0 %v6553_v3 }
 0xc16   :  { %3362 = vmatpush1.bf16.msra.mxu1 %v6556_v4  ;;  %4663 = vmatpush3.bf16.msra.mxu0 %v6559_v1 }
 0xc17   :  { %3363 = vmatprep.subr.bf16.mxu1 %v6562_v46  ;;  %4664 = vmatprep.subr.bf16.mxu0 %v6665_v38 }
 0xc1a   :  { %3364 = vmatpush1.bf16.msra.mxu1 %v6566_v47  ;;  %4665 = vmatpush3.bf16.msra.mxu0 %v6669_v13 }
 0xc1b   :  { %3365 = vmatprep.subr.bf16.mxu1 %v6570_v12  ;;  %4666 = vmatprep.subr.bf16.mxu0 %v6673_v33 }
 0xc1e   :  { %3366 = vmatpush1.bf16.msra.mxu1 %v6574_v44  ;;  %4667 = vmatpush3.bf16.msra.mxu0 %v6677_v39 }
 0xc1f   :  { %3367 = vmatprep.subr.bf16.mxu1 %v6578_v17  ;;  %4668 = vmatprep.subr.bf16.mxu0 %v6681_v50 }
 0xc22   :  { %3368 = vmatpush1.bf16.msra.mxu1 %v6582_v40  ;;  %4669 = vmatpush3.bf16.msra.mxu0 %v6685_v9 }
 0xc23   :  { %3369 = vmatprep.subr.bf16.mxu1 %v6586_v45  ;;  %4894 = vmatprep.subr.bf16.mxu0 %v7117_v21 }
 0xc26   :  { %3370 = vmatpush1.bf16.msra.mxu1 %v6590_v27 }
 0xc27   :  { %3371 = vmatprep.subr.bf16.mxu1 %v6593_v0 }
 0xc2a   :  { %3372 = vmatpush1.bf16.msra.mxu1 %v6596_v10 }
 0xc2b   :  { %3373 = vmatprep.subr.bf16.mxu1 %v6599_v41 }
 0xc2e   :  { %3374 = vmatpush1.bf16.msra.mxu1 %v6602_v25 }
 0xc2f   :  { %3375 = vmatprep.subr.bf16.mxu1 %v7270_v53 }
 0xc32   :  { %3376 = vmatpush1.bf16.msra.mxu1 %v7271_v18 }
 0xc33   :  { %3377 = vmatprep.subr.bf16.mxu1 %v7272_v15 }
 0xc36   :  { %3378 = vmatpush1.bf16.msra.mxu1 %v6698_v16 }
 0xc37   :  { %3379 = vmatprep.subr.bf16.mxu1 %v6701_v28 }
 0xc3a   :  { %3380 = vmatpush1.bf16.msra.mxu1 %v6704_v31 }
 0xc3b   :  { %3381 = vmatprep.subr.bf16.mxu1 %v6707_v30 }
 0xc3e   :  { %3382 = vmatpush1.bf16.msra.mxu1 %v6710_v23 }
 0xc3f   :  { %3383 = vmatprep.subr.bf16.mxu1 %v6713_v32 }
 0xc42   :  { %3384 = vmatpush1.bf16.msra.mxu1 %v6716_v20 }
 0xc43   :  { %3394 = vmatprep.subr.bf16.mxu1 %v6719_v34 }
 0xccc   :  { %v4644_v36 = vpop.f32.mrb[80].mxu1 }
 0xccd   :  { %v4645_v59 = vpop.f32.mrb[81].mxu1 }
 0xcce   :  { %v4646_v60 = vadd.f32 %v4645_v59, %v4644_v36  ;;  %v4647_v61 = vpop.f32.mrb[82].mxu1  ;;  %v6726_v59 = vld [vmem:[#allocation4 + $0x180] ss:$12 sps:$4 sm:$0xff]  }
 0xccf   :  { %v4648_v7 = vpop.f32.mrb[83].mxu1  ;;  %v7285_v61 = vld [vmem:[#allocation10_spill] sm:$0xff] }
 0xcd0   :  { %v7286_v7 = vld [vmem:[#allocation11_spill] sm:$0xff] }
 0xcd8   :  { %v3335_v35 = vpop.f32.mrb[84].mxu1  ;;  %v3254_v14 = vpop.f32.mrb[76].mxu0 }
 0xcd9   :  { %v3336_v55 = vadd.f32 %v4646_v60, %v3335_v35  ;;  %v3341_v23 = vpack.c.bf16 %v3254_v14, %v3254_v14  ;;  %v4892_v30 = vpop.f32.mrb[85].mxu1  ;;  %v3256_v31 = vpop.f32.mrb[77].mxu0  ;;  %v7284_v60 = vld [vmem:[#allocation9_spill] sm:$0xff]  ;;  %v7287_v35 = vld [vmem:[#allocation12_spill] sm:$0xff] }
 0xcda   :  { %v3342_v32 = vpack.c.bf16 %v3256_v31, %v3256_v31  ;;  %v3338_v28 = vpop.f32.mrb[86].mxu1  ;;  %v3258_v16 = vpop.f32.mrb[78].mxu0  ;;  %v6746_v30 = vld [vmem:[#allocation4 + $0x1b4] ss:$12 sps:$4 sm:$0x3f]  }
 0xcdb   :  { %v3344_v20 = vadd.bf16 %v3341_v23, %v5714_v42  ;;  %v4893_v15 = vpop.f32.mrb[87].mxu1  ;;  %v3259_v18 = vpop.f32.mrb[79].mxu0  ;;  %v6729_v28 = vld [vmem:[#allocation4 + $0x188] ss:$12 sps:$4 sm:$0xff]   ;;  %v6742_v16 = vld [vmem:[#allocation4 + $0x1a0] ss:$12 sps:$4 sm:$0xff]  }
 0xcdc   :  { %v3345_v34 = vadd.bf16 %v3342_v32, %v5717_v43  ;;  %v3343_v15 = vpack.c.bf16 %v3336_v55, %v3336_v55  ;;  %v6732_v18 = vld [vmem:[#allocation4 + $0x19c] ss:$12 sps:$4 sm:$0xff]   ;;  %v7281_v32 = vld [vmem:[#allocation27_spill] sm:$0xff]  ;;  %v7288_v14 = vld [vmem:[#allocation13_spill] sm:$0xff] }
 0xcdd   :  { %v3347_v36 = vmax.bf16 %v7115_v52, %v3344_v20  ;;  %v7282_v20 = vld [vmem:[#allocation28_spill] sm:$0xff]  ;;  %v7289_v55 = vld [vmem:[#allocation14_spill] sm:$0xff] }
 0xcde   :  { %v3348_v53 = vmax.bf16 %v7115_v52, %v3345_v34  ;;  %v3346_v31 = vadd.bf16 %v3343_v15, %v5726_v11  ;;  %v7283_v34 = vld [vmem:[#allocation29_spill] sm:$0xff]  ;;  %v7291_v15 = vld [vmem:[#allocation16_spill] sm:$0xff] }
 0xce0   :  { %3385 = vmatprep.mubr.bf16.mxu1 %v3348_v53  ;;  %3467 = vmatprep.mubr.bf16.mxu0 %v3348_v53  ;;  %v6739_v53 = vld [vmem:[#allocation4 + $0x198] ss:$12 sps:$4 sm:$0xff]   ;;  %v3349_v23 = vmax.bf16 %v7115_v52, %v3346_v31 }
 0xce1   :  { %3386 = vmatmul.mubr.bf16.vlgmr.msra.gmra.mrb[88].mxu1 %v3347_v36  ;;  %3468 = vmatmul.mubr.bf16.vlgmr.msra.gmra.mrb[80].mxu0 %v3347_v36  ;;  %v7290_v36 = vld [vmem:[#allocation15_spill] sm:$0xff] }
 0xce2   :  { %3395 = vmatpush1.bf16.msra.mxu1 %v6726_v59  ;;  %4895 = vmatpush3.bf16.msra.mxu0 %v6729_v28 }
 0xce3   :  { %3396 = vmatprep.subr.bf16.mxu1 %v6732_v18  ;;  %4896 = vmatprep.subr.bf16.mxu0 %v7117_v21 }
 0xce4   :  { %4900 = vmatprep.mubr.msk.bf16.mxu0 %vm5342_vm0, %v7117_v21  ;;  %3426 = vmatprep.mubr.bf16.mxu1 %v7115_v52 }
 0xce6   :  { %3397 = vmatpush1.bf16.msra.mxu1 %v6739_v53  ;;  %4897 = vmatpush3.bf16.msra.mxu0 %v6742_v16 }
 0xce7   :  { %4284 = vmatprep.subr.msk.bf16.mxu1 %vm603_vm2, %v6746_v30  ;;  %4898 = vmatprep.subr.bf16.mxu0 %v7117_v21 }
 0xcea   :  { %3399 = vmatpush1.bf16.msra.mxu1 %v7131_v58  ;;  %4899 = vmatpush3.bf16.msra.mxu0 %v7132_v49 }
 0xceb   :  { %3527 = vmatprep.subr.bf16.mxu0 %v6502_v37  ;;  %4680 = vmatprep.subr.bf16.mxu1 %v6429_v57 }
 0xced   :  { %4901 = vmatmul.mubr.msk.bf16.vlgmr.msra.gmra.mrb[84].mxu0 %vm599_vm3, %v3349_v23  ;;  %4285 = vmatmul.mubr.msk.bf16.vlgmr.msra.gmra.mrb[88].mxu1 %vm599_vm3, %v3349_v23 }
 0xcee   :  { %3528 = vmatpush1.bf16.msra.mxu0 %v6508_v54  ;;  %4681 = vmatpush3.bf16.msra.mxu1 %v6511_v56 }
 0xcef   :  { %3529 = vmatprep.subr.bf16.mxu0 %v6514_v51  ;;  %4682 = vmatprep.subr.bf16.mxu1 %v6517_v5 }
 0xcf2   :  { %3530 = vmatpush1.bf16.msra.mxu0 %v6520_v6  ;;  %4683 = vmatpush3.bf16.msra.mxu1 %v6523_v19 }
 0xcf3   :  { %3531 = vmatprep.subr.bf16.mxu0 %v6526_v48  ;;  %4684 = vmatprep.subr.bf16.mxu1 %v6529_v8 }
 0xcf6   :  { %3532 = vmatpush1.bf16.msra.mxu0 %v6532_v29  ;;  %4685 = vmatpush3.bf16.msra.mxu1 %v6535_v22 }
 0xcf7   :  { %3533 = vmatprep.subr.bf16.mxu0 %v6538_v24  ;;  %4686 = vmatprep.subr.bf16.mxu1 %v6541_v26 }
 0xcfa   :  { %3534 = vmatpush1.bf16.msra.mxu0 %v6544_v62  ;;  %4687 = vmatpush3.bf16.msra.mxu1 %v6547_v63 }
 0xcfb   :  { %3535 = vmatprep.subr.bf16.mxu0 %v6550_v2  ;;  %4688 = vmatprep.subr.bf16.mxu1 %v6553_v3 }
 0xcfe   :  { %3536 = vmatpush1.bf16.msra.mxu0 %v6556_v4  ;;  %4689 = vmatpush3.bf16.msra.mxu1 %v6559_v1 }
 0xcff   :  { %3537 = vmatprep.subr.bf16.mxu0 %v6562_v46  ;;  %4690 = vmatprep.subr.bf16.mxu1 %v6665_v38 }
 0xd02   :  { %3538 = vmatpush1.bf16.msra.mxu0 %v6566_v47  ;;  %4691 = vmatpush3.bf16.msra.mxu1 %v6669_v13 }
 0xd03   :  { %3539 = vmatprep.subr.bf16.mxu0 %v6570_v12  ;;  %4692 = vmatprep.subr.bf16.mxu1 %v6673_v33 }
 0xd06   :  { %3540 = vmatpush1.bf16.msra.mxu0 %v6574_v44  ;;  %4693 = vmatpush3.bf16.msra.mxu1 %v6677_v39 }
 0xd07   :  { %3541 = vmatprep.subr.bf16.mxu0 %v6578_v17  ;;  %4694 = vmatprep.subr.bf16.mxu1 %v6681_v50 }
 0xd0a   :  { %3542 = vmatpush1.bf16.msra.mxu0 %v6582_v40  ;;  %4695 = vmatpush3.bf16.msra.mxu1 %v6685_v9 }
 0xd0b   :  { %3543 = vmatprep.subr.bf16.mxu0 %v6586_v45  ;;  %4904 = vmatprep.subr.bf16.mxu1 %v7117_v21 }
 0xd0e   :  { %3544 = vmatpush1.bf16.msra.mxu0 %v6590_v27 }
 0xd0f   :  { %3545 = vmatprep.subr.bf16.mxu0 %v6593_v0 }
 0xd12   :  { %3546 = vmatpush1.bf16.msra.mxu0 %v6596_v10 }
 0xd13   :  { %3547 = vmatprep.subr.bf16.mxu0 %v6599_v41 }
 0xd16   :  { %3548 = vmatpush1.bf16.msra.mxu0 %v6602_v25 }
 0xd17   :  { %3549 = vmatprep.subr.bf16.mxu0 %v7281_v32 }
 0xd1a   :  { %3550 = vmatpush1.bf16.msra.mxu0 %v7282_v20 }
 0xd1b   :  { %3551 = vmatprep.subr.bf16.mxu0 %v7283_v34 }
 0xd1e   :  { %3552 = vmatpush1.bf16.msra.mxu0 %v7284_v60 }
 0xd1f   :  { %3553 = vmatprep.subr.bf16.mxu0 %v7285_v61 }
 0xd22   :  { %3554 = vmatpush1.bf16.msra.mxu0 %v7286_v7 }
 0xd23   :  { %3555 = vmatprep.subr.bf16.mxu0 %v7287_v35 }
 0xd26   :  { %3556 = vmatpush1.bf16.msra.mxu0 %v7288_v14 }
 0xd27   :  { %3557 = vmatprep.subr.bf16.mxu0 %v7289_v55 }
 0xd2a   :  { %3558 = vmatpush1.bf16.msra.mxu0 %v7290_v36 }
 0xd2b   :  { %3568 = vmatprep.subr.bf16.mxu0 %v7291_v15 }
 0xdb4   :  { %v4670_v31 = vpop.f32.mrb[80].mxu0 }
 0xdb5   :  { %v4671_v23 = vpop.f32.mrb[81].mxu0 }
 0xdb6   :  { %v4672_v20 = vadd.f32 %v4671_v23, %v4670_v31  ;;  %v4673_v34 = vpop.f32.mrb[82].mxu0  ;;  %v5173_v31 = vld [vmem:[%s6983_s7 + $0x70] sm:$0xff]   ;;  %v5174_v23 = vld [vmem:[%s6983_s7 + $0x88] sm:$0xff]  }
 0xdb7   :  { %v4674_v32 = vpop.f32.mrb[83].mxu0 }
 0xdc0   :  { %v3509_v60 = vpop.f32.mrb[84].mxu0  ;;  %v3428_v25 = vpop.f32.mrb[88].mxu1 }
 0xdc1   :  { %v3510_v61 = vadd.f32 %v4672_v20, %v3509_v60  ;;  %v3515_v41 = vpack.c.bf16 %v3428_v25, %v3428_v25  ;;  %v4902_v7 = vpop.f32.mrb[85].mxu0  ;;  %v3430_v10 = vpop.f32.mrb[89].mxu1 }
 0xdc2   :  { %v3516_v35 = vpack.c.bf16 %v3430_v10, %v3430_v10  ;;  %v3512_v0 = vpop.f32.mrb[86].mxu0  ;;  %v3432_v14 = vpop.f32.mrb[90].mxu1  ;;  %v5167_v7 = vld [vmem:[%s6983_s7 + $0x18] sm:$0xff]  }
 0xdc3   :  { %v3518_v55 = vadd.bf16 %v3515_v41, %v5714_v42  ;;  %v4903_v27 = vpop.f32.mrb[87].mxu0  ;;  %v3433_v36 = vpop.f32.mrb[91].mxu1  ;;  %v3517_v0 = vpack.c.bf16 %v3510_v61, %v3510_v61  ;;  %v5169_v14 = vld [vmem:[%s6983_s7 + $0x20] sm:$0xff]  }
 0xdc4   :  { %v3519_v15 = vadd.bf16 %v3516_v35, %v5717_v43  ;;  %v5168_v35 = vld [vmem:[%s6983_s7 + $0x60] sm:$0xff]  }
 0xdc5   :  { %v3521_v34 = vmax.bf16 %v7115_v52, %v3518_v55  ;;  %v5170_v55 = vld [vmem:[%s6983_s7 + $0x68] sm:$0xff]   ;;  %v5171_v36 = vld [vmem:[%s6983_s7 + $0x80] sm:$0xff]  }
 0xdc6   :  { %v3522_v45 = vmax.bf16 %v7115_v52, %v3519_v15  ;;  %v5172_v15 = vld [vmem:[%s6983_s7 + $0x28] sm:$0xff]  }
 0xdc8   :  { %3559 = vmatprep.mubr.bf16.mxu0 %v3522_v45  ;;  %3641 = vmatprep.mubr.bf16.mxu1 %v3522_v45  ;;  %v3520_v45 = vadd.bf16 %v3517_v0, %v5726_v11  ;;  %v5177_v0 = vld [vmem:[%s6983_s7 + $0x90] sm:$0x3f]  }
 0xdc9   :  { %3560 = vmatmul.mubr.bf16.vlgmr.msra.gmra.mrb[88].mxu0 %v3521_v34  ;;  %3642 = vmatmul.mubr.bf16.vlgmr.msra.gmra.mrb[92].mxu1 %v3521_v34  ;;  %v5175_v34 = vld [vmem:[%s6983_s7 + $0x30] sm:$0xff]  }
 0xdca   :  { %3569 = vmatpush1.bf16.msra.mxu0 %v6726_v59  ;;  %4905 = vmatpush3.bf16.msra.mxu1 %v6729_v28  ;;  %v3523_v27 = vmax.bf16 %v7115_v52, %v3520_v45  ;;  %v5176_v45 = vld [vmem:[%s6983_s7 + $0x78] sm:$0xff]  }
 0xdcb   :  { %3570 = vmatprep.subr.bf16.mxu0 %v6732_v18  ;;  %4906 = vmatprep.subr.bf16.mxu1 %v7117_v21 }
 0xdcc   :  { %4910 = vmatprep.mubr.msk.bf16.mxu1 %vm5342_vm0, %v7117_v21  ;;  %3600 = vmatprep.mubr.bf16.mxu0 %v7115_v52 }
 0xdce   :  { %3571 = vmatpush1.bf16.msra.mxu0 %v6739_v53  ;;  %4907 = vmatpush3.bf16.msra.mxu1 %v6742_v16 }
 0xdcf   :  { %4287 = vmatprep.subr.msk.bf16.mxu0 %vm603_vm2, %v6746_v30  ;;  %4908 = vmatprep.subr.bf16.mxu1 %v7117_v21 }
 0xdd2   :  { %3573 = vmatpush1.bf16.msra.mxu0 %v7131_v58  ;;  %4909 = vmatpush3.bf16.msra.mxu1 %v7132_v49 }
 0xdd3   :  { %3701 = vmatprep.subr.bf16.mxu1 %v6502_v37  ;;  %4706 = vmatprep.subr.bf16.mxu0 %v6429_v57  ;;  %v7292_v57 = vld [vmem:[#allocation22_spill] sm:$0xff]  ;;  %v7293_v37 = vld [vmem:[#allocation23_spill] sm:$0xff] }
 0xdd5   :  { %4911 = vmatmul.mubr.msk.bf16.vlgmr.msra.gmra.mrb[96].mxu1 %vm599_vm3, %v3523_v27  ;;  %4288 = vmatmul.mubr.msk.bf16.vlgmr.msra.gmra.mrb[88].mxu0 %vm599_vm3, %v3523_v27  ;;  %v4034_v27 = vsel %vm603_vm2, %v5177_v0, 0 }
 0xdd6   :  { %3702 = vmatpush1.bf16.msra.mxu1 %v6508_v54  ;;  %4707 = vmatpush3.bf16.msra.mxu0 %v6511_v56  ;;  %v7294_v54 = vld [vmem:[#allocation24_spill] sm:$0xff]  ;;  %v7295_v56 = vld [vmem:[#allocation25_spill] sm:$0xff] }
 0xdd7   :  { %3703 = vmatprep.subr.bf16.mxu1 %v6514_v51  ;;  %4708 = vmatprep.subr.bf16.mxu0 %v6517_v5  ;;  %v7296_v51 = vld [vmem:[#allocation26_spill] sm:$0xff]  ;;  %v7297_v5 = vld [vmem:[#allocation8_spill] sm:$0xff] }
 0xdda   :  { %3704 = vmatpush1.bf16.msra.mxu1 %v6520_v6  ;;  %4709 = vmatpush3.bf16.msra.mxu0 %v6523_v19  ;;  %v7298_v6 = vld [vmem:[#allocation27_spill] sm:$0xff]  ;;  %v7299_v19 = vld [vmem:[#allocation28_spill] sm:$0xff] }
 0xddb   :  { %3705 = vmatprep.subr.bf16.mxu1 %v6526_v48  ;;  %4710 = vmatprep.subr.bf16.mxu0 %v6529_v8  ;;  %v7300_v48 = vld [vmem:[#allocation29_spill] sm:$0xff] }
 0xddc   :  { %v7301_v8 = vld [vmem:[#allocation9_spill] sm:$0xff] }
 0xdde   :  { %3706 = vmatpush1.bf16.msra.mxu1 %v6532_v29  ;;  %4711 = vmatpush3.bf16.msra.mxu0 %v6535_v22  ;;  %v7302_v29 = vld [vmem:[#allocation10_spill] sm:$0xff]  ;;  %v7303_v22 = vld [vmem:[#allocation11_spill] sm:$0xff] }
 0xddf   :  { %3707 = vmatprep.subr.bf16.mxu1 %v6538_v24  ;;  %4712 = vmatprep.subr.bf16.mxu0 %v6541_v26  ;;  %v7304_v24 = vld [vmem:[#allocation12_spill] sm:$0xff]  ;;  %v7305_v26 = vld [vmem:[#allocation13_spill] sm:$0xff] }
 0xde2   :  { %3708 = vmatpush1.bf16.msra.mxu1 %v6544_v62  ;;  %4713 = vmatpush3.bf16.msra.mxu0 %v6547_v63  ;;  %v7306_v62 = vld [vmem:[#allocation14_spill] sm:$0xff]  ;;  %v7307_v63 = vld [vmem:[#allocation15_spill] sm:$0xff] }
 0xde3   :  { %3709 = vmatprep.subr.bf16.mxu1 %v6550_v2  ;;  %4714 = vmatprep.subr.bf16.mxu0 %v6553_v3  ;;  %v7308_v2 = vld [vmem:[#allocation16_spill] sm:$0xff] }
 0xde6   :  { %3710 = vmatpush1.bf16.msra.mxu1 %v6556_v4  ;;  %4715 = vmatpush3.bf16.msra.mxu0 %v6559_v1 }
 0xde7   :  { %3711 = vmatprep.subr.bf16.mxu1 %v6562_v46  ;;  %4716 = vmatprep.subr.bf16.mxu0 %v6665_v38 }
 0xdea   :  { %3712 = vmatpush1.bf16.msra.mxu1 %v6566_v47  ;;  %4717 = vmatpush3.bf16.msra.mxu0 %v6669_v13 }
 0xdeb   :  { %3713 = vmatprep.subr.bf16.mxu1 %v6570_v12  ;;  %4718 = vmatprep.subr.bf16.mxu0 %v6673_v33 }
 0xdee   :  { %3714 = vmatpush1.bf16.msra.mxu1 %v6574_v44  ;;  %4719 = vmatpush3.bf16.msra.mxu0 %v6677_v39 }
 0xdef   :  { %3715 = vmatprep.subr.bf16.mxu1 %v6578_v17  ;;  %4720 = vmatprep.subr.bf16.mxu0 %v6681_v50 }
 0xdf2   :  { %3716 = vmatpush1.bf16.msra.mxu1 %v6582_v40  ;;  %4721 = vmatpush3.bf16.msra.mxu0 %v6685_v9 }
 0xdf3   :  { %3717 = vmatprep.subr.bf16.mxu1 %v7292_v57  ;;  %4914 = vmatprep.subr.bf16.mxu0 %v7117_v21  ;;  %v5178_v57 = vld [vmem:[%s6983_s7 + $0x38] sm:$0xff]  }
 0xdf6   :  { %3718 = vmatpush1.bf16.msra.mxu1 %v7293_v37 }
 0xdf7   :  { %3719 = vmatprep.subr.bf16.mxu1 %v7294_v54 }
 0xdfa   :  { %3720 = vmatpush1.bf16.msra.mxu1 %v7295_v56 }
 0xdfb   :  { %3721 = vmatprep.subr.bf16.mxu1 %v7296_v51 }
 0xdfe   :  { %3722 = vmatpush1.bf16.msra.mxu1 %v7297_v5 }
 0xdff   :  { %3723 = vmatprep.subr.bf16.mxu1 %v7298_v6 }
 0xe02   :  { %3724 = vmatpush1.bf16.msra.mxu1 %v7299_v19 }
 0xe03   :  { %3725 = vmatprep.subr.bf16.mxu1 %v7300_v48 }
 0xe06   :  { %3726 = vmatpush1.bf16.msra.mxu1 %v7301_v8 }
 0xe07   :  { %3727 = vmatprep.subr.bf16.mxu1 %v7302_v29 }
 0xe0a   :  { %3728 = vmatpush1.bf16.msra.mxu1 %v7303_v22 }
 0xe0b   :  { %3729 = vmatprep.subr.bf16.mxu1 %v7304_v24 }
 0xe0e   :  { %3730 = vmatpush1.bf16.msra.mxu1 %v7305_v26 }
 0xe0f   :  { %3731 = vmatprep.subr.bf16.mxu1 %v7306_v62 }
 0xe12   :  { %3732 = vmatpush1.bf16.msra.mxu1 %v7307_v63 }
 0xe13   :  { %3742 = vmatprep.subr.bf16.mxu1 %v7308_v2 }
 0xe9c   :  { %v4696_v3 = vpop.f32.mrb[92].mxu1 }
 0xe9d   :  { %v4697_v4 = vpop.f32.mrb[93].mxu1 }
 0xe9e   :  { %v4698_v1 = vadd.f32 %v4697_v4, %v4696_v3  ;;  %v4699_v46 = vpop.f32.mrb[94].mxu1 }
 0xe9f   :  { %v4700_v47 = vpop.f32.mrb[95].mxu1 }
 0xea8   :  { %v3683_v12 = vpop.f32.mrb[96].mxu1  ;;  %v3602_v44 = vpop.f32.mrb[88].mxu0 }
 0xea9   :  { %v3684_v17 = vadd.f32 %v4698_v1, %v3683_v12  ;;  %v3689_v40 = vpack.c.bf16 %v3602_v44, %v3602_v44  ;;  %v4912_v10 = vpop.f32.mrb[97].mxu1  ;;  %v3604_v41 = vpop.f32.mrb[89].mxu0 }
 0xeaa   :  { %v3690_v25 = vpack.c.bf16 %v3604_v41, %v3604_v41  ;;  %v3686_v38 = vpop.f32.mrb[98].mxu1  ;;  %v3606_v13 = vpop.f32.mrb[90].mxu0 }
 0xeab   :  { %v3692_v33 = vadd.bf16 %v3689_v40, %v5714_v42  ;;  %v4913_v39 = vpop.f32.mrb[99].mxu1  ;;  %v3607_v50 = vpop.f32.mrb[91].mxu0  ;;  %v3691_v60 = vpack.c.bf16 %v3684_v17, %v3684_v17 }
 0xeac   :  { %v3693_v9 = vadd.bf16 %v3690_v25, %v5717_v43 }
 0xead   :  { %v3695_v20 = vmax.bf16 %v7115_v52, %v3692_v33  ;;  %v3694_v61 = vadd.bf16 %v3691_v60, %v5726_v11 }
 0xeae   :  { %v3696_v32 = vmax.bf16 %v7115_v52, %v3693_v9 }
 0xeb0   :  { %3733 = vmatprep.mubr.bf16.mxu1 %v3696_v32  ;;  %3815 = vmatprep.mubr.bf16.mxu0 %v3696_v32 }
 0xeb1   :  { %3734 = vmatmul.mubr.bf16.vlgmr.msra.gmra.mrb[100].mxu1 %v3695_v20  ;;  %3816 = vmatmul.mubr.bf16.vlgmr.msra.gmra.mrb[92].mxu0 %v3695_v20 }
 0xeb2   :  { %3743 = vmatpush1.bf16.msra.mxu1 %v6726_v59  ;;  %4915 = vmatpush3.bf16.msra.mxu0 %v6729_v28  ;;  %v5160_v59 = vld [vmem:[%s6983_s7 + $0x40] sm:$0xff]  }
 0xeb3   :  { %3744 = vmatprep.subr.bf16.mxu1 %v6732_v18  ;;  %4916 = vmatprep.subr.bf16.mxu0 %v7117_v21  ;;  %v5161_v28 = vld [vmem:[%s6983_s7] sm:$0xff]   ;;  %v3697_v18 = vmax.bf16 %v7115_v52, %v3694_v61 }
 0xeb4   :  { %4920 = vmatprep.mubr.msk.bf16.mxu0 %vm5342_vm0, %v7117_v21  ;;  %3774 = vmatprep.mubr.bf16.mxu1 %v7115_v52 }
 0xeb6   :  { %3745 = vmatpush1.bf16.msra.mxu1 %v6739_v53  ;;  %4917 = vmatpush3.bf16.msra.mxu0 %v6742_v16  ;;  %v5162_v53 = vld [vmem:[%s6983_s7 + $0x48] sm:$0xff]   ;;  %v5165_v16 = vld [vmem:[%s6983_s7 + $0x10] sm:$0xff]  }
 0xeb7   :  { %4290 = vmatprep.subr.msk.bf16.mxu1 %vm603_vm2, %v6746_v30  ;;  %4918 = vmatprep.subr.bf16.mxu0 %v7117_v21  ;;  %v5166_v30 = vld [vmem:[%s6983_s7 + $0x58] sm:$0xff]  }
 0xeba   :  { %3747 = vmatpush1.bf16.msra.mxu1 %v7131_v58  ;;  %4919 = vmatpush3.bf16.msra.mxu0 %v7132_v49  ;;  %v5163_v58 = vld [vmem:[%s6983_s7 + $0x8] sm:$0xff]   ;;  %v5164_v49 = vld [vmem:[%s6983_s7 + $0x50] sm:$0xff]  }
 0xebb   :  { %4732 = vmatprep.subr.bf16.mxu0 %v5160_v59  ;;  %4924 = vmatprep.subr.bf16.mxu1 %v7117_v21 }
 0xebd   :  { %4921 = vmatmul.mubr.msk.bf16.vlgmr.msra.gmra.mrb[96].mxu0 %vm599_vm3, %v3697_v18  ;;  %4291 = vmatmul.mubr.msk.bf16.vlgmr.msra.gmra.mrb[100].mxu1 %vm599_vm3, %v3697_v18 }
 0xebe   :  { %4733 = vmatpush3.bf16.msra.mxu0 %v5161_v28  ;;  %4930 = vmatprep.mubr.msk.bf16.mxu1 %vm5342_vm0, %v7117_v21 }
 0xebf   :  { %4734 = vmatprep.subr.bf16.mxu0 %v5162_v53  ;;  %4925 = vmatpush3.bf16.msra.mxu1 %v5171_v36 }
 0xec0   :  { %4926 = vmatprep.subr.bf16.mxu1 %v7117_v21 }
 0xec2   :  { %4735 = vmatpush3.bf16.msra.mxu0 %v5163_v58 }
 0xec3   :  { %4736 = vmatprep.subr.bf16.mxu0 %v5164_v49  ;;  %4927 = vmatpush3.bf16.msra.mxu1 %v5174_v23 }
 0xec4   :  { %4928 = vmatprep.subr.bf16.mxu1 %v7117_v21 }
 0xec6   :  { %4737 = vmatpush3.bf16.msra.mxu0 %v5165_v16 }
 0xec7   :  { %4738 = vmatprep.subr.bf16.mxu0 %v5166_v30  ;;  %4929 = vmatpush3.bf16.msra.mxu1 %v4034_v27 }
 0xeca   :  { %4739 = vmatpush3.bf16.msra.mxu0 %v5167_v7 }
 0xecb   :  { %4740 = vmatprep.subr.bf16.mxu0 %v5168_v35 }
 0xece   :  { %4741 = vmatpush3.bf16.msra.mxu0 %v5169_v14 }
 0xecf   :  { %4742 = vmatprep.subr.bf16.mxu0 %v5170_v55 }
 0xed2   :  { %4743 = vmatpush3.bf16.msra.mxu0 %v5172_v15 }
 0xed3   :  { %4744 = vmatprep.subr.bf16.mxu0 %v5173_v31 }
 0xed6   :  { %4745 = vmatpush3.bf16.msra.mxu0 %v5175_v34 }
 0xed7   :  { %4746 = vmatprep.subr.bf16.mxu0 %v5176_v45 }
 0xeda   :  { %4747 = vmatpush3.bf16.msra.mxu0 %v5178_v57 }
 0xf84   :  { %v4722_v37 = vpop.f32.mrb[92].mxu0 }
 0xf85   :  { %v4723_v54 = vpop.f32.mrb[93].mxu0 }
 0xf86   :  { %v4724_v21 = vadd.f32 %v4723_v54, %v4722_v37  ;;  %v4725_v56 = vpop.f32.mrb[94].mxu0 }
 0xf87   :  { %v4726_v51 = vpop.f32.mrb[95].mxu0 }
 0xf90   :  { %v3857_v5 = vpop.f32.mrb[96].mxu0  ;;  %v3776_v6 = vpop.f32.mrb[100].mxu1 }
 0xf91   :  { %v3858_v19 = vadd.f32 %v4724_v21, %v3857_v5  ;;  %v3863_v48 = vpack.c.bf16 %v3776_v6, %v3776_v6  ;;  %v4922_v8 = vpop.f32.mrb[97].mxu0  ;;  %v3778_v29 = vpop.f32.mrb[101].mxu1 }
 0xf92   :  { %v3864_v22 = vpack.c.bf16 %v3778_v29, %v3778_v29  ;;  %v3860_v24 = vpop.f32.mrb[98].mxu0  ;;  %v3780_v26 = vpop.f32.mrb[102].mxu1 }
 0xf93   :  { %v3865_v62 = vpack.c.bf16 %v3858_v19, %v3858_v19  ;;  %v3866_v63 = vadd.bf16 %v3863_v48, %v5714_v42  ;;  %v4923_v2 = vpop.f32.mrb[99].mxu0  ;;  %v3781_v3 = vpop.f32.mrb[103].mxu1  ;;  %v4293_v42 = vld [vmem:[%s6984_s8] ss:$0 sm:$0xff] }
 0xf94   :  { %v3867_v4 = vadd.bf16 %v3864_v22, %v5717_v43 }
 0xf95   :  { %v3868_v1 = vadd.bf16 %v3865_v62, %v5726_v11  ;;  %v3869_v12 = vmax.bf16 %v7115_v52, %v3866_v63 }
 0xf96   :  { %v3870_v46 = vmax.bf16 %v7115_v52, %v3867_v4 }
 0xf97   :  { %v3871_v47 = vmax.bf16 %v7115_v52, %v3868_v1 }
 0xf98   :  { %4068 = vmatprep.mubr.bf16.mxu0 %v3870_v46 }
 0xf99   :  { %4931 = vmatmul.mubr.msk.bf16.vlgmr.msra.gmra.mrb[104].mxu1 %vm599_vm3, %v3871_v47  ;;  %4069 = vmatmul.mubr.bf16.vlgmr.msra.gmra.mrb[100].mxu0 %v3869_v12 }
0x106c   :  { %v4110_v44 = vpop.f32.mrb[104].mxu1  ;;  %v4748_v17 = vpop.f32.mrb[100].mxu0 }
0x106d   :  { %v4932_v40 = vpop.f32.mrb[105].mxu1  ;;  %v4749_v43 = vpop.f32.mrb[101].mxu0 }
0x106e   :  { %v4750_v10 = vadd.f32 %v4749_v43, %v4748_v17  ;;  %v4113_v11 = vpop.f32.mrb[106].mxu1  ;;  %v4751_v41 = vpop.f32.mrb[102].mxu0 }
0x106f   :  { %v4933_v25 = vpop.f32.mrb[107].mxu1  ;;  %v4752_v38 = vpop.f32.mrb[103].mxu0 }
0x1070   :  { %v4071_v13 = vadd.f32 %v4750_v10, %v4293_v42 }
0x1072   :  { %v4111_v33 = vadd.f32 %v4110_v44, %v4071_v13 }
0x1074   :  { %4116 = vst [vmem:[%s6985_s9] sm:$0xff] %v4111_v33 }
0x1075   :  { %4121 = vsyncpa [#allocation3], 1 }
0x1076   :  { %4122 = vsyncpa [#allocation5], 1 }

</bundles_post_ra>
